<compile_context>
chip_gen: v6e
topology: v6e:2x2x1
jax: 0.10.0
libtpu: 0.0.40
codegen_flags: <defaults>
</compile_context>

<pallas_src>
import functools
import math

import jax
import jax.numpy as jnp
from jax.experimental import pallas as pl
from jax.experimental.pallas import tpu as pltpu


def _layernorm_f32(x, gamma, beta, eps=1e-5):
    """LayerNorm over last dim in float32 (matches the torch LayerNorm subclass)."""
    x32 = x.astype(jnp.float32)
    mu = jnp.mean(x32, axis=-1, keepdims=True)
    xc = x32 - mu
    var = jnp.mean(xc * xc, axis=-1, keepdims=True)
    return xc * jax.lax.rsqrt(var + eps) * gamma + beta


def _transformer_kernel(
    x_ref,                      # (TM, D) input rows (only consumed at layer 0)
    ln1_g, ln1_b,               # (1, 1, D) f32
    w_qkv,                      # (1, D, 3D) bf16   (1/sqrt(Dh) folded into Q slab)
    b_qkv,                      # (1, 1, 3D) f32
    w_out,                      # (1, D, D)  bf16
    b_out,                      # (1, 1, D)  f32
    ln2_g, ln2_b,               # (1, 1, D)  f32
    w_fc,                       # (1, D, 4D) bf16
    b_fc,                       # (1, 1, 4D) f32
    w_pr,                       # (1, 4D, D) bf16
    b_pr,                       # (1, 1, D)  f32
    o_ref,                      # (TM, D) out — resident across layer axis: residual carry
    attn_sc,                    # VMEM (TM, D) bf16 — assembled per-head attention output
    *, n_head: int, n_batch: int, seq_len: int,
):
    layer = pl.program_id(1)

    # Residual stream lives in the output block (resident across the layer axis);
    # HBM writeback only happens once per row block, after the last layer.
    @pl.when(layer == 0)
    def _():
        o_ref[...] = x_ref[...].astype(o_ref.dtype)

    x = o_ref[...].astype(jnp.float32)          # (TM, D) f32 residual stream
    TM, D = x.shape
    Dh = D // n_head

    # ---------------- attention branch ----------------
    h1 = _layernorm_f32(x, ln1_g[0], ln1_b[0])
    qkv = jnp.dot(h1.astype(jnp.bfloat16), w_qkv[0],
                  preferred_element_type=jnp.float32) + b_qkv[0]      # (TM, 3D)
    q = qkv[:, 0 * D:1 * D]                     # 1/sqrt(Dh) already folded in
    k = qkv[:, 1 * D:2 * D]
    v = qkv[:, 2 * D:3 * D]

    # Per-head attention; head outputs are written into one bf16 (TM, D) VMEM
    # slab so the out-projection is a single full-width MXU matmul.
    # TODO(synk): for n_head > ~4 switch this static unroll to lax.fori_loop
    # (pairing heads so the slab stores stay 128-lane dense) to bound vreg
    # live ranges for CLIP-B/L head counts.
    for h in range(n_head):
        sl = slice(h * Dh, (h + 1) * Dh)
        qh = q[:, sl].reshape(n_batch, seq_len, Dh).astype(jnp.bfloat16)
        kh = k[:, sl].reshape(n_batch, seq_len, Dh).astype(jnp.bfloat16)
        vh = v[:, sl].reshape(n_batch, seq_len, Dh).astype(jnp.bfloat16)
        s = jnp.einsum("bld,bmd->blm", qh, kh,
                       preferred_element_type=jnp.float32)            # (B, L, L)
        s = s - jnp.max(s, axis=-1, keepdims=True)
        p = jnp.exp(s)
        p = p * pl.reciprocal(jnp.sum(p, axis=-1, keepdims=True), approx=True)
        oh = jnp.einsum("blm,bmd->bld", p.astype(jnp.bfloat16), vh,
                        preferred_element_type=jnp.float32)           # (B, L, Dh)
        attn_sc[:, sl] = oh.reshape(TM, Dh).astype(jnp.bfloat16)

    # Single (TM, D) x (D, D) out-projection: full contraction width on the MXU,
    # b_out folded into the residual add (no zero-init accumulator, no per-head adds).
    x = x + b_out[0] + jnp.dot(attn_sc[...], w_out[0],
                               preferred_element_type=jnp.float32)

    # ---------------- MLP branch ----------------
    # TODO(synk): at production D on v7x (64 MiB VMEM/TC) chunk the MLP over
    # 4D-dim slabs of w_fc / w_pr (inner fori_loop, accumulate the c_proj
    # result) instead of one-shot matmuls.
    h2 = _layernorm_f32(x, ln2_g[0], ln2_b[0])
    f = jnp.dot(h2.astype(jnp.bfloat16), w_fc[0],
                preferred_element_type=jnp.float32) + b_fc[0]         # (TM, 4D)
    f = f * jax.nn.sigmoid(1.702 * f)           # QuickGELU, f32 (VPU/EUP)
    x = x + b_pr[0] + jnp.dot(f.astype(jnp.bfloat16), w_pr[0],
                              preferred_element_type=jnp.float32)

    o_ref[...] = x.astype(o_ref.dtype)


# ----------------------------------------------------------------------------
# parameter construction / packing
# ----------------------------------------------------------------------------
def init_layer_params(key, width):
    """Per-layer f32 params, weights already transposed to (in, out)."""
    D = width
    ks = jax.random.split(key, 6)
    s = 0.02
    in_proj_w = jax.random.normal(ks[0], (D, 3 * D), jnp.float32) * s   # in_proj_weight.T
    in_proj_b = jax.random.normal(ks[1], (3 * D,), jnp.float32) * s
    out_proj_w = jax.random.normal(ks[2], (D, D), jnp.float32) * s      # out_proj.weight.T
    out_proj_b = jax.random.normal(ks[3], (D,), jnp.float32) * s
    fc_w = jax.random.normal(ks[4], (D, 4 * D), jnp.float32) * s        # c_fc.weight.T
    fc_b = jnp.zeros((4 * D,), jnp.float32)
    pr_w = jax.random.normal(ks[5], (4 * D, D), jnp.float32) * s        # c_proj.weight.T
    pr_b = jnp.zeros((D,), jnp.float32)
    ln1_g = jnp.ones((D,), jnp.float32)
    ln1_b = jnp.zeros((D,), jnp.float32)
    ln2_g = jnp.ones((D,), jnp.float32)
    ln2_b = jnp.zeros((D,), jnp.float32)
    return (ln1_g, ln1_b, in_proj_w, in_proj_b, out_proj_w, out_proj_b,
            ln2_g, ln2_b, fc_w, fc_b, pr_w, pr_b)


def pack_params_for_kernel(layer_params, n_head):
    """Stack per-layer params on a leading layer axis, fold the attention scale
    into the Q projection, cast weight matrices to bf16."""
    D = layer_params[0][2].shape[0]
    Dh = D // n_head
    scale = 1.0 / math.sqrt(Dh)

    def stack(i):
        return jnp.stack([p[i] for p in layer_params], axis=0)

    ln1_g, ln1_b = stack(0), stack(1)            # (Ly, D)
    w_qkv, b_qkv = stack(2), stack(3)            # (Ly, D, 3D), (Ly, 3D)
    w_out, b_out = stack(4), stack(5)            # (Ly, D, D),  (Ly, D)
    ln2_g, ln2_b = stack(6), stack(7)
    w_fc, b_fc = stack(8), stack(9)              # (Ly, D, 4D), (Ly, 4D)
    w_pr, b_pr = stack(10), stack(11)            # (Ly, 4D, D), (Ly, D)

    # fold 1/sqrt(Dh) into the Q third of the in-projection (one-time, host side)
    w_qkv = w_qkv.at[:, :, :D].multiply(scale)
    b_qkv = b_qkv.at[:, :D].multiply(scale)

    bf16 = lambda w: w.astype(jnp.bfloat16)
    vec = lambda v: v[:, None, :]                # (Ly, 1, X) for (1, 1, X) blocks
    return (vec(ln1_g), vec(ln1_b),
            bf16(w_qkv), vec(b_qkv),
            bf16(w_out), vec(b_out),
            vec(ln2_g), vec(ln2_b),
            bf16(w_fc), vec(b_fc),
            bf16(w_pr), vec(b_pr))


# ----------------------------------------------------------------------------
# wrapper
# ----------------------------------------------------------------------------
def transformer_forward(x_lnd, packed_params, n_head,
                        n_row_blocks=None, mlp_weight_buffers=None):
    """x_lnd: (L, N, D) — PyTorch seq-first convention. Returns (L, N, D).

    n_row_blocks: number of (batch_tile*L, D) row blocks the grid's parallel
      axis iterates over.  Weights stream from HBM once per row block, so keep
      this as small as possible: 1 on single-TC parts (v5e/v6e), 2 on v7x so
      both TensorCores get a block.  Default: 2 if N is even else 1.
    mlp_weight_buffers: optional pipeline depth (e.g. 3) for the two large MLP
      weight streams (useful on v5e/v6e if DMA is exposed; leave None on v7x).
    """
    L, N, D = x_lnd.shape
    n_layers = packed_params[0].shape[0]
    assert D % n_head == 0, "width must be divisible by heads"
    assert D % 128 == 0, "width must be a multiple of 128 for lane-dense tiles"

    if n_row_blocks is None:
        n_row_blocks = 2 if N % 2 == 0 else 1
    assert N % n_row_blocks == 0, "batch must divide evenly into row blocks"
    batch_tile = N // n_row_blocks
    TM = batch_tile * L                          # rows per grid step (MXU M dim)
    assert TM % 8 == 0, "batch_tile * L must be a multiple of 8 (sublane tile)"
    M = N * L
    D3, D4 = 3 * D, 4 * D

    # TODO(synk): the (L,N,D)<->(N*L,D) transposes are extra HBM passes run as
    # separate XLA ops; acceptable here, exclude them when benchmarking the kernel.
    x = jnp.transpose(x_lnd, (1, 0, 2)).reshape(M, D)   # (N*L, D), batch-major rows

    def mat(ci, co, buffers=None):
        kw = {} if buffers is None else {"pipeline_mode": pl.Buffered(buffers)}
        return pl.BlockSpec((1, ci, co), lambda i, l: (l, 0, 0), **kw)

    vec = lambda c: pl.BlockSpec((1, 1, c), lambda i, l: (l, 0, 0))

    in_specs = [
        pl.BlockSpec((TM, D), lambda i, l: (i, 0)),      # x: fetched once per row block
        vec(D), vec(D),                                  # ln1 gamma/beta
        mat(D, D3), vec(D3),                             # qkv
        mat(D, D), vec(D),                               # out proj
        vec(D), vec(D),                                  # ln2 gamma/beta
        mat(D, D4, mlp_weight_buffers), vec(D4),         # c_fc
        mat(D4, D, mlp_weight_buffers), vec(D),          # c_proj
    ]
    out_specs = pl.BlockSpec((TM, D), lambda i, l: (i, 0))

    # Per-generation VMEM budget: ~75% of physical (96 MiB v5e/v6e, 48 MiB v7x),
    # but never more than the plan actually needs (double-buffered bf16 weights,
    # resident x/out blocks, f32 qkv + MLP intermediates, bf16 attn scratch).
    try:
        vmem_cap = int(pltpu.get_tpu_info().vmem_capacity_bytes)
    except Exception:  # conservative fallback (safe on every generation)
        vmem_cap = 64 << 20
    per_layer_w_bytes = 2 * (D * D3 + D * D + D * D4 + D4 * D)   # bf16
    need = (2 * per_layer_w_bytes          # double-buffered weight stream
            + 3 * TM * D * 4               # x block + resident out block + slack
            + TM * D3 * 4                  # qkv f32 intermediate
            + TM * D4 * 4                  # MLP f32 intermediate
            + TM * D * 2                   # bf16 attention scratch
            + (4 << 20))                   # headroom
    vmem_limit = int(min(vmem_cap * 3 // 4, max(32 << 20, need)))

    kernel = functools.partial(_transformer_kernel, n_head=n_head,
                               n_batch=batch_tile, seq_len=L)

    out = pl.pallas_call(
        kernel,
        out_shape=jax.ShapeDtypeStruct((M, D), x_lnd.dtype),
        grid_spec=pltpu.PrefetchScalarGridSpec(
            num_scalar_prefetch=0,
            grid=(n_row_blocks, n_layers),               # layer (sequential) axis last
            in_specs=in_specs,
            out_specs=out_specs,
            scratch_shapes=[pltpu.VMEM((TM, D), jnp.bfloat16)],
        ),
        compiler_params=pltpu.CompilerParams(
            dimension_semantics=("parallel", "arbitrary"),
            vmem_limit_bytes=vmem_limit,
        ),
    )(x, *packed_params)

    return jnp.transpose(out.reshape(N, L, D), (1, 0, 2))


# ----------------------------------------------------------------------------
# plain-JAX reference (f32, unfolded scale) for a correctness check
# ----------------------------------------------------------------------------
def _reference_block(x_nld, params, n_head):
    (ln1_g, ln1_b, w_qkv, b_qkv, w_out, b_out,
     ln2_g, ln2_b, w_fc, b_fc, w_pr, b_pr) = params
    N, L, D = x_nld.shape
    Dh = D // n_head

    def ln(v, g, b):
        mu = jnp.mean(v, -1, keepdims=True)
        var = jnp.mean((v - mu) ** 2, -1, keepdims=True)
        return (v - mu) * jax.lax.rsqrt(var + 1e-5) * g + b

    h1 = ln(x_nld, ln1_g, ln1_b)
    qkv = h1 @ w_qkv + b_qkv
    q, k, v = jnp.split(qkv, 3, axis=-1)
    q = q.reshape(N, L, n_head, Dh).transpose(0, 2, 1, 3) / math.sqrt(Dh)
    k = k.reshape(N, L, n_head, Dh).transpose(0, 2, 1, 3)
    v = v.reshape(N, L, n_head, Dh).transpose(0, 2, 1, 3)
    s = jnp.einsum("nhld,nhmd->nhlm", q, k)
    p = jax.nn.softmax(s, axis=-1)
    o = jnp.einsum("nhlm,nhmd->nhld", p, v).transpose(0, 2, 1, 3).reshape(N, L, D)
    x = x_nld + (o @ w_out + b_out)
    h2 = ln(x, ln2_g, ln2_b)
    f = h2 @ w_fc + b_fc
    f = f * jax.nn.sigmoid(1.702 * f)
    return x + (f @ w_pr + b_pr)


def _reference_forward(x_lnd, layer_params, n_head):
    x = jnp.transpose(x_lnd, (1, 0, 2))
    for p in layer_params:
        x = _reference_block(x, p, n_head)
    return jnp.transpose(x, (1, 0, 2))


if __name__ == "__main__":
    # Transformer(width=128, layers=2, heads=2); input (L, N, D) = (16, 8, 128).
    # Two row blocks by default (one per v7x TensorCore); D=128, Dh=64 keep
    # every block lane-dense.  Production configs should maximize batch_tile*L.
    WIDTH, LAYERS, HEADS = 128, 2, 2
    L, N = 16, 8

    key = jax.random.PRNGKey(0)
    k_x, k_p = jax.random.split(key)
    x = jax.random.normal(k_x, (L, N, WIDTH), jnp.float32)

    layer_keys = jax.random.split(k_p, LAYERS)
    layer_params = [init_layer_params(k, WIDTH) for k in layer_keys]
    packed = pack_params_for_kernel(layer_params, HEADS)

    # TODO(synk): attn_mask=None in this config; an additive (L, L) mask would
    # just be one more grid-invariant input added to `s` before the softmax.

    out = transformer_forward(x, packed, HEADS)
    out = jax.block_until_ready(out)

    ref = _reference_forward(x, layer_params, HEADS)
    assert out.shape == (L, N, WIDTH)
    err = float(jnp.max(jnp.abs(out - ref)))
    # bf16 matmul operands (f32 accumulation) + approx reciprocal -> loosened tolerance
    assert err < 3e-2, f"max abs err {err}"

    print("KERNEL_OK")
</pallas_src>

<mosaic_0001>
module attributes {stable_mosaic.version = 11 : i64} {
  func.func @_transformer_kernel(%arg0: i32, %arg1: i32, %arg2: memref<64x128xf32, #tpu.memory_space<vmem>>, %arg3: memref<1x1x128xf32, #tpu.memory_space<vmem>>, %arg4: memref<1x1x128xf32, #tpu.memory_space<vmem>>, %arg5: memref<1x128x384xbf16, #tpu.memory_space<vmem>>, %arg6: memref<1x1x384xf32, #tpu.memory_space<vmem>>, %arg7: memref<1x128x128xbf16, #tpu.memory_space<vmem>>, %arg8: memref<1x1x128xf32, #tpu.memory_space<vmem>>, %arg9: memref<1x1x128xf32, #tpu.memory_space<vmem>>, %arg10: memref<1x1x128xf32, #tpu.memory_space<vmem>>, %arg11: memref<1x128x512xbf16, #tpu.memory_space<vmem>>, %arg12: memref<1x1x512xf32, #tpu.memory_space<vmem>>, %arg13: memref<1x512x128xbf16, #tpu.memory_space<vmem>>, %arg14: memref<1x1x128xf32, #tpu.memory_space<vmem>>, %arg15: memref<64x128xf32, #tpu.memory_space<vmem>>, %arg16: memref<64x128xbf16, #tpu.memory_space<vmem>>) attributes {dimension_semantics = [#tpu.dimension_semantics<parallel>, #tpu.dimension_semantics<arbitrary>], iteration_bounds = array<i64: 2, 2>, scalar_prefetch = 0 : i64, scratch_operands = 1 : i64, tpu.core_type = #tpu.core_type<tc>, window_params = [{transform_indices = @transform_0, window_bounds = array<i64: 64, 128>}, {transform_indices = @transform_1, window_bounds = array<i64: 1, 1, 128>}, {transform_indices = @transform_2, window_bounds = array<i64: 1, 1, 128>}, {transform_indices = @transform_3, window_bounds = array<i64: 1, 128, 384>}, {transform_indices = @transform_4, window_bounds = array<i64: 1, 1, 384>}, {transform_indices = @transform_5, window_bounds = array<i64: 1, 128, 128>}, {transform_indices = @transform_6, window_bounds = array<i64: 1, 1, 128>}, {transform_indices = @transform_7, window_bounds = array<i64: 1, 1, 128>}, {transform_indices = @transform_8, window_bounds = array<i64: 1, 1, 128>}, {transform_indices = @transform_9, window_bounds = array<i64: 1, 128, 512>}, {transform_indices = @transform_10, window_bounds = array<i64: 1, 1, 512>}, {transform_indices = @transform_11, window_bounds = array<i64: 1, 512, 128>}, {transform_indices = @transform_12, window_bounds = array<i64: 1, 1, 128>}, {transform_indices = @transform_13, window_bounds = array<i64: 64, 128>}]} {
    %c0_i32 = arith.constant 0 : i32
    %0 = arith.cmpi eq, %arg1, %c0_i32 : i32
    %1 = arith.extui %0 : i1 to i32
    %c0_i32_0 = arith.constant 0 : i32
    %2 = arith.cmpi ne, %1, %c0_i32_0 : i32
    scf.if %2 {
      %c0_68 = arith.constant 0 : index
      %c0_69 = arith.constant 0 : index
      %148 = vector.load %arg2[%c0_68, %c0_69] : memref<64x128xf32, #tpu.memory_space<vmem>>, vector<64x128xf32>
      %c0_70 = arith.constant 0 : index
      %c0_71 = arith.constant 0 : index
      %149 = vector.load %arg15[%c0_70, %c0_71] : memref<64x128xf32, #tpu.memory_space<vmem>>, vector<64x128xf32>
      tpu.vector_store %arg15[%c0_70, %c0_71], %148 {strides = array<i32>} : memref<64x128xf32, #tpu.memory_space<vmem>>, vector<64x128xf32>,
    } else {
    }
    %c0 = arith.constant 0 : index
    %c0_1 = arith.constant 0 : index
    %3 = vector.load %arg15[%c0, %c0_1] : memref<64x128xf32, #tpu.memory_space<vmem>>, vector<64x128xf32>
    %c0_2 = arith.constant 0 : index
    %c0_3 = arith.constant 0 : index
    %c0_4 = arith.constant 0 : index
    %4 = vector.load %arg3[%c0_2, %c0_3, %c0_4] : memref<1x1x128xf32, #tpu.memory_space<vmem>>, vector<1x1x128xf32>
    %5 = vector.shape_cast %4 : vector<1x1x128xf32> to vector<1x128xf32>
    %c0_5 = arith.constant 0 : index
    %c0_6 = arith.constant 0 : index
    %c0_7 = arith.constant 0 : index
    %6 = vector.load %arg4[%c0_5, %c0_6, %c0_7] : memref<1x1x128xf32, #tpu.memory_space<vmem>>, vector<1x1x128xf32>
    %7 = vector.shape_cast %6 : vector<1x1x128xf32> to vector<1x128xf32>
    %cst = arith.constant dense<0.000000e+00> : vector<64xf32>
    %8 = vector.multi_reduction <add>, %3, %cst [1] : vector<64x128xf32> to vector<64xf32>
    %9 = vector.shape_cast %8 : vector<64xf32> to vector<64x1xf32>
    %cst_8 = arith.constant 1.280000e+02 : f32
    %10 = vector.broadcast %cst_8 : f32 to vector<64x1xf32>
    %11 = arith.divf %9, %10 : vector<64x1xf32>
    %12 = vector.broadcast %11 : vector<64x1xf32> to vector<64x128xf32>
    %13 = arith.subf %3, %12 : vector<64x128xf32>
    %14 = arith.mulf %13, %13 : vector<64x128xf32>
    %cst_9 = arith.constant dense<0.000000e+00> : vector<64xf32>
    %15 = vector.multi_reduction <add>, %14, %cst_9 [1] : vector<64x128xf32> to vector<64xf32>
    %16 = vector.shape_cast %15 : vector<64xf32> to vector<64x1xf32>
    %cst_10 = arith.constant 1.280000e+02 : f32
    %17 = vector.broadcast %cst_10 : f32 to vector<64x1xf32>
    %18 = arith.divf %16, %17 : vector<64x1xf32>
    %cst_11 = arith.constant 9.99999974E-6 : f32
    %19 = vector.broadcast %cst_11 : f32 to vector<64x1xf32>
    %20 = arith.addf %18, %19 : vector<64x1xf32>
    %21 = math.rsqrt %20 : vector<64x1xf32>
    %22 = vector.broadcast %21 : vector<64x1xf32> to vector<64x128xf32>
    %23 = arith.mulf %13, %22 : vector<64x128xf32>
    %24 = vector.broadcast %5 : vector<1x128xf32> to vector<64x128xf32>
    %25 = arith.mulf %23, %24 : vector<64x128xf32>
    %26 = vector.broadcast %7 : vector<1x128xf32> to vector<64x128xf32>
    %27 = arith.addf %25, %26 : vector<64x128xf32>
    %28 = arith.truncf %27 : vector<64x128xf32> to vector<64x128xbf16>
    %c0_12 = arith.constant 0 : index
    %c0_13 = arith.constant 0 : index
    %c0_14 = arith.constant 0 : index
    %29 = vector.load %arg5[%c0_12, %c0_13, %c0_14] : memref<1x128x384xbf16, #tpu.memory_space<vmem>>, vector<1x128x384xbf16>
    %30 = vector.shape_cast %29 : vector<1x128x384xbf16> to vector<128x384xbf16>
    %cst_15 = arith.constant dense<0.000000e+00> : vector<64x384xf32>
    %31 = tpu.matmul %28, %30, %cst_15 {dimension_numbers = #tpu.dot_dimension_numbers<[1], [0], [0], [1], [0, 0, 1, 1], [], []>} : vector<64x128xbf16>, vector<128x384xbf16>, vector<64x384xf32> -> vector<64x384xf32>
    %c0_16 = arith.constant 0 : index
    %c0_17 = arith.constant 0 : index
    %c0_18 = arith.constant 0 : index
    %32 = vector.load %arg6[%c0_16, %c0_17, %c0_18] : memref<1x1x384xf32, #tpu.memory_space<vmem>>, vector<1x1x384xf32>
    %33 = vector.shape_cast %32 : vector<1x1x384xf32> to vector<1x384xf32>
    %34 = vector.broadcast %33 : vector<1x384xf32> to vector<64x384xf32>
    %35 = arith.addf %31, %34 : vector<64x384xf32>
    %36 = vector.extract_strided_slice %35 {offsets = [0, 0], sizes = [64, 128], strides = [1, 1]} : vector<64x384xf32> to vector<64x128xf32>
    %37 = vector.extract_strided_slice %35 {offsets = [0, 128], sizes = [64, 128], strides = [1, 1]} : vector<64x384xf32> to vector<64x128xf32>
    %38 = vector.extract_strided_slice %35 {offsets = [0, 256], sizes = [64, 128], strides = [1, 1]} : vector<64x384xf32> to vector<64x128xf32>
    %39 = vector.extract_strided_slice %36 {offsets = [0, 0], sizes = [64, 64], strides = [1, 1]} : vector<64x128xf32> to vector<64x64xf32>
    %40 = vector.shape_cast %39 : vector<64x64xf32> to vector<4x16x64xf32>
    %41 = arith.truncf %40 : vector<4x16x64xf32> to vector<4x16x64xbf16>
    %42 = vector.extract_strided_slice %37 {offsets = [0, 0], sizes = [64, 64], strides = [1, 1]} : vector<64x128xf32> to vector<64x64xf32>
    %43 = vector.shape_cast %42 : vector<64x64xf32> to vector<4x16x64xf32>
    %44 = arith.truncf %43 : vector<4x16x64xf32> to vector<4x16x64xbf16>
    %45 = vector.extract_strided_slice %38 {offsets = [0, 0], sizes = [64, 64], strides = [1, 1]} : vector<64x128xf32> to vector<64x64xf32>
    %46 = vector.shape_cast %45 : vector<64x64xf32> to vector<4x16x64xf32>
    %47 = arith.truncf %46 : vector<4x16x64xf32> to vector<4x16x64xbf16>
    "tpu.trace_start"() <{level = 10 : i32, message = "bld,bmd->blm"}> : () -> ()
    %cst_19 = arith.constant dense<0.000000e+00> : vector<4x16x16xf32>
    %48 = tpu.matmul %41, %44, %cst_19 {dimension_numbers = #tpu.dot_dimension_numbers<[2], [2], [1], [1], [0, 0, 0, 1, 1, 1], [0], [0]>} : vector<4x16x64xbf16>, vector<4x16x64xbf16>, vector<4x16x16xf32> -> vector<4x16x16xf32>
    "tpu.trace_stop"() : () -> ()
    %cst_20 = arith.constant dense<0xFF800000> : vector<4x16xf32>
    %49 = vector.multi_reduction <maximumf>, %48, %cst_20 [2] : vector<4x16x16xf32> to vector<4x16xf32>
    %50 = vector.shape_cast %49 : vector<4x16xf32> to vector<4x16x1xf32>
    %51 = vector.broadcast %50 : vector<4x16x1xf32> to vector<4x16x16xf32>
    %52 = arith.subf %48, %51 : vector<4x16x16xf32>
    %53 = math.exp %52 : vector<4x16x16xf32>
    %cst_21 = arith.constant dense<0.000000e+00> : vector<4x16xf32>
    %54 = vector.multi_reduction <add>, %53, %cst_21 [2] : vector<4x16x16xf32> to vector<4x16xf32>
    %55 = vector.shape_cast %54 : vector<4x16xf32> to vector<4x16x1xf32>
    %56 = tpu.reciprocal %55 {approx = true} : vector<4x16x1xf32> -> vector<4x16x1xf32>
    %57 = vector.broadcast %56 : vector<4x16x1xf32> to vector<4x16x16xf32>
    %58 = arith.mulf %53, %57 : vector<4x16x16xf32>
    %59 = arith.truncf %58 : vector<4x16x16xf32> to vector<4x16x16xbf16>
    "tpu.trace_start"() <{level = 10 : i32, message = "blm,bmd->bld"}> : () -> ()
    %cst_22 = arith.constant dense<0.000000e+00> : vector<4x16x64xf32>
    %60 = tpu.matmul %59, %47, %cst_22 {dimension_numbers = #tpu.dot_dimension_numbers<[2], [1], [1], [2], [0, 0, 0, 1, 1, 2], [0], [0]>} : vector<4x16x16xbf16>, vector<4x16x64xbf16>, vector<4x16x64xf32> -> vector<4x16x64xf32>
    "tpu.trace_stop"() : () -> ()
    %61 = vector.shape_cast %60 : vector<4x16x64xf32> to vector<64x64xf32>
    %62 = arith.truncf %61 : vector<64x64xf32> to vector<64x64xbf16>
    %c0_23 = arith.constant 0 : index
    %c0_24 = arith.constant 0 : index
    %63 = vector.load %arg16[%c0_23, %c0_24] : memref<64x128xbf16, #tpu.memory_space<vmem>>, vector<64x64xbf16>
    tpu.vector_store %arg16[%c0_23, %c0_24], %62 {strides = array<i32>} : memref<64x128xbf16, #tpu.memory_space<vmem>>, vector<64x64xbf16>,
    %64 = vector.extract_strided_slice %36 {offsets = [0, 64], sizes = [64, 64], strides = [1, 1]} : vector<64x128xf32> to vector<64x64xf32>
    %65 = vector.shape_cast %64 : vector<64x64xf32> to vector<4x16x64xf32>
    %66 = arith.truncf %65 : vector<4x16x64xf32> to vector<4x16x64xbf16>
    %67 = vector.extract_strided_slice %37 {offsets = [0, 64], sizes = [64, 64], strides = [1, 1]} : vector<64x128xf32> to vector<64x64xf32>
    %68 = vector.shape_cast %67 : vector<64x64xf32> to vector<4x16x64xf32>
    %69 = arith.truncf %68 : vector<4x16x64xf32> to vector<4x16x64xbf16>
    %70 = vector.extract_strided_slice %38 {offsets = [0, 64], sizes = [64, 64], strides = [1, 1]} : vector<64x128xf32> to vector<64x64xf32>
    %71 = vector.shape_cast %70 : vector<64x64xf32> to vector<4x16x64xf32>
    %72 = arith.truncf %71 : vector<4x16x64xf32> to vector<4x16x64xbf16>
    "tpu.trace_start"() <{level = 10 : i32, message = "bld,bmd->blm"}> : () -> ()
    %cst_25 = arith.constant dense<0.000000e+00> : vector<4x16x16xf32>
    %73 = tpu.matmul %66, %69, %cst_25 {dimension_numbers = #tpu.dot_dimension_numbers<[2], [2], [1], [1], [0, 0, 0, 1, 1, 1], [0], [0]>} : vector<4x16x64xbf16>, vector<4x16x64xbf16>, vector<4x16x16xf32> -> vector<4x16x16xf32>
    "tpu.trace_stop"() : () -> ()
    %cst_26 = arith.constant dense<0xFF800000> : vector<4x16xf32>
    %74 = vector.multi_reduction <maximumf>, %73, %cst_26 [2] : vector<4x16x16xf32> to vector<4x16xf32>
    %75 = vector.shape_cast %74 : vector<4x16xf32> to vector<4x16x1xf32>
    %76 = vector.broadcast %75 : vector<4x16x1xf32> to vector<4x16x16xf32>
    %77 = arith.subf %73, %76 : vector<4x16x16xf32>
    %78 = math.exp %77 : vector<4x16x16xf32>
    %cst_27 = arith.constant dense<0.000000e+00> : vector<4x16xf32>
    %79 = vector.multi_reduction <add>, %78, %cst_27 [2] : vector<4x16x16xf32> to vector<4x16xf32>
    %80 = vector.shape_cast %79 : vector<4x16xf32> to vector<4x16x1xf32>
    %81 = tpu.reciprocal %80 {approx = true} : vector<4x16x1xf32> -> vector<4x16x1xf32>
    %82 = vector.broadcast %81 : vector<4x16x1xf32> to vector<4x16x16xf32>
    %83 = arith.mulf %78, %82 : vector<4x16x16xf32>
    %84 = arith.truncf %83 : vector<4x16x16xf32> to vector<4x16x16xbf16>
    "tpu.trace_start"() <{level = 10 : i32, message = "blm,bmd->bld"}> : () -> ()
    %cst_28 = arith.constant dense<0.000000e+00> : vector<4x16x64xf32>
    %85 = tpu.matmul %84, %72, %cst_28 {dimension_numbers = #tpu.dot_dimension_numbers<[2], [1], [1], [2], [0, 0, 0, 1, 1, 2], [0], [0]>} : vector<4x16x16xbf16>, vector<4x16x64xbf16>, vector<4x16x64xf32> -> vector<4x16x64xf32>
    "tpu.trace_stop"() : () -> ()
    %86 = vector.shape_cast %85 : vector<4x16x64xf32> to vector<64x64xf32>
    %87 = arith.truncf %86 : vector<64x64xf32> to vector<64x64xbf16>
    %c0_29 = arith.constant 0 : index
    %c64 = arith.constant 64 : index
    %88 = vector.load %arg16[%c0_29, %c64] : memref<64x128xbf16, #tpu.memory_space<vmem>>, vector<64x64xbf16>
    tpu.vector_store %arg16[%c0_29, %c64], %87 {strides = array<i32>} : memref<64x128xbf16, #tpu.memory_space<vmem>>, vector<64x64xbf16>,
    %c0_30 = arith.constant 0 : index
    %c0_31 = arith.constant 0 : index
    %c0_32 = arith.constant 0 : index
    %89 = vector.load %arg8[%c0_30, %c0_31, %c0_32] : memref<1x1x128xf32, #tpu.memory_space<vmem>>, vector<1x1x128xf32>
    %90 = vector.shape_cast %89 : vector<1x1x128xf32> to vector<1x128xf32>
    %91 = vector.broadcast %90 : vector<1x128xf32> to vector<64x128xf32>
    %92 = arith.addf %3, %91 : vector<64x128xf32>
    %c0_33 = arith.constant 0 : index
    %c0_34 = arith.constant 0 : index
    %93 = vector.load %arg16[%c0_33, %c0_34] : memref<64x128xbf16, #tpu.memory_space<vmem>>, vector<64x128xbf16>
    %c0_35 = arith.constant 0 : index
    %c0_36 = arith.constant 0 : index
    %c0_37 = arith.constant 0 : index
    %94 = vector.load %arg7[%c0_35, %c0_36, %c0_37] : memref<1x128x128xbf16, #tpu.memory_space<vmem>>, vector<1x128x128xbf16>
    %95 = vector.shape_cast %94 : vector<1x128x128xbf16> to vector<128x128xbf16>
    %cst_38 = arith.constant dense<0.000000e+00> : vector<64x128xf32>
    %96 = tpu.matmul %93, %95, %cst_38 {dimension_numbers = #tpu.dot_dimension_numbers<[1], [0], [0], [1], [0, 0, 1, 1], [], []>} : vector<64x128xbf16>, vector<128x128xbf16>, vector<64x128xf32> -> vector<64x128xf32>
    %97 = arith.addf %92, %96 : vector<64x128xf32>
    %c0_39 = arith.constant 0 : index
    %c0_40 = arith.constant 0 : index
    %c0_41 = arith.constant 0 : index
    %98 = vector.load %arg9[%c0_39, %c0_40, %c0_41] : memref<1x1x128xf32, #tpu.memory_space<vmem>>, vector<1x1x128xf32>
    %99 = vector.shape_cast %98 : vector<1x1x128xf32> to vector<1x128xf32>
    %c0_42 = arith.constant 0 : index
    %c0_43 = arith.constant 0 : index
    %c0_44 = arith.constant 0 : index
    %100 = vector.load %arg10[%c0_42, %c0_43, %c0_44] : memref<1x1x128xf32, #tpu.memory_space<vmem>>, vector<1x1x128xf32>
    %101 = vector.shape_cast %100 : vector<1x1x128xf32> to vector<1x128xf32>
    %cst_45 = arith.constant dense<0.000000e+00> : vector<64xf32>
    %102 = vector.multi_reduction <add>, %97, %cst_45 [1] : vector<64x128xf32> to vector<64xf32>
    %103 = vector.shape_cast %102 : vector<64xf32> to vector<64x1xf32>
    %cst_46 = arith.constant 1.280000e+02 : f32
    %104 = vector.broadcast %cst_46 : f32 to vector<64x1xf32>
    %105 = arith.divf %103, %104 : vector<64x1xf32>
    %106 = vector.broadcast %105 : vector<64x1xf32> to vector<64x128xf32>
    %107 = arith.subf %97, %106 : vector<64x128xf32>
    %108 = arith.mulf %107, %107 : vector<64x128xf32>
    %cst_47 = arith.constant dense<0.000000e+00> : vector<64xf32>
    %109 = vector.multi_reduction <add>, %108, %cst_47 [1] : vector<64x128xf32> to vector<64xf32>
    %110 = vector.shape_cast %109 : vector<64xf32> to vector<64x1xf32>
    %cst_48 = arith.constant 1.280000e+02 : f32
    %111 = vector.broadcast %cst_48 : f32 to vector<64x1xf32>
    %112 = arith.divf %110, %111 : vector<64x1xf32>
    %cst_49 = arith.constant 9.99999974E-6 : f32
    %113 = vector.broadcast %cst_49 : f32 to vector<64x1xf32>
    %114 = arith.addf %112, %113 : vector<64x1xf32>
    %115 = math.rsqrt %114 : vector<64x1xf32>
    %116 = vector.broadcast %115 : vector<64x1xf32> to vector<64x128xf32>
    %117 = arith.mulf %107, %116 : vector<64x128xf32>
    %118 = vector.broadcast %99 : vector<1x128xf32> to vector<64x128xf32>
    %119 = arith.mulf %117, %118 : vector<64x128xf32>
    %120 = vector.broadcast %101 : vector<1x128xf32> to vector<64x128xf32>
    %121 = arith.addf %119, %120 : vector<64x128xf32>
    %122 = arith.truncf %121 : vector<64x128xf32> to vector<64x128xbf16>
    %c0_50 = arith.constant 0 : index
    %c0_51 = arith.constant 0 : index
    %c0_52 = arith.constant 0 : index
    %123 = vector.load %arg11[%c0_50, %c0_51, %c0_52] : memref<1x128x512xbf16, #tpu.memory_space<vmem>>, vector<1x128x512xbf16>
    %124 = vector.shape_cast %123 : vector<1x128x512xbf16> to vector<128x512xbf16>
    %cst_53 = arith.constant dense<0.000000e+00> : vector<64x512xf32>
    %125 = tpu.matmul %122, %124, %cst_53 {dimension_numbers = #tpu.dot_dimension_numbers<[1], [0], [0], [1], [0, 0, 1, 1], [], []>} : vector<64x128xbf16>, vector<128x512xbf16>, vector<64x512xf32> -> vector<64x512xf32>
    %c0_54 = arith.constant 0 : index
    %c0_55 = arith.constant 0 : index
    %c0_56 = arith.constant 0 : index
    %126 = vector.load %arg12[%c0_54, %c0_55, %c0_56] : memref<1x1x512xf32, #tpu.memory_space<vmem>>, vector<1x1x512xf32>
    %127 = vector.shape_cast %126 : vector<1x1x512xf32> to vector<1x512xf32>
    %128 = vector.broadcast %127 : vector<1x512xf32> to vector<64x512xf32>
    %129 = arith.addf %125, %128 : vector<64x512xf32>
    %cst_57 = arith.constant 1.702000e+00 : f32
    %130 = vector.broadcast %cst_57 : f32 to vector<64x512xf32>
    %131 = arith.mulf %130, %129 : vector<64x512xf32>
    %132 = arith.negf %131 : vector<64x512xf32>
    %133 = math.exp %132 : vector<64x512xf32>
    %cst_58 = arith.constant 1.000000e+00 : f32
    %134 = vector.broadcast %cst_58 : f32 to vector<64x512xf32>
    %135 = arith.addf %134, %133 : vector<64x512xf32>
    %136 = arith.divf %134, %135 : vector<64x512xf32>
    %137 = arith.mulf %129, %136 : vector<64x512xf32>
    %c0_59 = arith.constant 0 : index
    %c0_60 = arith.constant 0 : index
    %c0_61 = arith.constant 0 : index
    %138 = vector.load %arg14[%c0_59, %c0_60, %c0_61] : memref<1x1x128xf32, #tpu.memory_space<vmem>>, vector<1x1x128xf32>
    %139 = vector.shape_cast %138 : vector<1x1x128xf32> to vector<1x128xf32>
    %140 = vector.broadcast %139 : vector<1x128xf32> to vector<64x128xf32>
    %141 = arith.addf %97, %140 : vector<64x128xf32>
    %142 = arith.truncf %137 : vector<64x512xf32> to vector<64x512xbf16>
    %c0_62 = arith.constant 0 : index
    %c0_63 = arith.constant 0 : index
    %c0_64 = arith.constant 0 : index
    %143 = vector.load %arg13[%c0_62, %c0_63, %c0_64] : memref<1x512x128xbf16, #tpu.memory_space<vmem>>, vector<1x512x128xbf16>
    %144 = vector.shape_cast %143 : vector<1x512x128xbf16> to vector<512x128xbf16>
    %cst_65 = arith.constant dense<0.000000e+00> : vector<64x128xf32>
    %145 = tpu.matmul %142, %144, %cst_65 {dimension_numbers = #tpu.dot_dimension_numbers<[1], [0], [0], [1], [0, 0, 1, 1], [], []>} : vector<64x512xbf16>, vector<512x128xbf16>, vector<64x128xf32> -> vector<64x128xf32>
    %146 = arith.addf %141, %145 : vector<64x128xf32>
    %c0_66 = arith.constant 0 : index
    %c0_67 = arith.constant 0 : index
    %147 = vector.load %arg15[%c0_66, %c0_67] : memref<64x128xf32, #tpu.memory_space<vmem>>, vector<64x128xf32>
    tpu.vector_store %arg15[%c0_66, %c0_67], %146 {strides = array<i32>} : memref<64x128xf32, #tpu.memory_space<vmem>>, vector<64x128xf32>,
    return
  }
  func.func @transform_0(%arg0: i32, %arg1: i32) -> (i32, i32) {
    %c0_i32 = arith.constant 0 : i32
    %c0_i32_0 = arith.constant 0 : i32
    return %arg0, %c0_i32 : i32, i32
  }
  func.func @transform_1(%arg0: i32, %arg1: i32) -> (i32, i32, i32) {
    %c0_i32 = arith.constant 0 : i32
    %c0_i32_0 = arith.constant 0 : i32
    %c0_i32_1 = arith.constant 0 : i32
    return %arg1, %c0_i32, %c0_i32_0 : i32, i32, i32
  }
  func.func @transform_2(%arg0: i32, %arg1: i32) -> (i32, i32, i32) {
    %c0_i32 = arith.constant 0 : i32
    %c0_i32_0 = arith.constant 0 : i32
    %c0_i32_1 = arith.constant 0 : i32
    return %arg1, %c0_i32, %c0_i32_0 : i32, i32, i32
  }
  func.func @transform_3(%arg0: i32, %arg1: i32) -> (i32, i32, i32) {
    %c0_i32 = arith.constant 0 : i32
    %c0_i32_0 = arith.constant 0 : i32
    %c0_i32_1 = arith.constant 0 : i32
    return %arg1, %c0_i32, %c0_i32_0 : i32, i32, i32
  }
  func.func @transform_4(%arg0: i32, %arg1: i32) -> (i32, i32, i32) {
    %c0_i32 = arith.constant 0 : i32
    %c0_i32_0 = arith.constant 0 : i32
    %c0_i32_1 = arith.constant 0 : i32
    return %arg1, %c0_i32, %c0_i32_0 : i32, i32, i32
  }
  func.func @transform_5(%arg0: i32, %arg1: i32) -> (i32, i32, i32) {
    %c0_i32 = arith.constant 0 : i32
    %c0_i32_0 = arith.constant 0 : i32
    %c0_i32_1 = arith.constant 0 : i32
    return %arg1, %c0_i32, %c0_i32_0 : i32, i32, i32
  }
  func.func @transform_6(%arg0: i32, %arg1: i32) -> (i32, i32, i32) {
    %c0_i32 = arith.constant 0 : i32
    %c0_i32_0 = arith.constant 0 : i32
    %c0_i32_1 = arith.constant 0 : i32
    return %arg1, %c0_i32, %c0_i32_0 : i32, i32, i32
  }
  func.func @transform_7(%arg0: i32, %arg1: i32) -> (i32, i32, i32) {
    %c0_i32 = arith.constant 0 : i32
    %c0_i32_0 = arith.constant 0 : i32
    %c0_i32_1 = arith.constant 0 : i32
    return %arg1, %c0_i32, %c0_i32_0 : i32, i32, i32
  }
  func.func @transform_8(%arg0: i32, %arg1: i32) -> (i32, i32, i32) {
    %c0_i32 = arith.constant 0 : i32
    %c0_i32_0 = arith.constant 0 : i32
    %c0_i32_1 = arith.constant 0 : i32
    return %arg1, %c0_i32, %c0_i32_0 : i32, i32, i32
  }
  func.func @transform_9(%arg0: i32, %arg1: i32) -> (i32, i32, i32) {
    %c0_i32 = arith.constant 0 : i32
    %c0_i32_0 = arith.constant 0 : i32
    %c0_i32_1 = arith.constant 0 : i32
    return %arg1, %c0_i32, %c0_i32_0 : i32, i32, i32
  }
  func.func @transform_10(%arg0: i32, %arg1: i32) -> (i32, i32, i32) {
    %c0_i32 = arith.constant 0 : i32
    %c0_i32_0 = arith.constant 0 : i32
    %c0_i32_1 = arith.constant 0 : i32
    return %arg1, %c0_i32, %c0_i32_0 : i32, i32, i32
  }
  func.func @transform_11(%arg0: i32, %arg1: i32) -> (i32, i32, i32) {
    %c0_i32 = arith.constant 0 : i32
    %c0_i32_0 = arith.constant 0 : i32
    %c0_i32_1 = arith.constant 0 : i32
    return %arg1, %c0_i32, %c0_i32_0 : i32, i32, i32
  }
  func.func @transform_12(%arg0: i32, %arg1: i32) -> (i32, i32, i32) {
    %c0_i32 = arith.constant 0 : i32
    %c0_i32_0 = arith.constant 0 : i32
    %c0_i32_1 = arith.constant 0 : i32
    return %arg1, %c0_i32, %c0_i32_0 : i32, i32, i32
  }
  func.func @transform_13(%arg0: i32, %arg1: i32) -> (i32, i32) {
    %c0_i32 = arith.constant 0 : i32
    %c0_i32_0 = arith.constant 0 : i32
    return %arg0, %c0_i32 : i32, i32
  }
}

</mosaic_0001>

<bundles_post_ra>
// kernel: tpu_custom_call.1
= control target key start
LH: loop header
LB: loop body
LE: loop exit
PB: predicated region body
PF: predicated region fallthrough
CT: control target
= control target key end

     0   :  { %s6759_s0 = inlined_call_operand.hbm [shape: f32[128,128], index: 0, kind: input, shape index: {}]   ;;  %s6760_s1 = inlined_call_operand.hbm [shape: f32[2,1,128], index: 1, kind: input, shape index: {}]   ;;  %s6761_s2 = inlined_call_operand.hbm [shape: f32[2,1,128], index: 2, kind: input, shape index: {}]   ;;  %s6762_s3 = inlined_call_operand.hbm [shape: bf16[2,128,384], index: 3, kind: input, shape index: {}]   ;;  %s6763_s4 = inlined_call_operand.vmem [shape: f32[2,1,384], index: 4, kind: input, shape index: {}]   ;;  %s6764_s5 = inlined_call_operand.hbm [shape: bf16[2,128,128], index: 5, kind: input, shape index: {}]   ;;  %s6765_s6 = inlined_call_operand.vmem [shape: f32[2,1,128], index: 6, kind: input, shape index: {}]   ;;  %s6766_s7 = inlined_call_operand.hbm [shape: f32[2,1,128], index: 7, kind: input, shape index: {}]   ;;  %s6767_s8 = inlined_call_operand.hbm [shape: f32[2,1,128], index: 8, kind: input, shape index: {}]   ;;  %s6768_s9 = inlined_call_operand.hbm [shape: bf16[2,128,512], index: 9, kind: input, shape index: {}]   ;;  %s6769_s10 = inlined_call_operand.vmem [shape: f32[2,1,512], index: 10, kind: input, shape index: {}]   ;;  %s6770_s11 = inlined_call_operand.hbm [shape: bf16[2,512,128], index: 11, kind: input, shape index: {}]   ;;  %s6771_s12 = inlined_call_operand.vmem [shape: f32[2,1,128], index: 12, kind: input, shape index: {}]   ;;  %s6772_s13 = inlined_call_operand.hbm [shape: f32[128,128], index: 13, kind: output, shape index: {}]  }
   0x1   :  { %6800 = sst [smem:[#allocation41_spill]] %s6759_s0 }
   0x2   :  { %6801 = sst [smem:[#allocation42_spill]] %s6760_s1 }
   0x3   :  { %6802 = sst [smem:[#allocation43_spill]] %s6761_s2 }
   0x4   :  { %6803 = sst [smem:[#allocation44_spill]] %s6762_s3 }
   0x5   :  { %6804 = sst [smem:[#allocation45_spill]] %s6763_s4 }
   0x6   :  { %6805 = sst [smem:[#allocation46_spill]] %s6764_s5 }
   0x7   :  { %6806 = sst [smem:[#allocation47_spill]] %s6765_s6 }
   0x8   :  { %6807 = sst [smem:[#allocation48_spill]] %s6766_s7 }
   0x9   :  { %6808 = sst [smem:[#allocation49_spill]] %s6767_s8 }
   0xa   :  { %6809 = sst [smem:[#allocation50_spill]] %s6768_s9 }
   0xb   :  { %6810 = sst [smem:[#allocation51_spill]] %s6769_s10 }
   0xc   :  { %6811 = sst [smem:[#allocation52_spill]] %s6770_s11 }
   0xd   :  { %6812 = sst [smem:[#allocation53_spill]] %s6771_s12 }
   0xe   :  { %6813 = sst [smem:[#allocation54_spill]] %s6772_s13 }
   0xf   :  { %18 = vsyncpa [#allocation4], 0 }
  0x10   :  { %20 = vsyncpa [#allocation4 + $0x1], 0 }
  0x11   :  { %21 = vsyncpa [#allocation7], 0 }
  0x12   :  { %23 = vsyncpa [#allocation7 + $0x1], 0 }
  0x13   :  { %24 = vsyncpa [#allocation10], 0 }
  0x14   :  { %26 = vsyncpa [#allocation10 + $0x1], 0 }
  0x15   :  { %27 = vsyncpa [#allocation13], 0 }
  0x16   :  { %29 = vsyncpa [#allocation13 + $0x1], 0 }
  0x17   :  { %30 = vsyncpa [#allocation16], 0 }
  0x18   :  { %32 = vsyncpa [#allocation16 + $0x1], 0 }
  0x19   :  { %33 = vsyncpa [#allocation5], 0 }
  0x1a   :  { %35 = vsyncpa [#allocation5 + $0x1], 0  ;;  %s5526_s25 = smov 0   ;;  %s5528_s26 = smov 0  }
  0x1b   :  { %s5530_s27 = smov 0   ;;  %s5532_s28 = smov 0  }
  0x1c   :  { %s5534_s29 = smov 0   ;;  %s5536_s30 = smov 0  }
  0x1d   :  { %s5538_s14 = smov 0   ;;  %s5540_s15 = smov 0  }
  0x1e   :  { %s5542_s16 = smov 0   ;;  %s5544_s17 = smov 0  }
  0x1f   :  { %s5546_s18 = smov 0  }
  0x20 LB: > { %6814 = sst [smem:[#allocation25_spill]] %s5394_s26  ;;  %p68_p0 = scmp.eq.s32.totalorder %s5430_s18, 0  ;;  %s5430_s18 = sphi %s5546_s18, %s41_s18   ;;  %s5426_s17 = sphi %s5544_s17, %s6887_s17   ;;  %s5422_s16 = sphi %s5542_s16, %s6886_s16   ;;  %s5418_s15 = sphi %s5540_s15, %s6885_s15   ;;  %s5414_s14 = sphi %s5538_s14, %s6884_s14   ;;  %s5410_s30 = sphi %s5536_s30, %s6883_s30   ;;  %s5406_s29 = sphi %s5534_s29, %s6882_s29   ;;  %s5402_s28 = sphi %s5532_s28, %s6881_s28   ;;  %s5398_s27 = sphi %s5530_s27, %s6880_s27   ;;  %s5394_s26 = sphi %s5528_s26, %s6879_s26   ;;  %s5390_s25 = sphi %s5526_s25, %s6878_s25  }
  0x21   : > { %6815 = sst [smem:[#allocation26_spill]] %s5398_s27  ;;  %p93_p1 = scmp.ne.s32.totalorder %s5398_s27, %s5394_s26 }
  0x22   : > { %6816 = sst [smem:[#allocation27_spill]] %s5406_s29  ;;  %p6781_p2 = scmp.lt.s32.totalorder %s5430_s18, 4 }
  0x23   : > { %6817 = sst [smem:[#allocation28_spill]] %s5410_s30  ;;  %p95_p3 = por %p93_p1, %p68_p0 }
  0x24   : > { %6818 = sst [smem:[#allocation29_spill]] %s5414_s14  ;;  %s5589_s20 = sand.u32 1, %s5430_s18  }
  0x25   : > { %6819 = sst [smem:[#allocation30_spill]] %s5418_s15  ;;  %s5592_s21 = sand.u32 1, %s5398_s27  }
  0x26   : > { %6820 = sst [smem:[#allocation31_spill]] %s5422_s16  ;;  %s5595_s22 = sshll.u32 %s5422_s16, 4 }
  0x27   : > { %6821 = sst [smem:[#allocation32_spill]] %s5426_s17  ;;  %s459_s15 = scalar_lea.vmem [#allocation6], %s5592_s21 }
  0x28   : > { %s6822_s1 = sld [smem:[#allocation42_spill]]  ;;  %s466_s10 = sshll.u32 %s459_s15, 4  ;;  %s467_s10 = int_to_ptr.vmem [resolvable:$true] %s466_s10 }
  0x29   : > { %p5604_p4 = pnand %p6781_p2, %p95_p3  ;;  %p4026_p5 = scmp.ge.s32.totalorder %s5430_s18, 1 }
  0x2a   : > { %p632_p6 = scmp.lt.s32.totalorder %s5430_s18, 5  ;;  %s6776_s4 = scalar_lea.sflag [#allocation7], %s5589_s20 }
  0x2b   : > { %p5613_p7 = pneg %p5604_p4  ;;  %s5055_s23 = scalar_lea.vmem %s467_s10, 16 }
  0x2c   : > { %p5056_p8 = scmp.ne.s32.totalorder %s467_s10, %s5055_s23  ;;  %s5432_s15 = smov [#allocation6]  }
  0x2d   : > { %s5060_s24 = sshll.u32 %s5432_s15, 4  ;;  %s5061_s24 = int_to_ptr.vmem [resolvable:$false] %s5060_s24 }
  0x2e   : > { %s464_s13 = scalar_lea.hbm %s6822_s1, %s5595_s22  ;;  %p5058_p9 = pnand %p5056_p8, %p5613_p7 }
  0x2f   : > { %s5062_s1 = scalar_lea.vmem %s5061_s24, 32  ;;  %p5063_p11 = scmp.lt.s32.totalorder %s467_s10, %s5061_s24 }
  0x30   : > { %p5059_p10 = pneg %p5058_p9  ;;  %p5064_p12 = scmp.lt.s32.totalorder %s5062_s1, %s5055_s23 }
  0x32   : > { %p5065_p13 = por %p5064_p12, %p5063_p11 }
  0x34   : > { %p5066_p1 = pnand %p5065_p13, %p5059_p10 }
  0x36   : > { %5069 = shalt.err (!%p5066_p1)
}
  0x37   : > { %4556 = dma.hbm_to_vmem [thread:$0]  (!%p5604_p4), %s464_s13, 16, %s467_s10, %s6776_s4  }
  0x38   : > { %p5627_p3 = pnand %p4026_p5, %p632_p6  ;;  %s4526_s1 = smul.u32 192, %s5592_s21 }
  0x39   : > { %s4527_s23 = smul.u32 3072, %s5422_s16  ;;  %s6827_s3 = sld [smem:[#allocation44_spill]] }
  0x3a   : > { %s6825_s15 = scalar_select %p5627_p3, 1, 0 }
  0x3b   : > { %s494_s8 = scalar_lea.vmem [#allocation9], %s4526_s1  ;;  %s6783_s2 = scalar_lea.sflag [#allocation10], %s5589_s20 }
  0x3c   : > { %6826 = sst [smem:[#allocation33_spill]] %s6825_s15  ;;  %s501_s5 = sshll.u32 %s494_s8, 4  ;;  %s502_s5 = int_to_ptr.vmem [resolvable:$true] %s501_s5 }
  0x3d   : > { %s5083_s0 = scalar_lea.vmem %s502_s5, 3072  ;;  %s5433_s10 = smov [#allocation9]  }
  0x3e   : > { %p5084_p8 = scmp.ne.s32.totalorder %s502_s5, %s5083_s0  ;;  %s5088_s13 = sshll.u32 %s5433_s10, 4  ;;  %s5089_s13 = int_to_ptr.vmem [resolvable:$false] %s5088_s13 }
  0x3f   : > { %s500_s14 = scalar_lea.hbm %s6827_s3, %s4527_s23  ;;  %s5090_s4 = scalar_lea.vmem %s5089_s13, 6144 }
  0x40   : > { %p5086_p9 = pnand %p5084_p8, %p5613_p7  ;;  %p5091_p5 = scmp.lt.s32.totalorder %s502_s5, %s5089_s13 }
  0x41   : > { %p5092_p6 = scmp.lt.s32.totalorder %s5090_s4, %s5083_s0 }
  0x42   : > { %p5087_p10 = pneg %p5086_p9 }
  0x43   : > { %p5093_p11 = por %p5092_p6, %p5091_p5 }
  0x45   : > { %p5094_p12 = pnand %p5093_p11, %p5087_p10 }
  0x47   : > { %5097 = shalt.err (!%p5094_p12)
}
  0x48   : > { %s5434_s6 = smov 192   ;;  %s5435_s8 = smov 12  }
  0x49   : > { %4562 = dma.hbm_to_vmem [thread:$0]  (!%p5604_p4), %s500_s14, 3072, %s502_s5, %s6783_s2, %s5434_s6, %s5434_s6, %s5435_s8  }
  0x4a   : > { %s6828_s7 = sld [smem:[#allocation48_spill]]  ;;  %s548_s0 = scalar_lea.vmem [#allocation12], %s5592_s21 }
  0x4b   : > { %s555_s4 = sshll.u32 %s548_s0, 4  ;;  %s4020_s10 = sshll.u32 %s5592_s21, 8  ;;  %s556_s4 = int_to_ptr.vmem [resolvable:$true] %s555_s4 }
  0x4c   : > { %s6780_s13 = scalar_lea.sflag [#allocation13], %s5589_s20  ;;  %s5111_s3 = scalar_lea.vmem %s556_s4, 16 }
  0x4d   : > { %p5112_p13 = scmp.ne.s32.totalorder %s556_s4, %s5111_s3  ;;  %s5436_s15 = smov [#allocation12]  }
  0x4e   : > { %s5116_s27 = sshll.u32 %s5436_s15, 4  ;;  %s5117_s27 = int_to_ptr.vmem [resolvable:$false] %s5116_s27 }
  0x4f   : > { %p5114_p1 = pnand %p5112_p13, %p5613_p7  ;;  %s5118_s11 = scalar_lea.vmem %s5117_s27, 32 }
  0x50   : > { %s553_s24 = scalar_lea.hbm %s6828_s7, %s5595_s22  ;;  %p5119_p9 = scmp.lt.s32.totalorder %s556_s4, %s5117_s27 }
  0x51   : > { %p5115_p8 = pneg %p5114_p1  ;;  %p5120_p10 = scmp.lt.s32.totalorder %s5118_s11, %s5111_s3 }
  0x53   : > { %p5121_p5 = por %p5120_p10, %p5119_p9 }
  0x55   : > { %p5122_p6 = pnand %p5121_p5, %p5115_p8 }
  0x57   : > { %5125 = shalt.err (!%p5122_p6)
}
  0x58   : > { %4568 = dma.hbm_to_vmem [thread:$0]  (!%p5604_p4), %s553_s24, 16, %s556_s4, %s6780_s13  }
  0x59   : > { %s4211_s5 = sshll.u32 %s5422_s16, 12  ;;  %s6829_s9 = sld [smem:[#allocation50_spill]] }
  0x5a   : > { %s583_s27 = scalar_lea.vmem [#allocation15], %s4020_s10  ;;  %s6782_s11 = scalar_lea.sflag [#allocation16], %s5589_s20 }
  0x5b   : > { %s590_s3 = sshll.u32 %s583_s27, 4  ;;  %s5437_s1 = smov [#allocation15]   ;;  %s591_s3 = int_to_ptr.vmem [resolvable:$true] %s590_s3 }
  0x5c   : > { %s5139_s8 = scalar_lea.vmem %s591_s3, 4096  ;;  %s5144_s23 = sshll.u32 %s5437_s1, 4  ;;  %s5145_s23 = int_to_ptr.vmem [resolvable:$false] %s5144_s23 }
  0x5d   : > { %p5140_p11 = scmp.ne.s32.totalorder %s591_s3, %s5139_s8  ;;  %s5146_s0 = scalar_lea.vmem %s5145_s23, 8192 }
  0x5e   : > { %p5147_p1 = scmp.lt.s32.totalorder %s591_s3, %s5145_s23  ;;  %p5148_p8 = scmp.lt.s32.totalorder %s5146_s0, %s5139_s8 }
  0x5f   : > { %s589_s15 = scalar_lea.hbm %s6829_s9, %s4211_s5  ;;  %p5142_p12 = pnand %p5140_p11, %p5613_p7 }
  0x60   : > { %p5149_p9 = por %p5148_p8, %p5147_p1 }
  0x61   : > { %p5143_p13 = pneg %p5142_p12 }
  0x63   : > { %p5150_p10 = pnand %p5149_p9, %p5143_p13 }
  0x65   : > { %5153 = shalt.err (!%p5150_p10)
}
  0x66   : > { %s5438_s24 = smov 256   ;;  %s5439_s4 = smov 16  }
  0x67   : > { %4574 = dma.hbm_to_vmem [thread:$0]  (!%p5604_p4), %s589_s15, 4096, %s591_s3, %s6782_s11, %s5438_s24, %s5438_s24, %s5439_s4  }
  0x68   : > { %p99_p5 = scmp.ne.s32.totalorder %s5394_s26, %s5390_s25  ;;  %s6830_s27 = sld [smem:[#allocation52_spill]] }
  0x69   : > { %s5678_s1 = scalar_lea.vmem [#allocation17], %s4020_s10  ;;  %s5682_s0 = sadd.s32 4294967295, %s5430_s18  }
  0x6a   : > { %s4006_s13 = sadd.s32 4294967294, %s5430_s18   ;;  %s50_s15 = sadd.s32 1, %s5422_s16 }
  0x6b   : > { %p51_p6 = scmp.ge.s32.totalorder %s50_s15, 2  ;;  %s60_s3 = sadd.s32 1, %s5410_s30 }
  0x6c   : > { %p67_p11 = scmp.ne.s32.totalorder %s5410_s30, %s5406_s29  ;;  %s6831_s10 = sld [smem:[#allocation26_spill]] }
  0x6d   : > { %s6889_s15 = smov (%p51_p6, %s50_s15), 0  ;;  %p6784_p13 = scmp.ne.s32.totalorder %s5406_s29, %s5402_s28 }
  0x6e   : > { %s5674_s8 = scalar_lea.hbm %s6830_s27, %s4211_s5  ;;  %s53_s5 = sadd.s32 1, %s5426_s17 }
  0x6f   : > { %6832 = sst [smem:[#allocation34_spill]] %s6889_s15  ;;  %s6891_s5 = smov (!%p51_p6, %s53_s5), %s5426_s17 }
  0x70   : > { %p5698_p12 = por %p68_p0, %p67_p11  ;;  %p55_p1 = scmp.ge.s32.totalorder %s6891_s5, 2 }
  0x71   : > { %p74_p8 = scmp.eq.s32.totalorder %s5682_s0, 0  ;;  %s83_s4 = ssub.s32 %s5422_s16, %s6889_s15 }
  0x72   : > { %p409_p9 = scmp.eq.s32.totalorder %s5682_s0, 3  ;;  %s6893_s5 = smov (%p55_p1, %s6891_s5), 0 }
  0x73   : > { %6834 = sst [smem:[#allocation35_spill]] %s6893_s5  ;;  %p5713_p10 = por %p74_p8, %p6784_p13 }
  0x74   : > { %p84_p0 = scmp.eq.s32.totalorder %s83_s4, 0  ;;  %s57_s6 = ssub.s32 %s5426_s17, %s6893_s5 }
  0x75   : > { %s6835_s14 = scalar_select %p5713_p10, 1, 0 }
  0x76   : > { %p5722_p6 = por %p99_p5, %p74_p8  ;;  %p58_p2 = scmp.eq.s32.totalorder %s57_s6, 0 }
  0x77   : > { %p5729_p1 = por %p409_p9, %p67_p11  ;;  %s6840_s23 = sadd.s32 1, %s6831_s10 }
  0x78   : > { %s6836_s27 = scalar_select %p5722_p6, 1, 0 }
  0x79   : > { %s6838_s11 = scalar_select %p5729_p1, 1, 0 }
  0x7a   : > { %6837 = sst [smem:[#allocation36_spill]] %s6836_s27  ;;  %s6895_s10 = smov (!%p84_p0, %s6831_s10), %s6840_s23 }
  0x7b   : > { %6839 = sst [smem:[#allocation37_spill]] %s6838_s11  ;;  %p415_p13 = scmp.eq.s32.totalorder %s4006_s13, 3 }
  0x7c   : > { %6841 = sst [smem:[#allocation38_spill]] %s6895_s10  ;;  %s435_s4 = sand.u32 1, %s5410_s30  }
  0x7d   : > { %s5739_s2 = scalar_select %p58_p2, %s5410_s30, %s60_s3  }
  0x7e   : > { %s4009_s7 = sshll.u32 %s435_s4, 6  ;;  %p6843_p10 = scmp.ne.s32.totalorder %s5406_s29, %s5402_s28 }
  0x7f   : > { %6842 = sst [smem:[#allocation39_spill]] %s5739_s2  ;;  %s4209_s9 = sshll.u32 %s5426_s17, 10 }
  0x80   : > { %p5745_p3 = por %p415_p13, %p6843_p10  ;;  %s439_s6 = scalar_lea.vmem [#allocation3], %s4009_s7 }
  0x81   : > { %s446_s5 = sshll.u32 %s439_s6, 4  ;;  %s6846_s26 = sld [smem:[#allocation41_spill]]  ;;  %s447_s5 = int_to_ptr.vmem [resolvable:$true] %s446_s5 }
  0x82   : > { %s6844_s25 = scalar_select %p5745_p3, 1, 0 }
  0x83   : > { %p6847_p5 = scmp.lt.s32.totalorder %s5430_s18, 4  ;;  %s6849_s2 = sld [smem:[#allocation43_spill]] }
  0x84   : > { %6845 = sst [smem:[#allocation40_spill]] %s6844_s25  ;;  %s436_s10 = scalar_lea.sflag [#allocation4], %s435_s4 }
  0x85   : > { %p5757_p2 = pnand %p6847_p5, %p5698_p12  ;;  %s5167_s7 = scalar_lea.vmem %s447_s5, 1024 }
  0x86   : > { %p5168_p13 = scmp.ne.s32.totalorder %s447_s5, %s5167_s7 }
  0x87   : > { %s445_s11 = scalar_lea.hbm %s6846_s26, %s4209_s9  ;;  %p5156_p11 = pneg %p5757_p2 }
  0x88   : > { %s5440_s9 = smov [#allocation3]  }
  0x89   : > { %s481_s30 = scalar_lea.hbm %s6849_s2, %s5595_s22  ;;  %p5170_p8 = pnand %p5168_p13, %p5156_p11 }
  0x8a   : > { %s5172_s26 = sshll.u32 %s5440_s9, 4  ;;  %s5173_s26 = int_to_ptr.vmem [resolvable:$false] %s5172_s26 }
  0x8b   : > { %p5171_p9 = pneg %p5170_p8  ;;  %s5174_s15 = scalar_lea.vmem %s5173_s26, 2048 }
  0x8c   : > { %p5175_p12 = scmp.lt.s32.totalorder %s447_s5, %s5173_s26  ;;  %p5176_p10 = scmp.lt.s32.totalorder %s5174_s15, %s5167_s7 }
  0x8e   : > { %p5177_p0 = por %p5176_p10, %p5175_p12 }
  0x90   : > { %p5178_p5 = pnand %p5177_p0, %p5171_p9 }
  0x92   : > { %5181 = shalt.err (!%p5178_p5)
}
  0x93   : > { %s5441_s24 = smov 128   ;;  %s5442_s27 = smov 8  }
  0x94   : > { %4553 = dma.hbm_to_vmem [thread:$0]  (!%p5757_p2), %s445_s11, 1024, %s447_s5, %s436_s10, %s5441_s24, %s5441_s24, %s5442_s27  }
  0x95   : > { %s476_s4 = scalar_lea.vmem [#allocation8], %s5592_s21  ;;  %s4015_s13 = sshll.u32 %s5592_s21, 6 }
  0x96   : > { %s483_s6 = sshll.u32 %s476_s4, 4  ;;  %s5443_s7 = smov [#allocation8]   ;;  %s484_s6 = int_to_ptr.vmem [resolvable:$true] %s483_s6 }
  0x97   : > { %s5195_s3 = scalar_lea.vmem %s484_s6, 16  ;;  %s5200_s9 = sshll.u32 %s5443_s7, 4  ;;  %s5201_s9 = int_to_ptr.vmem [resolvable:$false] %s5200_s9 }
  0x98   : > { %p5196_p11 = scmp.ne.s32.totalorder %s484_s6, %s5195_s3  ;;  %s5202_s26 = scalar_lea.vmem %s5201_s9, 32 }
  0x99   : > { %p5203_p9 = scmp.lt.s32.totalorder %s484_s6, %s5201_s9  ;;  %p5204_p12 = scmp.lt.s32.totalorder %s5202_s26, %s5195_s3 }
  0x9a   : > { %p5198_p13 = pnand %p5196_p11, %p5613_p7 }
  0x9b   : > { %p5205_p10 = por %p5204_p12, %p5203_p9 }
  0x9c   : > { %p5199_p8 = pneg %p5198_p13 }
  0x9e   : > { %p5206_p0 = pnand %p5205_p10, %p5199_p8 }
  0xa0   : > { %5209 = shalt.err (!%p5206_p0)
}
  0xa1   : > { %s6850_s11 = scalar_lea.sflag [#allocation7], %s5589_s20  ;;  %s4210_s23 = sshll.u32 %s5422_s16, 10 }
  0xa2   : > { %4559 = dma.hbm_to_vmem [thread:$0]  (!%p5604_p4), %s481_s30, 16, %s484_s6, %s6850_s11  }
  0xa3   : > { %s522_s15 = scalar_lea.vmem [#allocation11], %s4015_s13  ;;  %s6851_s3 = sld [smem:[#allocation46_spill]] }
  0xa4   : > { %s529_s24 = sshll.u32 %s522_s15, 4  ;;  %s5444_s26 = smov [#allocation11]   ;;  %s530_s24 = int_to_ptr.vmem [resolvable:$true] %s529_s24 }
  0xa5   : > { %s5223_s9 = scalar_lea.vmem %s530_s24, 1024  ;;  %s5228_s5 = sshll.u32 %s5444_s26, 4  ;;  %s5229_s5 = int_to_ptr.vmem [resolvable:$false] %s5228_s5 }
  0xa6   : > { %p5224_p2 = scmp.ne.s32.totalorder %s530_s24, %s5223_s9  ;;  %s5230_s10 = scalar_lea.vmem %s5229_s5, 2048 }
  0xa7   : > { %p5231_p13 = scmp.lt.s32.totalorder %s530_s24, %s5229_s5  ;;  %p5232_p8 = scmp.lt.s32.totalorder %s5230_s10, %s5223_s9 }
  0xa8   : > { %p5226_p5 = pnand %p5224_p2, %p5613_p7 }
  0xa9   : > { %s528_s7 = scalar_lea.hbm %s6851_s3, %s4210_s23  ;;  %p5233_p9 = por %p5232_p8, %p5231_p13 }
  0xaa   : > { %p5227_p11 = pneg %p5226_p5 }
  0xac   : > { %p5234_p12 = pnand %p5233_p9, %p5227_p11 }
  0xae   : > { %5237 = shalt.err (!%p5234_p12)
}
  0xaf   : > { %s5445_s30 = smov 64   ;;  %s5446_s6 = smov 4  }
  0xb0   : > { %s6852_s13 = scalar_lea.sflag [#allocation10], %s5589_s20  ;;  %s6853_s15 = sld [smem:[#allocation49_spill]] }
  0xb1   : > { %4565 = dma.hbm_to_vmem [thread:$0]  (!%p5604_p4), %s528_s7, 1024, %s530_s24, %s6852_s13, %s5445_s30, %s5445_s30, %s5446_s6  }
  0xb2   : > { %s6854_s4 = sshll.u32 %s5678_s1, 4  ;;  %s565_s3 = scalar_lea.vmem [#allocation14], %s5592_s21  ;;  %s5801_s4 = int_to_ptr.vmem [resolvable:$true] %s6854_s4 }
  0xb3   : > { %s572_s9 = sshll.u32 %s565_s3, 4  ;;  %s5447_s5 = smov [#allocation14]   ;;  %s573_s9 = int_to_ptr.vmem [resolvable:$true] %s572_s9 }
  0xb4   : > { %s5251_s26 = scalar_lea.vmem %s573_s9, 16  ;;  %s5256_s10 = sshll.u32 %s5447_s5, 4  ;;  %s5257_s10 = int_to_ptr.vmem [resolvable:$false] %s5256_s10 }
  0xb5   : > { %p5252_p10 = scmp.ne.s32.totalorder %s573_s9, %s5251_s26  ;;  %s5258_s2 = scalar_lea.vmem %s5257_s10, 32 }
  0xb6   : > { %s570_s27 = scalar_lea.hbm %s6853_s15, %s5595_s22  ;;  %p5259_p5 = scmp.lt.s32.totalorder %s573_s9, %s5257_s10 }
  0xb7   : > { %p5254_p0 = pnand %p5252_p10, %p5613_p7  ;;  %p5260_p11 = scmp.lt.s32.totalorder %s5258_s2, %s5251_s26 }
  0xb9   : > { %p5255_p2 = pneg %p5254_p0  ;;  %p5261_p13 = por %p5260_p11, %p5259_p5 }
  0xbb   : > { %p5262_p8 = pnand %p5261_p13, %p5255_p2 }
  0xbd   : > { %5265 = shalt.err (!%p5262_p8)
}
  0xbe   : > { %s6855_s21 = scalar_lea.sflag [#allocation13], %s5589_s20  ;;  %s5279_s22 = scalar_lea.vmem %s5801_s4, 4096 }
  0xbf   : > { %4571 = dma.hbm_to_vmem [thread:$0]  (!%p5604_p4), %s570_s27, 16, %s573_s9, %s6855_s21  }
  0xc0   : > { %p5280_p9 = scmp.ne.s32.totalorder %s5801_s4, %s5279_s22  ;;  %s5448_s1 = smov [#allocation17]  }
  0xc1   : > { %s5284_s24 = sshll.u32 %s5448_s1, 4  ;;  %s5285_s24 = int_to_ptr.vmem [resolvable:$false] %s5284_s24 }
  0xc2   : > { %p5282_p12 = pnand %p5280_p9, %p5613_p7  ;;  %s5286_s2 = scalar_lea.vmem %s5285_s24, 8192 }
  0xc3   : > { %p5287_p0 = scmp.lt.s32.totalorder %s5801_s4, %s5285_s24  ;;  %p5288_p2 = scmp.lt.s32.totalorder %s5286_s2, %s5279_s22 }
  0xc4   : > { %p5283_p10 = pneg %p5282_p12 }
  0xc5   : > { %p5289_p5 = por %p5288_p2, %p5287_p0 }
  0xc7   : > { %p5290_p11 = pnand %p5289_p5, %p5283_p10 }
  0xc9   : > { %5293 = shalt.err (!%p5290_p11)
}
  0xca   : > { %s6856_s7 = scalar_lea.sflag [#allocation16], %s5589_s20  ;;  %s6857_s12 = sld [smem:[#allocation33_spill]] }
  0xcb   : > { %4577 = dma.hbm_to_vmem [thread:$0]  (!%p5604_p4), %s5674_s8, 4096, %s5801_s4, %s6856_s7, %s5445_s30, %s5445_s30, %s5446_s6  }
  0xd0   : > { %p6858_p7 = scmp.ne.s32.totalorder %s6857_s12, 0 }
  0xd1   : > { %s5827_s13 = sand.u32 (!%p6858_p7), 1, %s5406_s29   ;;  %p6859_p13 = scmp.ne.s32.totalorder (!%p6858_p7), %s6835_s14, 0 }
  0xd2   : > { %636 = sbr.rel (%p6858_p7) target bundleno = 3254 (0xcb6), region = 72  ;;  %s6795_s11 = sshll.u32 (!%p6858_p7), %s5827_s13, 6 }
  0xd3   : > { %s639_s19 = scalar_lea.sflag (!%p6858_p7), [#allocation4], %s5827_s13  ;;  %s5833_s23 = scalar_lea.vmem (!%p6858_p7), [#allocation3], %s6795_s11 }
  0xd7   : > { %5365 = dma.done.wait (%p6859_p13), %s639_s19, 1024  }
  0xd8   : > { %5367 = vsyncadd (%p6859_p13), %s639_s19, 4294966272  ;;  %s6860_s20 = sld [smem:[#allocation25_spill]]  ;;  %s647_s30 = sand.u32 1, %s5682_s0  }
  0xd9   : > { %s648_s15 = scalar_lea.sflag [#allocation7], %s647_s30 }
  0xde   : > { %s5841_s6 = sand.u32 1, %s6860_s20  }
  0xdf   : > { %5369 = dma.done.wait (%p5722_p6), %s648_s15, 32  }
  0xe0   : > { %5371 = vsyncadd (%p5722_p6), %s648_s15, 4294967264  ;;  %s4528_s4 = smul.u32 192, %s5841_s6  ;;  %s664_s3 = scalar_lea.sflag [#allocation10], %s647_s30 }
  0xe2   : > { %s5850_s9 = scalar_lea.vmem [#allocation9], %s4528_s4 }
  0xe3   : > { %5373 = dma.done.wait (%p5722_p6), %s664_s3, 4096  }
  0xe4   : > { %5375 = vsyncadd (%p5722_p6), %s664_s3, 4294963200  ;;  %s4028_s0 = sshll.u32 %s5841_s6, 6  ;;  %s682_s5 = scalar_lea.sflag [#allocation13], %s647_s30 }
  0xe5   : > { %s5857_s26 = scalar_lea.vmem [#allocation11], %s4028_s0 }
  0xe6   : > { %5377 = dma.done.wait (%p5722_p6), %s682_s5, 32  }
  0xe7   : > { %5379 = vsyncadd (%p5722_p6), %s682_s5, 4294967264  ;;  %s4029_s21 = sshll.u32 %s5841_s6, 8  ;;  %s698_s1 = scalar_lea.sflag [#allocation16], %s647_s30 }
  0xe8   : > { %s5866_s24 = scalar_lea.vmem [#allocation15], %s4029_s21 }
  0xe9   : > { %5381 = dma.done.wait (%p5722_p6), %s698_s1, 8192  }
  0xea   : > { %5383 = vsyncadd (%p5722_p6), %s698_s1, 4294959104  ;;  %s6862_s2 = sld [smem:[#allocation29_spill]]  ;;  %s5896_s29 = scalar_lea.vmem [#allocation17], %s4029_s21 }
  0xeb   : > { %s6863_s30 = sld [smem:[#allocation47_spill]]  ;;  %s6867_s25 = sshll.u32 %s5827_s13, 6 }
  0xec   : > { %s6864_s8 = sld [smem:[#allocation53_spill]]  ;;  %s5900_s19 = scalar_lea.vmem [#allocation18], %s6867_s25 }
  0xed   : > { %s6865_s10 = sld [smem:[#allocation45_spill]] }
  0xee   : > { %s6866_s17 = sld [smem:[#allocation51_spill]] }
  0xf0   : > { %p804_p4 = scmp.lt.s32.totalorder %s6862_s2, 1  ;;  %p4033_p6 = scmp.ne.s32.totalorder %s6862_s2, 0 }
  0xf2   : > { %s5874_s7 = scalar_select %p804_p4, %s6862_s2, 1 }
  0xf3   : > { %823 = sbr.rel (%p4033_p6) target bundleno = 253 (0xfd), region = 112 }
  0xf4   : > { %s4529_s12 = smul.u32 3, %s5874_s7  ;;  %s810_s15 = scalar_lea.vmem %s6863_s30, %s5874_s7 }
  0xf5   : > { %s4032_s4 = sshll.u32 %s5874_s7, 2  ;;  %s817_s5 = scalar_lea.vmem %s6864_s8, %s5874_s7 }
  0xf6   : > { %s5889_s14 = scalar_lea.vmem %s6865_s10, %s4529_s12  ;;  %s5894_s16 = scalar_lea.vmem %s6866_s17, %s4032_s4 }
  0xf8   : > { %v824_v0 = vld [vmem:[%s5833_s23] sm:$0xff]  ;;  %v825_v1 = vld [vmem:[%s5833_s23 + $0x8] sm:$0xff]  ;;  %v826_v2 = vld [vmem:[%s5833_s23 + $0x10] sm:$0xff] }
  0xf9   : > { %832 = vst [vmem:[%s5900_s19] sm:$0xff] %v824_v0  ;;  %833 = vst [vmem:[%s5900_s19 + $0x8] sm:$0xff] %v825_v1  ;;  %v827_v3 = vld [vmem:[%s5833_s23 + $0x18] sm:$0xff]  ;;  %v828_v4 = vld [vmem:[%s5833_s23 + $0x20] sm:$0xff] }
  0xfa   : > { %834 = vst [vmem:[%s5900_s19 + $0x10] sm:$0xff] %v826_v2  ;;  %v829_v5 = vld [vmem:[%s5833_s23 + $0x28] sm:$0xff]  ;;  %835 = vst [vmem:[%s5900_s19 + $0x18] sm:$0xff] %v827_v3  ;;  %v830_v6 = vld [vmem:[%s5833_s23 + $0x30] sm:$0xff] }
  0xfb   : > { %836 = vst [vmem:[%s5900_s19 + $0x20] sm:$0xff] %v828_v4  ;;  %837 = vst [vmem:[%s5900_s19 + $0x28] sm:$0xff] %v829_v5  ;;  %v831_v7 = vld [vmem:[%s5833_s23 + $0x38] sm:$0xff] }
  0xfc   : > { %838 = vst [vmem:[%s5900_s19 + $0x30] sm:$0xff] %v830_v6  ;;  %839 = vst [vmem:[%s5900_s19 + $0x38] sm:$0xff] %v831_v7 }
  0xfd PF: > { %v4686_v16 = vld [vmem:[%s5850_s9 + $0xac] ss:$12 sps:$4 sm:$0xff]   ;;  %v4688_v17 = vld [vmem:[%s5850_s9 + $0xa8] ss:$12 sps:$4 sm:$0xff]   ;;  %v4691_v50 = vld [vmem:[%s5850_s9 + $0xb0] ss:$12 sps:$4 sm:$0xff]  }
  0xfe   : > { %1148 = vmatprep.subr.bf16.mxu0 %v4686_v16  ;;  %v4689_v49 = vld [vmem:[%s5850_s9 + $0x94] ss:$12 sps:$4 sm:$0xff]   ;;  %v4692_v51 = vld [vmem:[%s5850_s9 + $0x90] ss:$12 sps:$4 sm:$0xff]   ;;  %4366 = vmatprep.subr.bf16.mxu1 %v4691_v50  ;;  %v4695_v54 = vld [vmem:[%s5850_s9 + $0x98] ss:$12 sps:$4 sm:$0xff]  }
  0xff   : > { %1149 = vmatpush1.bf16.msra.mxu0 %v4688_v17  ;;  %4367 = vmatpush3.bf16.msra.mxu1 %v4691_v50  ;;  %v4693_v53 = vld [vmem:[%s5850_s9 + $0x7c] ss:$12 sps:$4 sm:$0xff]   ;;  %v4696_v55 = vld [vmem:[%s5850_s9 + $0x78] ss:$12 sps:$4 sm:$0xff]   ;;  %v4699_v57 = vld [vmem:[%s5850_s9 + $0x80] ss:$12 sps:$4 sm:$0xff]  }
 0x100   : > { %v840_v8 = vld [vmem:[%s5900_s19] sm:$0xff]  ;;  %v841_v10 = vld [vmem:[%s5900_s19 + $0x8] sm:$0xff]  ;;  %1150 = vmatprep.subr.bf16.mxu0 %v4689_v49  ;;  %4368 = vmatprep.subr.bf16.mxu1 %v4695_v54  ;;  %v4705_v62 = vld [vmem:[%s5850_s9 + $0x34] ss:$12 sps:$4 sm:$0xff]   ;;  %v5449_v6 = vmov 0   ;;  %s6868_s17 = scalar_lea.vmem [#allocation6], %s5841_s6 }
 0x101   : > { %v842_v9 = vld [vmem:[%s5900_s19 + $0x10] sm:$0xff]  ;;  %850 = vadd.xlane.f32.xlu0 %v840_v8  ;;  %v843_v11 = vld [vmem:[%s5900_s19 + $0x18] sm:$0xff]  ;;  %v4697_v56 = vld [vmem:[%s5850_s9 + $0x64] ss:$12 sps:$4 sm:$0xff]   ;;  %1180 = vmatprep.mubr.bf16.mxu0 %v5449_v6  ;;  %s6869_s25 = scalar_lea.vmem [#allocation8], %s5841_s6  ;;  %vm5451_vm0 = vmmov 0  }
 0x102   : > { %854 = vadd.xlane.f32.xlu1 %v842_v9  ;;  %v844_v12 = vld [vmem:[%s5900_s19 + $0x20] sm:$0xff]  ;;  %v845_v13 = vld [vmem:[%s5900_s19 + $0x28] sm:$0xff]  ;;  %vm1298_vm1 = vcmask 523264   ;;  %vm1487_vm2 = vcmask 130048   ;;  %s5452_s11 = smov 64   ;;  %vm1788_vm3 = vcmask 519168  }
 0x103   : > { %v846_v14 = vld [vmem:[%s5900_s19 + $0x30] sm:$0xff]  ;;  %v847_v15 = vld [vmem:[%s5900_s19 + $0x38] sm:$0xff]  ;;  %1151 = vmatpush1.bf16.msra.mxu0 %v4692_v51  ;;  %4369 = vmatpush3.bf16.msra.mxu1 %v4695_v54  ;;  %v4713_v4 = vld [vmem:[%s5850_s9 + $0x4] ss:$12 sps:$4 sm:$0xff]   ;;  %vm2341_vm4 = vcmask 1043968   ;;  %s6874_s10 = sld [smem:[#allocation30_spill]] }
 0x104   : > { %1152 = vmatprep.subr.bf16.mxu0 %v4693_v53  ;;  %v4700_v58 = vld [vmem:[%s5850_s9 + $0x60] ss:$12 sps:$4 sm:$0xff]   ;;  %4370 = vmatprep.subr.bf16.mxu1 %v4699_v57  ;;  %v4703_v60 = vld [vmem:[%s5850_s9 + $0x68] ss:$12 sps:$4 sm:$0xff]   ;;  %v4707_v63 = vld [vmem:[%s5850_s9 + $0x50] ss:$12 sps:$4 sm:$0xff]  }
 0x105   : > { %852 = vadd.xlane.f32.xlu0 %v841_v10  ;;  %v4701_v59 = vld [vmem:[%s5850_s9 + $0x4c] ss:$12 sps:$4 sm:$0xff]   ;;  %v4704_v61 = vld [vmem:[%s5850_s9 + $0x48] ss:$12 sps:$4 sm:$0xff]   ;;  %v4708_v0 = vld [vmem:[%s5850_s9 + $0x30] ss:$12 sps:$4 sm:$0xff]  }
 0x106   : > { %856 = vadd.xlane.f32.xlu1 %v843_v11  ;;  %v4709_v1 = vld [vmem:[%s5850_s9 + $0x1c] ss:$12 sps:$4 sm:$0xff]   ;;  %v4711_v2 = vld [vmem:[%s5850_s9 + $0x38] ss:$12 sps:$4 sm:$0xff]   ;;  %v4715_v5 = vld [vmem:[%s5850_s9 + $0x20] ss:$12 sps:$4 sm:$0xff]  }
 0x107   : > { %1153 = vmatpush1.bf16.msra.mxu0 %v4696_v55  ;;  %4371 = vmatpush3.bf16.msra.mxu1 %v4699_v57  ;;  %v4712_v3 = vld [vmem:[%s5850_s9 + $0x18] ss:$12 sps:$4 sm:$0xff]   ;;  %v4716_v7 = vld [vmem:[%s5850_s9] ss:$12 sps:$4 sm:$0xff]   ;;  %s6876_s12 = sld [smem:[#allocation54_spill]]  ;;  %s3706_s30 = scalar_lea.sflag [#allocation5], %s5827_s13 }
 0x108   : > { %1154 = vmatprep.subr.bf16.mxu0 %v4697_v56  ;;  %4372 = vmatprep.subr.bf16.mxu1 %v4703_v60  ;;  %s5453_s4 = smov [#allocation18]  }
 0x109   : > { %858 = vadd.xlane.f32.xlu0 %v844_v12  ;;  %s4229_s22 = sshll.u32 %s6874_s10, 10  ;;  %s5298_s3 = sshll.u32 %s5453_s4, 4  ;;  %s5299_s3 = int_to_ptr.vmem [resolvable:$false] %s5298_s3 }
 0x10a   : > { %860 = vadd.xlane.f32.xlu1 %v845_v13  ;;  %s5300_s0 = scalar_lea.vmem %s5299_s3, 2048 }
 0x10b   : > { %1155 = vmatpush1.bf16.msra.mxu0 %v4700_v58  ;;  %4373 = vmatpush3.bf16.msra.mxu1 %v4703_v60 }
 0x10c   : > { %1156 = vmatprep.subr.bf16.mxu0 %v4701_v59  ;;  %4374 = vmatprep.subr.bf16.mxu1 %v4707_v63 }
 0x10d   : > { %862 = vadd.xlane.f32.xlu0 %v846_v14  ;;  %s6694_s20 = scalar_lea.hbm %s6876_s12, %s4229_s22 }
 0x10e   : > { %864 = vadd.xlane.f32.xlu1 %v847_v15 }
 0x10f   : > { %1157 = vmatpush1.bf16.msra.mxu0 %v4704_v61  ;;  %4375 = vmatpush3.bf16.msra.mxu1 %v4707_v63 }
 0x110   : > { %1158 = vmatprep.subr.bf16.mxu0 %v4705_v62  ;;  %4376 = vmatprep.subr.bf16.mxu1 %v4711_v2 }
 0x113   : > { %1159 = vmatpush1.bf16.msra.mxu0 %v4708_v0  ;;  %4377 = vmatpush3.bf16.msra.mxu1 %v4711_v2 }
 0x114   : > { %1160 = vmatprep.subr.bf16.mxu0 %v4709_v1  ;;  %4378 = vmatprep.subr.bf16.mxu1 %v4715_v5 }
 0x117   : > { %1161 = vmatpush1.bf16.msra.mxu0 %v4712_v3  ;;  %4379 = vmatpush3.bf16.msra.mxu1 %v4715_v5 }
 0x118   : > { %1162 = vmatprep.subr.bf16.mxu0 %v4713_v4 }
 0x11b   : > { %1163 = vmatpush1.bf16.msra.mxu0 %v4716_v7 }
 0x18a   : > { %v851_v18 = vpop.xlane.xlu0 %850 }
 0x18b   : > { %v855_v19 = vpop.xlane.xlu1 %854  ;;  %v867_v20 = vmul.f32 0.0078125, %v851_v18 }
 0x18c   : > { %v869_v21 = vmul.f32 0.0078125, %v855_v19 }
 0x18d   : > { %v5929_v22 = vsub.f32 %v840_v8, %v867_v20  ;;  %v4717_v8 = vld [vmem:[%s5850_s9 + $0x8] ss:$12 sps:$4 sm:$0xff]   ;;  %s6871_s9 = scalar_lea.vmem [#allocation12], %s5841_s6 }
 0x18e   : > { %v5931_v23 = vsub.f32 %v842_v9, %v869_v21  ;;  %v853_v24 = vpop.xlane.xlu0 %852  ;;  %4380 = vmatprep.subr.bf16.mxu1 %v4717_v8 }
 0x18f   : > { %v857_v25 = vpop.xlane.xlu1 %856  ;;  %v868_v26 = vmul.f32 0.0078125, %v853_v24  ;;  %v883_v27 = vmul.f32 %v5929_v22, %v5929_v22  ;;  %4381 = vmatpush3.bf16.msra.mxu1 %v4717_v8 }
 0x190   : > { %v870_v28 = vmul.f32 0.0078125, %v857_v25  ;;  %v885_v31 = vmul.f32 %v5931_v23, %v5931_v23 }
 0x191   : > { %v5935_v29 = vsub.f32 %v841_v10, %v868_v26  ;;  %891 = vadd.xlane.f32.xlu0 %v883_v27 }
 0x192   : > { %v5937_v30 = vsub.f32 %v843_v11, %v870_v28  ;;  %v859_v32 = vpop.xlane.xlu0 %858 }
 0x193   : > { %v861_v33 = vpop.xlane.xlu1 %860  ;;  %v871_v34 = vmul.f32 0.0078125, %v859_v32  ;;  %v884_v35 = vmul.f32 %v5935_v29, %v5935_v29 }
 0x194   : > { %v872_v36 = vmul.f32 0.0078125, %v861_v33  ;;  %v886_v39 = vmul.f32 %v5937_v30, %v5937_v30 }
 0x195   : > { %v5943_v37 = vsub.f32 %v844_v12, %v871_v34  ;;  %895 = vadd.xlane.f32.xlu0 %v885_v31  ;;  %893 = vadd.xlane.f32.xlu1 %v884_v35 }
 0x196   : > { %v5945_v38 = vsub.f32 %v845_v13, %v872_v36  ;;  %v863_v40 = vpop.xlane.xlu0 %862 }
 0x197   : > { %v865_v41 = vpop.xlane.xlu1 %864  ;;  %v873_v42 = vmul.f32 0.0078125, %v863_v40  ;;  %v887_v43 = vmul.f32 %v5943_v37, %v5943_v37 }
 0x198   : > { %v874_v44 = vmul.f32 0.0078125, %v865_v41  ;;  %v888_v47 = vmul.f32 %v5945_v38, %v5945_v38  ;;  %v4034_v41 = vld [vmem:[%s6868_s17] ss:$0 sm:$0xff] }
 0x199   : > { %v5951_v45 = vsub.f32 %v846_v14, %v873_v42  ;;  %897 = vadd.xlane.f32.xlu1 %v886_v39  ;;  %899 = vadd.xlane.f32.xlu0 %v887_v43 }
 0x19a   : > { %v5953_v46 = vsub.f32 %v847_v15, %v874_v44 }
 0x19b   : > { %v889_v48 = vmul.f32 %v5951_v45, %v5951_v45 }
 0x19c   : > { %v890_v52 = vmul.f32 %v5953_v46, %v5953_v46 }
 0x19d   : > { %901 = vadd.xlane.f32.xlu1 %v888_v47  ;;  %903 = vadd.xlane.f32.xlu0 %v889_v48  ;;  %v4035_v48 = vld [vmem:[%s6869_s25] ss:$0 sm:$0xff] }
 0x1a1   : > { %905 = vadd.xlane.f32.xlu1 %v890_v52 }
 0x21a   : > { %v892_v9 = vpop.xlane.xlu0 %891 }
 0x21b   : > { %v907_v10 = vmul.f32 0.0078125, %v892_v9 }
 0x21d   : > { %v915_v11 = vadd.f32 1e-05, %v907_v10 }
 0x21e   : > { %v894_v12 = vpop.xlane.xlu1 %893  ;;  %v896_v13 = vpop.xlane.xlu0 %895 }
 0x21f   : > { %4810 = vrsqrt.f32 %v915_v11  ;;  %v908_v14 = vmul.f32 0.0078125, %v894_v12  ;;  %v909_v15 = vmul.f32 0.0078125, %v896_v13  ;;  %v1003_v13 = vld [vmem:[%s5889_s14] sm:$0x7] }
 0x221   : > { %v916_v16 = vadd.f32 1e-05, %v908_v14  ;;  %v917_v17 = vadd.f32 1e-05, %v909_v15 }
 0x222   : > { %v898_v18 = vpop.xlane.xlu1 %897  ;;  %v900_v19 = vpop.xlane.xlu0 %899 }
 0x223   : > { %4812 = vrsqrt.f32 %v916_v16  ;;  %v910_v20 = vmul.f32 0.0078125, %v898_v18  ;;  %v911_v21 = vmul.f32 0.0078125, %v900_v19 }
 0x224   : > { %4814 = vrsqrt.f32 %v917_v17 }
 0x225   : > { %v918_v24 = vadd.f32 1e-05, %v910_v20  ;;  %v919_v25 = vadd.f32 1e-05, %v911_v21 }
 0x226   : > { %v902_v26 = vpop.xlane.xlu1 %901  ;;  %v904_v27 = vpop.xlane.xlu0 %903 }
 0x227   : > { %4816 = vrsqrt.f32 %v918_v24  ;;  %v912_v28 = vmul.f32 0.0078125, %v902_v26  ;;  %v913_v31 = vmul.f32 0.0078125, %v904_v27 }
 0x228   : > { %4818 = vrsqrt.f32 %v919_v25 }
 0x229   : > { %v920_v32 = vadd.f32 1e-05, %v912_v28  ;;  %v921_v33 = vadd.f32 1e-05, %v913_v31 }
 0x22a   : > { %v906_v34 = vpop.xlane.xlu1 %905 }
 0x22b   : > { %4820 = vrsqrt.f32 %v920_v32  ;;  %v914_v35 = vmul.f32 0.0078125, %v906_v34 }
 0x22c   : > { %v4811_v36 = vpop.eup %4810  ;;  %4822 = vrsqrt.f32 %v921_v33 }
 0x22d   : > { %v922_v39 = vadd.f32 1e-05, %v914_v35  ;;  %v931_v40 = vmul.f32 %v4811_v36, %v5929_v22 }
 0x22f   : > { %4824 = vrsqrt.f32 %v922_v39  ;;  %v945_v47 = vmul.f32 %v4034_v41, %v931_v40 }
 0x230   : > { %v4813_v42 = vpop.eup %4812 }
 0x231   : > { %v4815_v43 = vpop.eup %4814  ;;  %v932_v44 = vmul.f32 %v4813_v42, %v5935_v29  ;;  %v959_v54 = vadd.f32 %v4035_v48, %v945_v47 }
 0x232   : > { %v933_v49 = vmul.f32 %v4815_v43, %v5931_v23 }
 0x233   : > { %v946_v50 = vmul.f32 %v4034_v41, %v932_v44 }
 0x234   : > { %v4817_v51 = vpop.eup %4816  ;;  %v947_v52 = vmul.f32 %v4034_v41, %v933_v49 }
 0x235   : > { %v4819_v53 = vpop.eup %4818  ;;  %v960_v55 = vadd.f32 %v4035_v48, %v946_v50  ;;  %v934_v22 = vmul.f32 %v4817_v51, %v5937_v30 }
 0x236   : > { %v935_v56 = vmul.f32 %v4819_v53, %v5943_v37  ;;  %v961_v60 = vadd.f32 %v4035_v48, %v947_v52 }
 0x237   : > { %v967_v57 = vpack.c.bf16 %v960_v55, %v959_v54  ;;  %v948_v58 = vmul.f32 %v4034_v41, %v934_v22 }
 0x238   : > { %v4821_v59 = vpop.eup %4820  ;;  %v949_v62 = vmul.f32 %v4034_v41, %v935_v56 }
 0x239   : > { %v4823_v29 = vpop.eup %4822  ;;  %1181 = vmatmul.mubr.bf16.vlgmr.msra.gmra.mxu0 %v967_v57  ;;  %4382 = vmatprep.mubr.bf16.mxu1 %v967_v57  ;;  %v962_v61 = vadd.f32 %v4035_v48, %v948_v58  ;;  %v936_v23 = vmul.f32 %v4821_v59, %v5945_v38 }
 0x23a   : > { %1190 = vmatprep.mubr.bf16.mxu0 %v5449_v6  ;;  %v937_v63 = vmul.f32 %v4823_v29, %v5951_v45  ;;  %v963_v37 = vadd.f32 %v4035_v48, %v949_v62  ;;  %v5450_v45 = vmov 0.0  }
 0x23b   : > { %v968_v0 = vpack.c.bf16 %v962_v61, %v961_v60  ;;  %v950_v1 = vmul.f32 %v4034_v41, %v936_v23  ;;  %4390 = vmatprep.subr.bf16.mxu1 %v5450_v45  ;;  %4402 = vmatprep.subr.bf16.mxu0 %v5450_v45 }
 0x23c   : > { %v4825_v30 = vpop.eup %4824  ;;  %v951_v4 = vmul.f32 %v4034_v41, %v937_v63 }
 0x23d   : > { %4383 = vmatmul.mubr.bf16.vlgmr.msra.gmra.mxu1 %v968_v0  ;;  %v964_v2 = vadd.f32 %v4035_v48, %v950_v1  ;;  %v938_v3 = vmul.f32 %v4825_v30, %v5953_v46  ;;  %v1005_v46 = vlaneseq }
 0x23e   : > { %v965_v8 = vadd.f32 %v4035_v48, %v951_v4 }
 0x23f   : > { %v969_v5 = vpack.c.bf16 %v964_v2, %v963_v37  ;;  %v952_v7 = vmul.f32 %v4034_v41, %v938_v3  ;;  %v6005_v10 = vshrl.u32 %v1005_v46, 7 }
 0x241   : > { %1191 = vmatmul.mubr.bf16.gmra.mxu0 %v968_v0  ;;  %4386 = vmatprep.mubr.bf16.mxu1 %v969_v5  ;;  %v966_v38 = vadd.f32 %v4035_v48, %v952_v7  ;;  %v1011_v11 = vsub.s32 1, %v6005_v10  ;;  %v1007_v20 = vsub.s32 0, %v6005_v10  ;;  %v1015_v24 = vsub.s32 2, %v6005_v10 }
 0x242   : > { %1200 = vmatprep.mubr.bf16.mxu0 %v5449_v6 }
 0x243   : > { %v970_v9 = vpack.c.bf16 %v966_v38, %v965_v8  ;;  %v6011_v15 = vrot.slane %v1003_v13, %v1011_v11  ;;  %v6027_v33 = vrot.slane %v1003_v13, %v1007_v20  ;;  %v6031_v34 = vrot.slane %v1003_v13, %v1015_v24 }
 0x245   : > { %4387 = vmatmul.mubr.bf16.gmra.mxu1 %v970_v9 }
 0x246   : > { %4392 = vmatprep.mubr.msk.bf16.mxu1 %vm5451_vm0, %v5450_v45 }
 0x249   : > { %1201 = vmatmul.mubr.bf16.gmra.mxu0 %v969_v5 }
 0x24a   : > { %1210 = vmatprep.mubr.bf16.mxu0 %v5449_v6 }
 0x251   : > { %1211 = vmatmul.mubr.bf16.gmra.mxu0 %v970_v9 }
 0x252   : > { %4404 = vmatprep.mubr.msk.bf16.mxu0 %vm5451_vm0, %v5450_v45 }
 0x2f9   : > { %v1182_v12 = vpop.f32.mrf.mxu0 }
 0x2fa   : > { %v1183_v44 = vadd.f32 %v1182_v12, %v6027_v33 }
 0x2fb   : > { %v1184_v14 = vpop.f32.mrf.mxu0 }
 0x2fc   : > { %v1185_v21 = vadd.f32 %v1184_v14, %v6011_v15 }
 0x2fd   : > { %v1186_v16 = vpop.f32.mrf.mxu0  ;;  %v6013_v17 = vpop.f32.mrf.mxu1 }
 0x2fe   : > { %v1187_v40 = vadd.f32 %v1186_v16, %v6027_v33 }
 0x2ff   : > { %v1188_v18 = vpop.f32.mrf.mxu0  ;;  %v6015_v19 = vpop.f32.mrf.mxu1 }
 0x300   : > { %v1189_v25 = vadd.f32 %v1188_v18, %v6011_v15  ;;  %v6042_v52 = vpack.c.bf16 %v1187_v40, %v1183_v44  ;;  %v1256_v46 = vadd.f32 %v6015_v19, %v6031_v34 }
 0x301   : > { %v1192_v26 = vpop.f32.mrf.mxu0  ;;  %v6021_v27 = vpop.f32.mrf.mxu1 }
 0x302   : > { %v6023_v28 = vpack.c.bf16 %v1189_v25, %v1185_v21  ;;  %v1193_v23 = vadd.f32 %v1192_v26, %v6027_v33  ;;  %v1267_v18 = vadd.f32 %v6021_v27, %v6031_v34  ;;  %v1264_v21 = vadd.f32 %v6013_v17, %v6031_v34 }
 0x303   : > { %v1194_v31 = vpop.f32.mrf.mxu0  ;;  %v1258_v32 = vpop.f32.mrf.mxu1 }
 0x304   : > { %v1303_v35 = vsel %vm1298_vm1, %v6023_v28, 0  ;;  %v1195_v47 = vadd.f32 %v1194_v31, %v6011_v15  ;;  %v1259_v5 = vadd.f32 %v1258_v32, %v6031_v34  ;;  %v6104_v26 = vpack.c.bf16 %v1267_v18, %v1264_v21 }
 0x305   : > { %v1196_v36 = vpop.f32.mrf.mxu0  ;;  %v4388_v39 = vpop.f32.mrf.mxu1  ;;  %4391 = vmatpush3.bf16.xpose.msra.mxu1 %v1303_v35 }
 0x306   : > { %v1280_v41 = vadd.f32 %v4388_v39, %v6031_v34  ;;  %4396 = vmatprep.subr.bf16.mxu1 %v5450_v45  ;;  %v1197_v60 = vadd.f32 %v1196_v36, %v6027_v33  ;;  %v6085_v14 = vpack.c.bf16 %v1259_v5, %v1256_v46 }
 0x307   : > { %v1198_v42 = vpop.f32.mrf.mxu0  ;;  %v1271_v43 = vpop.f32.mrf.mxu1 }
 0x308   : > { %v1199_v48 = vadd.f32 %v1198_v42, %v6011_v15  ;;  %v1272_v49 = vadd.f32 %v1271_v43, %v6031_v34  ;;  %v6063_v1 = vpack.c.bf16 %v1197_v60, %v1193_v23 }
 0x309   : > { %v1202_v50 = vpop.f32.mrf.mxu0  ;;  %v4389_v51 = vpop.f32.mrf.mxu1 }
 0x30a   : > { %v6044_v53 = vpack.c.bf16 %v1199_v48, %v1195_v47  ;;  %v1283_v54 = vadd.f32 %v4389_v51, %v6031_v34  ;;  %v1203_v8 = vadd.f32 %v1202_v50, %v6027_v33 }
 0x30b   : > { %v1204_v55 = vpop.f32.mrf.mxu0  ;;  %v1274_v22 = vpop.f32.mrf.mxu1 }
 0x30c   : > { %v6047_v56 = vpack.c.bf16 %v1283_v54, %v1280_v41  ;;  %v1275_v57 = vadd.f32 %v1274_v22, %v6031_v34  ;;  %4393 = vmatmul.mubr.msk.bf16.vlgmr.msra.gmra.mxu1 %vm1298_vm1, %v6042_v52  ;;  %v1350_v58 = vsel %vm1298_vm1, %v6044_v53, 0  ;;  %v1205_v62 = vadd.f32 %v1204_v55, %v6011_v15 }
 0x30d   : > { %v1206_v59 = vpop.f32.mrf.mxu0  ;;  %4397 = vmatpush3.bf16.xpose.msra.mxu1 %v1350_v58  ;;  %4398 = vmatprep.mubr.msk.bf16.mxu1 %vm5451_vm0, %v5450_v45 }
 0x30e   : > { %v6057_v29 = vpack.c.bf16 %v1275_v57, %v1272_v49  ;;  %4408 = vmatprep.subr.bf16.mxu1 %v5450_v45  ;;  %v1207_v4 = vadd.f32 %v1206_v59, %v6027_v33 }
 0x30f   : > { %v1208_v61 = vpop.f32.mrf.mxu0 }
 0x310   : > { %v1209_v63 = vadd.f32 %v1208_v61, %v6011_v15  ;;  %v6081_v12 = vpack.c.bf16 %v1207_v4, %v1203_v8 }
 0x311   : > { %v1212_v0 = vpop.f32.mrf.mxu0 }
 0x312   : > { %v6065_v30 = vpack.c.bf16 %v1209_v63, %v1205_v62  ;;  %v1213_v19 = vadd.f32 %v1212_v0, %v6027_v33 }
 0x313   : > { %v1214_v37 = vpop.f32.mrf.mxu0 }
 0x314   : > { %4399 = vmatmul.mubr.msk.bf16.vlgmr.msra.gmra.mxu1 %vm1298_vm1, %v6063_v1  ;;  %v1397_v2 = vsel %vm1298_vm1, %v6065_v30, 0  ;;  %v1215_v38 = vadd.f32 %v1214_v37, %v6011_v15 }
 0x315   : > { %v1216_v3 = vpop.f32.mrf.mxu0  ;;  %4403 = vmatpush3.bf16.xpose.msra.mxu0 %v1397_v2  ;;  %4410 = vmatprep.mubr.msk.bf16.mxu1 %vm5451_vm0, %v5450_v45 }
 0x316   : > { %4414 = vmatprep.subr.bf16.mxu0 %v5450_v45 }
 0x317   : > { %v1218_v7 = vpop.f32.mrf.mxu0 }
 0x318   : > { %v1219_v9 = vadd.f32 %v1218_v7, %v6011_v15  ;;  %v1217_v15 = vadd.f32 %v1216_v3, %v6027_v33 }
 0x31a   : > { %v6083_v13 = vpack.c.bf16 %v1219_v9, %v1215_v38  ;;  %v6102_v25 = vpack.c.bf16 %v1217_v15, %v1213_v19 }
 0x31c   : > { %4405 = vmatmul.mubr.msk.bf16.vlgmr.msra.gmra.mxu0 %vm1298_vm1, %v6081_v12  ;;  %v1444_v16 = vsel %vm1298_vm1, %v6083_v13, 0 }
 0x31d   : > { %4409 = vmatpush3.bf16.xpose.msra.mxu1 %v1444_v16  ;;  %4415 = vmatpush3.bf16.msra.mxu0 %v6085_v14 }
 0x31e   : > { %4420 = vmatprep.subr.bf16.mxu1 %v5450_v45  ;;  %4416 = vmatprep.mubr.msk.bf16.mxu0 %vm5451_vm0, %v5450_v45 }
 0x31f   : > { %4426 = vmatprep.subr.bf16.mxu0 %v5450_v45 }
 0x324   : > { %4411 = vmatmul.mubr.msk.bf16.vlgmr.msra.gmra.mxu1 %vm1298_vm1, %v6102_v25 }
 0x325   : > { %4421 = vmatpush3.bf16.msra.mxu1 %v6104_v26  ;;  %4422 = vmatprep.mubr.msk.bf16.mxu1 %vm5451_vm0, %v5450_v45 }
 0x326   : > { %4432 = vmatprep.subr.bf16.mxu1 %v5450_v45 }
 0x3cc   : > { %v1339_v27 = vpop.f32.mrf.mxu1 }
 0x3cd   : > { %v1488_v31 = vsel %vm1487_vm2, %v1339_v27, -inf }
 0x3ce   : > { %1489 = vmax.xlane.f32.xlu0 %v1488_v31  ;;  %v4394_v17 = vpop.f32.mrf.mxu1 }
 0x3d0   : > { %v1342_v32 = vpop.f32.mrf.mxu1 }
 0x3d1   : > { %v1491_v33 = vsel %vm1487_vm2, %v1342_v32, -inf }
 0x3d2   : > { %1492 = vmax.xlane.f32.xlu1 %v1491_v33  ;;  %v4395_v34 = vpop.f32.mrf.mxu1 }
 0x3d4   : > { %v1386_v35 = vpop.f32.mrf.mxu1 }
 0x3d5   : > { %v1494_v36 = vsel %vm1487_vm2, %v1386_v35, -inf }
 0x3d6   : > { %1495 = vmax.xlane.f32.xlu0 %v1494_v36  ;;  %v4400_v39 = vpop.f32.mrf.mxu1 }
 0x3d8   : > { %v1389_v40 = vpop.f32.mrf.mxu1 }
 0x3d9   : > { %v1497_v41 = vsel %vm1487_vm2, %v1389_v40, -inf }
 0x3da   : > { %1498 = vmax.xlane.f32.xlu1 %v1497_v41  ;;  %v4401_v42 = vpop.f32.mrf.mxu1 }
 0x3dc   : > { %v1433_v43 = vpop.f32.mrf.mxu0 }
 0x3dd   : > { %v1500_v44 = vsel %vm1487_vm2, %v1433_v43, -inf }
 0x3de   : > { %1501 = vmax.xlane.f32.xlu0 %v1500_v44  ;;  %v4406_v47 = vpop.f32.mrf.mxu0 }
 0x3e0   : > { %v1436_v48 = vpop.f32.mrf.mxu0 }
 0x3e1   : > { %v1503_v49 = vsel %vm1487_vm2, %v1436_v48, -inf }
 0x3e2   : > { %1504 = vmax.xlane.f32.xlu1 %v1503_v49  ;;  %v4407_v50 = vpop.f32.mrf.mxu0 }
 0x3e4   : > { %v1480_v51 = vpop.f32.mrf.mxu1 }
 0x3e5   : > { %v1506_v54 = vsel %vm1487_vm2, %v1480_v51, -inf }
 0x3e6   : > { %1507 = vmax.xlane.f32.xlu0 %v1506_v54  ;;  %v4412_v55 = vpop.f32.mrf.mxu1 }
 0x3e8   : > { %v1483_v22 = vpop.f32.mrf.mxu1 }
 0x3e9   : > { %v1509_v57 = vsel %vm1487_vm2, %v1483_v22, -inf }
 0x3ea   : > { %1510 = vmax.xlane.f32.xlu1 %v1509_v57  ;;  %v4413_v58 = vpop.f32.mrf.mxu1 }
 0x457   : > { %v1490_v59 = vpop.xlane.xlu0 %1489 }
 0x458   : > { %v1512_v60 = vsub.f32 %v1339_v27, %v1490_v59 }
 0x45a   : > { %v1520_v61 = vmul.f32 1.442695, %v1512_v60 }
 0x45b   : > { %v1493_v23 = vpop.xlane.xlu1 %1492 }
 0x45c   : > { %4826 = vpow2.f32 %v1520_v61  ;;  %v1513_v62 = vsub.f32 %v1342_v32, %v1493_v23 }
 0x45e   : > { %v1522_v63 = vmul.f32 1.442695, %v1513_v62 }
 0x45f   : > { %v1496_v0 = vpop.xlane.xlu0 %1495 }
 0x460   : > { %4828 = vpow2.f32 %v1522_v63  ;;  %v1514_v37 = vsub.f32 %v1386_v35, %v1496_v0 }
 0x462   : > { %v1524_v2 = vmul.f32 1.442695, %v1514_v37 }
 0x463   : > { %v1499_v3 = vpop.xlane.xlu1 %1498 }
 0x464   : > { %4830 = vpow2.f32 %v1524_v2  ;;  %v1515_v4 = vsub.f32 %v1389_v40, %v1499_v3 }
 0x466   : > { %v1526_v5 = vmul.f32 1.442695, %v1515_v4 }
 0x467   : > { %v1502_v7 = vpop.xlane.xlu0 %1501 }
 0x468   : > { %4832 = vpow2.f32 %v1526_v5  ;;  %v1516_v8 = vsub.f32 %v1433_v43, %v1502_v7 }
 0x469   : > { %v4827_v38 = vpop.eup %4826 }
 0x46a   : > { %v1528_v9 = vmul.f32 1.442695, %v1516_v8  ;;  %v1536_v46 = vsel %vm1487_vm2, %v4827_v38, 0.0 }
 0x46b   : > { %v1505_v16 = vpop.xlane.xlu1 %1504  ;;  %1537 = vadd.xlane.f32.xlu0 %v1536_v46 }
 0x46c   : > { %4834 = vpow2.f32 %v1528_v9  ;;  %v1517_v15 = vsub.f32 %v1436_v48, %v1505_v16 }
 0x46d   : > { %v4829_v18 = vpop.eup %4828 }
 0x46e   : > { %v1530_v19 = vmul.f32 1.442695, %v1517_v15  ;;  %v1539_v21 = vsel %vm1487_vm2, %v4829_v18, 0.0 }
 0x46f   : > { %v1508_v27 = vpop.xlane.xlu0 %1507  ;;  %1540 = vadd.xlane.f32.xlu1 %v1539_v21 }
 0x470   : > { %4836 = vpow2.f32 %v1530_v19  ;;  %v1518_v31 = vsub.f32 %v1480_v51, %v1508_v27 }
 0x471   : > { %v4831_v17 = vpop.eup %4830 }
 0x472   : > { %v1532_v32 = vmul.f32 1.442695, %v1518_v31  ;;  %v1542_v33 = vsel %vm1487_vm2, %v4831_v17, 0.0 }
 0x473   : > { %1543 = vadd.xlane.f32.xlu0 %v1542_v33  ;;  %v1511_v44 = vpop.xlane.xlu1 %1510 }
 0x474   : > { %4838 = vpow2.f32 %v1532_v32  ;;  %v1519_v47 = vsub.f32 %v1483_v22, %v1511_v44 }
 0x475   : > { %v4833_v34 = vpop.eup %4832 }
 0x476   : > { %v1545_v35 = vsel %vm1487_vm2, %v4833_v34, 0.0  ;;  %v1534_v48 = vmul.f32 1.442695, %v1519_v47 }
 0x477   : > { %1546 = vadd.xlane.f32.xlu1 %v1545_v35 }
 0x478   : > { %4840 = vpow2.f32 %v1534_v48 }
 0x479   : > { %v4835_v36 = vpop.eup %4834 }
 0x47a   : > { %v1548_v39 = vsel %vm1487_vm2, %v4835_v36, 0.0 }
 0x47b   : > { %1549 = vadd.xlane.f32.xlu0 %v1548_v39 }
 0x47d   : > { %v4837_v40 = vpop.eup %4836 }
 0x47e   : > { %v1551_v41 = vsel %vm1487_vm2, %v4837_v40, 0.0 }
 0x47f   : > { %1552 = vadd.xlane.f32.xlu1 %v1551_v41 }
 0x481   : > { %v6126_v42 = vpop.eup %4838 }
 0x482   : > { %v1554_v43 = vsel %vm1487_vm2, %v6126_v42, 0.0 }
 0x483   : > { %1555 = vadd.xlane.f32.xlu0 %v1554_v43 }
 0x485   : > { %v6138_v49 = vpop.eup %4840 }
 0x486   : > { %v1557_v50 = vsel %vm1487_vm2, %v6138_v49, 0.0 }
 0x490   : > { %1854 = vrot.lane.b32.xlu1 %v6044_v53, %s5452_s11 }
 0x499   : > { %1801 = vrot.lane.b32.xlu0 %v6023_v28, %s5452_s11 }
 0x49d   : > { %1907 = vrot.lane.b32.xlu0 %v6065_v30, %s5452_s11 }
 0x4a1   : > { %1904 = vrot.lane.b32.xlu0 %v6081_v12, %s5452_s11 }
 0x4b4   : > { %1558 = vadd.xlane.f32.xlu1 %v1557_v50 }
 0x4c5   : > { %1798 = vrot.lane.b32.xlu1 %v6042_v52, %s5452_s11 }
 0x4c9   : > { %1851 = vrot.lane.b32.xlu1 %v6063_v1, %s5452_s11 }
 0x4cd   : > { %1960 = vrot.lane.b32.xlu1 %v6083_v13, %s5452_s11 }
 0x4d1   : > { %1957 = vrot.lane.b32.xlu1 %v6102_v25, %s5452_s11 }
 0x4f4   : > { %v1538_v28 = vpop.xlane.xlu0 %1537 }
 0x4f5   : > { %4842 = vrcp.f32 %v1538_v28 }
 0x4f8   : > { %v1541_v53 = vpop.xlane.xlu1 %1540 }
 0x4f9   : > { %4844 = vrcp.f32 %v1541_v53 }
 0x4fc   : > { %v1544_v30 = vpop.xlane.xlu0 %1543 }
 0x4fd   : > { %4846 = vrcp.f32 %v1544_v30 }
 0x500   : > { %v1547_v12 = vpop.xlane.xlu1 %1546 }
 0x501   : > { %4848 = vrcp.f32 %v1547_v12 }
 0x502   : > { %v4843_v51 = vpop.eup %4842 }
 0x503   : > { %v1568_v55 = vmul.f32 %v4843_v51, %v4827_v38 }
 0x504   : > { %v1550_v54 = vpop.xlane.xlu0 %1549 }
 0x505   : > { %4850 = vrcp.f32 %v1550_v54 }
 0x506   : > { %v4845_v52 = vpop.eup %4844 }
 0x507   : > { %v1569_v1 = vmul.f32 %v4845_v52, %v4829_v18 }
 0x508   : > { %v1553_v22 = vpop.xlane.xlu1 %1552 }
 0x509   : > { %4852 = vrcp.f32 %v1553_v22  ;;  %v1576_v13 = vpack.c.bf16 %v1569_v1, %v1568_v55 }
 0x50a   : > { %v4847_v25 = vpop.eup %4846 }
 0x50b   : > { %4417 = vmatmul.mubr.msk.bf16.vlgmr.msra.gmra.mxu0 %vm1487_vm2, %v1576_v13  ;;  %v1570_v58 = vmul.f32 %v4847_v25, %v4831_v17 }
 0x50c   : > { %4427 = vmatpush3.bf16.msra.mxu0 %v6057_v29  ;;  %4428 = vmatprep.mubr.msk.bf16.mxu0 %vm5451_vm0, %v5450_v45  ;;  %v1556_v61 = vpop.xlane.xlu0 %1555  ;;  %v1855_v4 = vpop.permute.xlu1 %1854 }
 0x50d   : > { %4438 = vmatprep.subr.bf16.mxu0 %v5450_v45  ;;  %4854 = vrcp.f32 %v1556_v61  ;;  %v1860_v27 = vsel %vm1298_vm1, %v1855_v4, 0 }
 0x50e   : > { %v4849_v57 = vpop.eup %4848 }
 0x50f   : > { %v1571_v59 = vmul.f32 %v4849_v57, %v4833_v34 }
 0x510   : > { %v1802_v37 = vpop.permute.xlu0 %1801 }
 0x511   : > { %v1577_v60 = vpack.c.bf16 %v1571_v59, %v1570_v58  ;;  %v1807_v3 = vsel %vm1298_vm1, %v1802_v37, 0 }
 0x512   : > { %v4851_v23 = vpop.eup %4850 }
 0x513   : > { %4423 = vmatmul.mubr.msk.bf16.vlgmr.msra.gmra.mxu1 %vm1487_vm2, %v1577_v60  ;;  %v1572_v63 = vmul.f32 %v4851_v23, %v4835_v36 }
 0x514   : > { %4433 = vmatpush3.bf16.msra.mxu1 %v6047_v56  ;;  %4434 = vmatprep.mubr.msk.bf16.mxu1 %vm5451_vm0, %v5450_v45  ;;  %v1908_v7 = vpop.permute.xlu0 %1907 }
 0x515   : > { %4444 = vmatprep.subr.bf16.mxu1 %v5450_v45  ;;  %v1913_v38 = vsel %vm1298_vm1, %v1908_v7, 0 }
 0x516   : > { %v4853_v62 = vpop.eup %4852 }
 0x517   : > { %v1573_v0 = vmul.f32 %v4853_v62, %v4837_v40 }
 0x518   : > { %v1905_v46 = vpop.permute.xlu0 %1904 }
 0x519   : > { %v1578_v2 = vpack.c.bf16 %v1573_v0, %v1572_v63 }
 0x51a   : > { %v4855_v9 = vpop.eup %4854 }
 0x51b   : > { %4429 = vmatmul.mubr.msk.bf16.vlgmr.msra.gmra.mxu0 %vm1487_vm2, %v1578_v2  ;;  %v1574_v15 = vmul.f32 %v4855_v9, %v6126_v42 }
 0x51c   : > { %4439 = vmatpush3.bf16.xpose.msra.mxu0 %v1807_v3  ;;  %4440 = vmatprep.mubr.msk.bf16.mxu0 %vm5451_vm0, %v5450_v45 }
 0x51d   : > { %4450 = vmatprep.subr.bf16.mxu0 %v5450_v45 }
 0x53d   : > { %v1559_v5 = vpop.xlane.xlu1 %1558 }
 0x53e   : > { %4856 = vrcp.f32 %v1559_v5 }
 0x541   : > { %v1799_v8 = vpop.permute.xlu1 %1798 }
 0x542   : > { %4441 = vmatmul.mubr.msk.bf16.vlgmr.msra.gmra.mxu0 %vm1298_vm1, %v1799_v8 }
 0x543   : > { %4451 = vmatpush3.bf16.xpose.msra.mxu0 %v1913_v38  ;;  %4452 = vmatprep.mubr.msk.bf16.mxu0 %vm5451_vm0, %v5450_v45 }
 0x544   : > { %4462 = vmatprep.subr.bf16.mxu0 %v5450_v45 }
 0x545   : > { %v1852_v21 = vpop.permute.xlu1 %1851 }
 0x549   : > { %v1961_v31 = vpop.permute.xlu1 %1960 }
 0x54a   : > { %4453 = vmatmul.mubr.msk.bf16.vlgmr.msra.gmra.mxu0 %vm1298_vm1, %v1905_v46  ;;  %v1966_v17 = vsel %vm1298_vm1, %v1961_v31, 0 }
 0x54b   : > { %v4857_v16 = vpop.eup %4856  ;;  %4464 = vmatprep.mubr.msk.bf16.mxu0 %vm5451_vm0, %v5450_v45 }
 0x54c   : > { %v1575_v18 = vmul.f32 %v4857_v16, %v6138_v49 }
 0x54d   : > { %v1958_v32 = vpop.permute.xlu1 %1957 }
 0x54e   : > { %v1579_v19 = vpack.c.bf16 %v1575_v18, %v1574_v15 }
 0x550   : > { %4435 = vmatmul.mubr.msk.bf16.vlgmr.msra.gmra.mxu1 %vm1487_vm2, %v1579_v19 }
 0x551   : > { %4445 = vmatpush3.bf16.xpose.msra.mxu1 %v1860_v27  ;;  %4446 = vmatprep.mubr.msk.bf16.mxu1 %vm5451_vm0, %v5450_v45 }
 0x552   : > { %4456 = vmatprep.subr.bf16.mxu1 %v5450_v45 }
 0x558   : > { %4447 = vmatmul.mubr.msk.bf16.vlgmr.msra.gmra.mxu1 %vm1298_vm1, %v1852_v21 }
 0x559   : > { %4457 = vmatpush3.bf16.xpose.msra.mxu1 %v1966_v17  ;;  %4458 = vmatprep.mubr.msk.bf16.mxu1 %vm5451_vm0, %v5450_v45 }
 0x55a   : > { %4468 = vmatprep.subr.bf16.mxu1 %v5450_v45 }
 0x560   : > { %4459 = vmatmul.mubr.msk.bf16.vlgmr.msra.gmra.mxu1 %vm1298_vm1, %v1958_v32 }
 0x561   : > { %4470 = vmatprep.mubr.msk.bf16.mxu1 %vm5451_vm0, %v5450_v45 }
 0x5cb   : > { %v1617_v33 = vpop.f32.mrf.mxu0 }
 0x5cc   : > { %v4213_v34 = vpack.c.bf16 %v1617_v33, %v1617_v33 }
 0x5cd   : > { %v4418_v35 = vpop.f32.mrf.mxu0 }
 0x5ce   : > { %1789 = vst.msk [vmem:[#allocation2] sm:$0xf] %vm1788_vm3, %v4213_v34 }
 0x5cf   : > { %v1620_v36 = vpop.f32.mrf.mxu0 }
 0x5d0   : > { %v4214_v39 = vpack.c.bf16 %v1620_v36, %v1620_v36 }
 0x5d1   : > { %v4419_v40 = vpop.f32.mrf.mxu0 }
 0x5d2   : > { %1790 = vst.msk [vmem:[#allocation2 + $0x4] sm:$0xf] %vm1788_vm3, %v4214_v39 }
 0x5d3   : > { %v1661_v41 = vpop.f32.mrf.mxu1 }
 0x5d4   : > { %v4215_v42 = vpack.c.bf16 %v1661_v41, %v1661_v41 }
 0x5d5   : > { %v4424_v43 = vpop.f32.mrf.mxu1 }
 0x5d6   : > { %1791 = vst.msk [vmem:[#allocation2 + $0x8] sm:$0xf] %vm1788_vm3, %v4215_v42 }
 0x5d7   : > { %v1664_v44 = vpop.f32.mrf.mxu1 }
 0x5d8   : > { %v4216_v47 = vpack.c.bf16 %v1664_v44, %v1664_v44 }
 0x5d9   : > { %v4425_v48 = vpop.f32.mrf.mxu1 }
 0x5da   : > { %1792 = vst.msk [vmem:[#allocation2 + $0xc] sm:$0xf] %vm1788_vm3, %v4216_v47 }
 0x5db   : > { %v1705_v49 = vpop.f32.mrf.mxu0 }
 0x5dc   : > { %v4217_v50 = vpack.c.bf16 %v1705_v49, %v1705_v49 }
 0x5dd   : > { %v4430_v28 = vpop.f32.mrf.mxu0 }
 0x5de   : > { %1793 = vst.msk [vmem:[#allocation2 + $0x10] sm:$0xf] %vm1788_vm3, %v4217_v50 }
 0x5df   : > { %v1708_v53 = vpop.f32.mrf.mxu0 }
 0x5e0   : > { %v4218_v30 = vpack.c.bf16 %v1708_v53, %v1708_v53 }
 0x5e1   : > { %v4431_v12 = vpop.f32.mrf.mxu0 }
 0x5e2   : > { %1794 = vst.msk [vmem:[#allocation2 + $0x14] sm:$0xf] %vm1788_vm3, %v4218_v30 }
 0x602   : > { %v1843_v51 = vpop.f32.mrf.mxu0 }
 0x603   : > { %v2009_v54 = vsel %vm1487_vm2, %v1843_v51, -inf }
 0x604   : > { %2010 = vmax.xlane.f32.xlu0 %v2009_v54  ;;  %v4442_v52 = vpop.f32.mrf.mxu0 }
 0x606   : > { %v1846_v55 = vpop.f32.mrf.mxu0 }
 0x607   : > { %v2012_v1 = vsel %vm1487_vm2, %v1846_v55, -inf }
 0x608   : > { %2013 = vmax.xlane.f32.xlu1 %v2012_v1  ;;  %v4443_v22 = vpop.f32.mrf.mxu0 }
 0x60a   : > { %v1949_v13 = vpop.f32.mrf.mxu0 }
 0x60b   : > { %v2021_v38 = vsel %vm1487_vm2, %v1949_v13, -inf }
 0x60c   : > { %v4454_v25 = vpop.f32.mrf.mxu0 }
 0x60e   : > { %v1952_v57 = vpop.f32.mrf.mxu0 }
 0x60f   : > { %v2024_v58 = vsel %vm1487_vm2, %v1952_v57, -inf }
 0x610   : > { %2025 = vmax.xlane.f32.xlu1 %v2024_v58  ;;  %v1749_v59 = vpop.f32.mrf.mxu1  ;;  %v4455_v60 = vpop.f32.mrf.mxu0 }
 0x611   : > { %v4219_v61 = vpack.c.bf16 %v1749_v59, %v1749_v59 }
 0x612   : > { %v4436_v23 = vpop.f32.mrf.mxu1 }
 0x613   : > { %1795 = vst.msk [vmem:[#allocation2 + $0x18] sm:$0xf] %vm1788_vm3, %v4219_v61 }
 0x614   : > { %v1752_v62 = vpop.f32.mrf.mxu1 }
 0x615   : > { %v4220_v63 = vpack.c.bf16 %v1752_v62, %v1752_v62 }
 0x616   : > { %v4437_v0 = vpop.f32.mrf.mxu1 }
 0x617   : > { %1796 = vst.msk [vmem:[#allocation2 + $0x1c] sm:$0xf] %vm1788_vm3, %v4220_v63 }
 0x618   : > { %v1896_v37 = vpop.f32.mrf.mxu1 }
 0x619   : > { %v2015_v2 = vsel %vm1487_vm2, %v1896_v37, -inf }
 0x61a   : > { %2016 = vmax.xlane.f32.xlu0 %v2015_v2  ;;  %v4448_v3 = vpop.f32.mrf.mxu1 }
 0x61c   : > { %v1899_v4 = vpop.f32.mrf.mxu1 }
 0x61d   : > { %v2018_v5 = vsel %vm1487_vm2, %v1899_v4, -inf }
 0x61e   : > { %2019 = vmax.xlane.f32.xlu0 %v2018_v5  ;;  %v4449_v7 = vpop.f32.mrf.mxu1 }
 0x620   : > { %v2002_v8 = vpop.f32.mrf.mxu1 }
 0x621   : > { %v2027_v16 = vsel %vm1487_vm2, %v2002_v8, -inf }
 0x622   : > { %2022 = vmax.xlane.f32.xlu0 %v2021_v38  ;;  %v4460_v9 = vpop.f32.mrf.mxu1 }
 0x624   : > { %v2005_v46 = vpop.f32.mrf.mxu1 }
 0x625   : > { %v2030_v15 = vsel %vm1487_vm2, %v2005_v46, -inf }
 0x626   : > { %2028 = vmax.xlane.f32.xlu0 %v2027_v16  ;;  %2031 = vmax.xlane.f32.xlu1 %v2030_v15  ;;  %v4461_v18 = vpop.f32.mrf.mxu1 }
 0x68d   : > { %v2011_v19 = vpop.xlane.xlu0 %2010 }
 0x68e   : > { %v2033_v21 = vsub.f32 %v1843_v51, %v2011_v19 }
 0x690   : > { %v2041_v27 = vmul.f32 1.442695, %v2033_v21 }
 0x691   : > { %v2014_v31 = vpop.xlane.xlu1 %2013 }
 0x692   : > { %4858 = vpow2.f32 %v2041_v27  ;;  %v2034_v17 = vsub.f32 %v1846_v55, %v2014_v31 }
 0x694   : > { %v2043_v32 = vmul.f32 1.442695, %v2034_v17 }
 0x696   : > { %4860 = vpow2.f32 %v2043_v32 }
 0x699   : > { %v2026_v36 = vpop.xlane.xlu1 %2025 }
 0x69a   : > { %v2038_v42 = vsub.f32 %v1952_v57, %v2026_v36 }
 0x69c   : > { %v2051_v48 = vmul.f32 1.442695, %v2038_v42 }
 0x69f   : > { %v6204_v33 = vpop.eup %4858 }
 0x6a0   : > { %v2057_v34 = vsel %vm1487_vm2, %v6204_v33, 0.0 }
 0x6a1   : > { %2058 = vadd.xlane.f32.xlu0 %v2057_v34 }
 0x6a3   : > { %v6208_v35 = vpop.eup %4860  ;;  %v2017_v39 = vpop.xlane.xlu0 %2016 }
 0x6a4   : > { %v2035_v40 = vsub.f32 %v1896_v37, %v2017_v39  ;;  %v2060_v41 = vsel %vm1487_vm2, %v6208_v35, 0.0 }
 0x6a5   : > { %2061 = vadd.xlane.f32.xlu1 %v2060_v41 }
 0x6a6   : > { %v2045_v43 = vmul.f32 1.442695, %v2035_v40 }
 0x6a7   : > { %v2020_v44 = vpop.xlane.xlu0 %2019 }
 0x6a8   : > { %4862 = vpow2.f32 %v2045_v43  ;;  %v2036_v47 = vsub.f32 %v1899_v4, %v2020_v44  ;;  %v4719_v43 = vld [vmem:[%s5857_s26 + $0x30] sm:$0xff]   ;;  %v4720_v44 = vld [vmem:[%s5857_s26 + $0x28] sm:$0xff]  }
 0x6aa   : > { %v2047_v49 = vmul.f32 1.442695, %v2036_v47  ;;  %v4721_v47 = vld [vmem:[%s5857_s26 + $0x20] sm:$0xff]  }
 0x6ab   : > { %v2023_v50 = vpop.xlane.xlu0 %2022 }
 0x6ac   : > { %4864 = vpow2.f32 %v2047_v49  ;;  %v2037_v28 = vsub.f32 %v1949_v13, %v2023_v50  ;;  %v4723_v49 = vld [vmem:[%s5857_s26 + $0x10] sm:$0xff]   ;;  %v4724_v50 = vld [vmem:[%s5857_s26 + $0x8] sm:$0xff]  }
 0x6ad   : > { %4866 = vpow2.f32 %v2051_v48  ;;  %v4722_v48 = vld [vmem:[%s5857_s26 + $0x18] sm:$0xff]  }
 0x6ae   : > { %v2049_v53 = vmul.f32 1.442695, %v2037_v28 }
 0x6af   : > { %v2029_v30 = vpop.xlane.xlu0 %2028  ;;  %v2032_v60 = vpop.xlane.xlu1 %2031 }
 0x6b0   : > { %4868 = vpow2.f32 %v2049_v53  ;;  %v2039_v12 = vsub.f32 %v2002_v8, %v2029_v30  ;;  %v2040_v61 = vsub.f32 %v2005_v46, %v2032_v60 }
 0x6b2   : > { %v2053_v51 = vmul.f32 1.442695, %v2039_v12  ;;  %v2055_v23 = vmul.f32 1.442695, %v2040_v61  ;;  %v4725_v12 = vld [vmem:[%s5857_s26] sm:$0xff]  }
 0x6b4   : > { %4870 = vpow2.f32 %v2053_v51 }
 0x6b5   : > { %v4863_v54 = vpop.eup %4862  ;;  %4872 = vpow2.f32 %v2055_v23 }
 0x6b6   : > { %v2063_v52 = vsel %vm1487_vm2, %v4863_v54, 0.0 }
 0x6b7   : > { %2064 = vadd.xlane.f32.xlu0 %v2063_v52 }
 0x6b9   : > { %v4865_v55 = vpop.eup %4864 }
 0x6ba   : > { %v2066_v1 = vsel %vm1487_vm2, %v4865_v55, 0.0  ;;  %v4867_v22 = vpop.eup %4866 }
 0x6bb   : > { %2067 = vadd.xlane.f32.xlu1 %v2066_v1  ;;  %v2072_v13 = vsel %vm1487_vm2, %v4867_v22, 0.0 }
 0x6bd   : > { %v4869_v25 = vpop.eup %4868 }
 0x6be   : > { %v2069_v57 = vsel %vm1487_vm2, %v4869_v25, 0.0 }
 0x6bf   : > { %2070 = vadd.xlane.f32.xlu0 %v2069_v57  ;;  %2073 = vadd.xlane.f32.xlu1 %v2072_v13 }
 0x6c1   : > { %v4871_v58 = vpop.eup %4870 }
 0x6c2   : > { %v2075_v59 = vsel %vm1487_vm2, %v4871_v58, 0.0  ;;  %v4873_v62 = vpop.eup %4872 }
 0x6c3   : > { %2076 = vadd.xlane.f32.xlu0 %v2075_v59  ;;  %v2078_v63 = vsel %vm1487_vm2, %v4873_v62, 0.0 }
 0x6d0   : > { %2150 = vrot.lane.b32.xlu1 %v6104_v26, %s5452_s11 }
 0x6d4   : > { %2198 = vrot.lane.b32.xlu1 %v6057_v29, %s5452_s11 }
 0x6d9   : > { %2102 = vrot.lane.b32.xlu0 %v6085_v14, %s5452_s11 }
 0x6f8   : > { %2079 = vadd.xlane.f32.xlu1 %v2078_v63 }
 0x709   : > { %2246 = vrot.lane.b32.xlu1 %v6047_v56, %s5452_s11 }
 0x72a   : > { %v2059_v37 = vpop.xlane.xlu0 %2058 }
 0x72e   : > { %v2062_v0 = vpop.xlane.xlu1 %2061 }
 0x72f   : > { %4874 = vrcp.f32 %v2062_v0 }
 0x730   : > { %4876 = vrcp.f32 %v2059_v37 }
 0x73c   : > { %v4875_v3 = vpop.eup %4874 }
 0x73d   : > { %v4877_v7 = vpop.eup %4876  ;;  %v2090_v8 = vmul.f32 %v4875_v3, %v6208_v35 }
 0x73e   : > { %v2089_v9 = vmul.f32 %v4877_v7, %v6204_v33 }
 0x740   : > { %v2065_v26 = vpop.xlane.xlu0 %2064  ;;  %v2097_v16 = vpack.c.bf16 %v2090_v8, %v2089_v9 }
 0x741   : > { %4878 = vrcp.f32 %v2065_v26 }
 0x744   : > { %v2068_v29 = vpop.xlane.xlu1 %2067 }
 0x745   : > { %4880 = vrcp.f32 %v2068_v29 }
 0x748   : > { %v2071_v14 = vpop.xlane.xlu0 %2070  ;;  %v2074_v2 = vpop.xlane.xlu1 %2073 }
 0x749   : > { %4882 = vrcp.f32 %v2071_v14 }
 0x74a   : > { %4884 = vrcp.f32 %v2074_v2 }
 0x74c   : > { %v2077_v4 = vpop.xlane.xlu0 %2076  ;;  %v2151_v5 = vpop.permute.xlu1 %2150 }
 0x74d   : > { %4469 = vmatpush3.bf16.msra.mxu1 %v2151_v5  ;;  %4886 = vrcp.f32 %v2077_v4 }
 0x74e   : > { %4480 = vmatprep.subr.bf16.mxu1 %v5450_v45  ;;  %v4879_v56 = vpop.eup %4878 }
 0x74f   : > { %v2091_v15 = vmul.f32 %v4879_v56, %v4863_v54 }
 0x750   : > { %v2103_v38 = vpop.permute.xlu0 %2102  ;;  %v2199_v19 = vpop.permute.xlu1 %2198 }
 0x751   : > { %4463 = vmatpush3.bf16.msra.mxu0 %v2103_v38 }
 0x752   : > { %v4881_v46 = vpop.eup %4880  ;;  %4474 = vmatprep.subr.bf16.mxu0 %v5450_v45 }
 0x753   : > { %v2092_v18 = vmul.f32 %v4881_v46, %v4865_v55 }
 0x754   : > { %4465 = vmatmul.mubr.msk.bf16.vlgmr.msra.gmra.mxu0 %vm1487_vm2, %v2097_v16 }
 0x755   : > { %4475 = vmatpush3.bf16.msra.mxu0 %v2199_v19  ;;  %v2098_v21 = vpack.c.bf16 %v2092_v18, %v2091_v15  ;;  %4476 = vmatprep.mubr.msk.bf16.mxu0 %vm5451_vm0, %v5450_v45  ;;  %v4092_v18 = vld [vmem:[%s810_s15] ss:$0 sm:$0xff]  ;;  %v5034_v19 = vld [vmem:[%s5900_s19] sm:$0xff] }
 0x756   : > { %v4883_v27 = vpop.eup %4882 }
 0x757   : > { %v4885_v31 = vpop.eup %4884  ;;  %4471 = vmatmul.mubr.msk.bf16.vlgmr.msra.gmra.mxu1 %vm1487_vm2, %v2098_v21  ;;  %v2093_v17 = vmul.f32 %v4883_v27, %v4869_v25  ;;  %v2357_v21 = vadd.f32 %v5034_v19, %v4092_v18  ;;  %v4745_v19 = vld [vmem:[%s5866_s24 + $0xa8] ss:$16 sps:$4 sm:$0xff]  }
 0x758   : > { %v2094_v32 = vmul.f32 %v4885_v31, %v4867_v22  ;;  %4482 = vmatprep.mubr.msk.bf16.mxu1 %vm5451_vm0, %v5450_v45  ;;  %v4718_v45 = vld [vmem:[%s5857_s26 + $0x38] sm:$0xff]   ;;  %s6872_s26 = scalar_lea.vmem [#allocation14], %s5841_s6 }
 0x759   : > { %4486 = vmatprep.subr.bf16.mxu0 %v4718_v45 }
 0x75a   : > { %v2099_v33 = vpack.c.bf16 %v2094_v32, %v2093_v17  ;;  %v4887_v36 = vpop.eup %4886  ;;  %v5035_v17 = vld [vmem:[%s5900_s19 + $0x10] sm:$0xff] }
 0x75b   : > { %v2095_v40 = vmul.f32 %v4887_v36, %v4871_v58  ;;  %v2359_v32 = vadd.f32 %v5035_v17, %v4092_v18  ;;  %v4751_v17 = vld [vmem:[%s5866_s24 + $0x88] ss:$16 sps:$4 sm:$0xff]  }
 0x75c   : > { %4477 = vmatmul.mubr.msk.bf16.vlgmr.msra.gmra.mxu0 %vm1487_vm2, %v2099_v33 }
 0x75d   : > { %4487 = vmatpush3.bf16.msra.mxu0 %v4718_v45 }
 0x75e   : > { %4488 = vmatprep.subr.bf16.mxu0 %v4719_v43 }
 0x761   : > { %4489 = vmatpush3.bf16.msra.mxu0 %v4719_v43 }
 0x762   : > { %4490 = vmatprep.subr.bf16.mxu0 %v4720_v44 }
 0x765   : > { %4491 = vmatpush3.bf16.msra.mxu0 %v4720_v44  ;;  %v5038_v44 = vld [vmem:[%s5900_s19 + $0x20] sm:$0xff] }
 0x766   : > { %4492 = vmatprep.subr.bf16.mxu0 %v4721_v47 }
 0x769   : > { %4493 = vmatpush3.bf16.msra.mxu0 %v4721_v47  ;;  %v2361_v47 = vadd.f32 %v5038_v44, %v4092_v18  ;;  %v4763_v44 = vld [vmem:[%s5866_s24 + $0x48] ss:$16 sps:$4 sm:$0xff]  }
 0x76a   : > { %4494 = vmatprep.subr.bf16.mxu0 %v4722_v48 }
 0x76d   : > { %4495 = vmatpush3.bf16.msra.mxu0 %v4722_v48 }
 0x76e   : > { %4496 = vmatprep.subr.bf16.mxu0 %v4723_v49 }
 0x771   : > { %4497 = vmatpush3.bf16.msra.mxu0 %v4723_v49 }
 0x772   : > { %4498 = vmatprep.subr.bf16.mxu0 %v4724_v50 }
 0x775   : > { %4499 = vmatpush3.bf16.msra.mxu0 %v4724_v50  ;;  %v5039_v50 = vld [vmem:[%s5900_s19 + $0x30] sm:$0xff] }
 0x776   : > { %4500 = vmatprep.subr.bf16.mxu0 %v4725_v12 }
 0x779   : > { %4501 = vmatpush3.bf16.msra.mxu0 %v4725_v12 }
 0x781   : > { %v2080_v34 = vpop.xlane.xlu1 %2079 }
 0x782   : > { %4888 = vrcp.f32 %v2080_v34  ;;  %v5036_v34 = vld [vmem:[%s5900_s19 + $0x8] sm:$0xff] }
 0x785   : > { %v2247_v35 = vpop.permute.xlu1 %2246 }
 0x786   : > { %4481 = vmatpush3.bf16.msra.mxu1 %v2247_v35  ;;  %v2358_v35 = vadd.f32 %v5036_v34, %v4092_v18  ;;  %v4756_v34 = vld [vmem:[%s5866_s24 + $0x64] ss:$16 sps:$4 sm:$0xff]  }
 0x78f   : > { %v4889_v39 = vpop.eup %4888 }
 0x790   : > { %v2096_v41 = vmul.f32 %v4889_v39, %v4873_v62 }
 0x792   : > { %v2100_v42 = vpack.c.bf16 %v2096_v41, %v2095_v40  ;;  %v5037_v41 = vld [vmem:[%s5900_s19 + $0x18] sm:$0xff] }
 0x794   : > { %4483 = vmatmul.mubr.msk.bf16.vlgmr.msra.gmra.mxu1 %vm1487_vm2, %v2100_v42  ;;  %v2360_v42 = vadd.f32 %v5037_v41, %v4092_v18  ;;  %v4765_v41 = vld [vmem:[%s5866_s24 + $0x4c] ss:$16 sps:$4 sm:$0xff]  }
 0x795   : > { %2902 = vmatprep.mubr.bf16.mxu1 %v5449_v6 }
 0x814   : > { %v2142_v28 = vpop.f32.mrf.mxu0 }
 0x815   : > { %v4221_v53 = vpack.c.bf16 %v2142_v28, %v2142_v28  ;;  %v2363_v28 = vadd.f32 %v5039_v50, %v4092_v18  ;;  %v4769_v50 = vld [vmem:[%s5866_s24 + $0x28] ss:$16 sps:$4 sm:$0xff]  }
 0x816   : > { %v4466_v30 = vpop.f32.mrf.mxu0 }
 0x817   : > { %2317 = vrot.lane.b32.xlu0 %v4221_v53, %s5452_s11  ;;  %v2190_v51 = vpop.f32.mrf.mxu1  ;;  %v5040_v30 = vld [vmem:[%s5900_s19 + $0x28] sm:$0xff] }
 0x818   : > { %v4223_v54 = vpack.c.bf16 %v2190_v51, %v2190_v51  ;;  %v2145_v52 = vpop.f32.mrf.mxu0  ;;  %v2362_v12 = vadd.f32 %v5040_v30, %v4092_v18  ;;  %v4777_v30 = vld [vmem:[%s5866_s24 + $0xc] ss:$16 sps:$4 sm:$0xff]  }
 0x819   : > { %v4222_v55 = vpack.c.bf16 %v2145_v52, %v2145_v52  ;;  %v4472_v1 = vpop.f32.mrf.mxu1 }
 0x81a   : > { %v4467_v22 = vpop.f32.mrf.mxu0 }
 0x81b   : > { %2319 = vrot.lane.b32.xlu1 %v4222_v55, %s5452_s11  ;;  %2321 = vrot.lane.b32.xlu0 %v4223_v54, %s5452_s11  ;;  %v2193_v25 = vpop.f32.mrf.mxu1  ;;  %v5041_v55 = vld [vmem:[%s5900_s19 + $0x38] sm:$0xff] }
 0x81c   : > { %v4224_v57 = vpack.c.bf16 %v2193_v25, %v2193_v25  ;;  %v2238_v13 = vpop.f32.mrf.mxu0  ;;  %v2364_v1 = vadd.f32 %v5041_v55, %v4092_v18  ;;  %v4742_v18 = vld [vmem:[%s5866_s24 + $0xa0] ss:$16 sps:$4 sm:$0xff]  }
 0x81d   : > { %v4225_v58 = vpack.c.bf16 %v2238_v13, %v2238_v13  ;;  %v4473_v59 = vpop.f32.mrf.mxu1  ;;  %v4732_v13 = vld [vmem:[%s5866_s24 + $0xe4] ss:$16 sps:$4 sm:$0xff]  }
 0x81e   : > { %v4478_v60 = vpop.f32.mrf.mxu0  ;;  %v4735_v59 = vld [vmem:[%s5866_s24 + $0xec] ss:$16 sps:$4 sm:$0xff]   ;;  %2870 = vmatprep.subr.bf16.mxu1 %v4732_v13 }
 0x81f   : > { %2325 = vrot.lane.b32.xlu0 %v4225_v58, %s5452_s11  ;;  %2323 = vrot.lane.b32.xlu1 %v4224_v57, %s5452_s11  ;;  %v4730_v57 = vld [vmem:[%s5866_s24 + $0xe0] ss:$16 sps:$4 sm:$0xff]   ;;  %v4733_v58 = vld [vmem:[%s5866_s24 + $0xe8] ss:$16 sps:$4 sm:$0xff]  }
 0x820   : > { %v2241_v61 = vpop.f32.mrf.mxu0  ;;  %2943 = vmatprep.subr.bf16.mxu0 %v4735_v59  ;;  %2871 = vmatpush1.bf16.msra.mxu1 %v4730_v57 }
 0x821   : > { %v4226_v23 = vpack.c.bf16 %v2241_v61, %v2241_v61 }
 0x822   : > { %v4479_v62 = vpop.f32.mrf.mxu0 }
 0x823   : > { %2327 = vrot.lane.b32.xlu1 %v4226_v23, %s5452_s11 }
 0x854   : > { %v2286_v63 = vpop.f32.mrf.mxu1 }
 0x855   : > { %v4227_v0 = vpack.c.bf16 %v2286_v63, %v2286_v63 }
 0x856   : > { %v4484_v37 = vpop.f32.mrf.mxu1 }
 0x857   : > { %2329 = vrot.lane.b32.xlu0 %v4227_v0, %s5452_s11 }
 0x858   : > { %v2289_v26 = vpop.f32.mrf.mxu1 }
 0x859   : > { %v4228_v29 = vpack.c.bf16 %v2289_v26, %v2289_v26 }
 0x85a   : > { %v4485_v14 = vpop.f32.mrf.mxu1 }
 0x85b   : > { %2331 = vrot.lane.b32.xlu1 %v4228_v29, %s5452_s11 }
 0x889   : > { %v2318_v2 = vpop.permute.xlu0 %2317 }
 0x88a   : > { %2342 = vst.msk [vmem:[#allocation2] sm:$0xf] %vm2341_vm4, %v2318_v2 }
 0x88d   : > { %v2320_v3 = vpop.permute.xlu1 %2319  ;;  %v2322_v4 = vpop.permute.xlu0 %2321 }
 0x88e   : > { %2343 = vst.msk [vmem:[#allocation2 + $0x4] sm:$0xf] %vm2341_vm4, %v2320_v3  ;;  %2344 = vst.msk [vmem:[#allocation2 + $0x8] sm:$0xf] %vm2341_vm4, %v2322_v4 }
 0x891   : > { %v2326_v5 = vpop.permute.xlu0 %2325  ;;  %v2324_v7 = vpop.permute.xlu1 %2323 }
 0x892   : > { %2346 = vst.msk [vmem:[#allocation2 + $0x10] sm:$0xf] %vm2341_vm4, %v2326_v5  ;;  %2345 = vst.msk [vmem:[#allocation2 + $0xc] sm:$0xf] %vm2341_vm4, %v2324_v7 }
 0x895   : > { %v2328_v8 = vpop.permute.xlu1 %2327  ;;  %v4726_v56 = vld [vmem:[#allocation2] sm:$0xff]  }
 0x896   : > { %2347 = vst.msk [vmem:[#allocation2 + $0x14] sm:$0xf] %vm2341_vm4, %v2328_v8  ;;  %4502 = vmatprep.mubr.bf16.mxu0 %v4726_v56  ;;  %v4738_v56 = vld [vmem:[%s5866_s24 + $0xc4] ss:$16 sps:$4 sm:$0xff]  }
 0x897   : > { %2872 = vmatprep.subr.bf16.mxu1 %v4738_v56 }
 0x899   : > { %v4727_v38 = vld [vmem:[#allocation2 + $0x8] sm:$0xff]  }
 0x89a   : > { %4503 = vmatmul.mubr.bf16.vlgmr.msra.gmra.mxu0 %v4727_v38  ;;  %v4741_v38 = vld [vmem:[%s5866_s24 + $0xcc] ss:$16 sps:$4 sm:$0xff]  }
 0x89b   : > { %2944 = vmatpush1.bf16.msra.mxu0 %v4733_v58 }
 0x89c   : > { %2945 = vmatprep.subr.bf16.mxu0 %v4741_v38 }
 0x89d   : > { %v4728_v9 = vld [vmem:[#allocation2 + $0x10] sm:$0xff]  }
 0x89e   : > { %4506 = vmatprep.mubr.bf16.mxu0 %v4728_v9  ;;  %v4736_v9 = vld [vmem:[%s5866_s24 + $0xc0] ss:$16 sps:$4 sm:$0xff]  }
 0x89f   : > { %2873 = vmatpush1.bf16.msra.mxu1 %v4736_v9 }
 0x8c9   : > { %v2330_v46 = vpop.permute.xlu0 %2329 }
 0x8ca   : > { %2348 = vst.msk [vmem:[#allocation2 + $0x18] sm:$0xf] %vm2341_vm4, %v2330_v46  ;;  %v4739_v46 = vld [vmem:[%s5866_s24 + $0xc8] ss:$16 sps:$4 sm:$0xff]  }
 0x8cb   : > { %2946 = vmatpush1.bf16.msra.mxu0 %v4739_v46 }
 0x8cd   : > { %v2332_v16 = vpop.permute.xlu1 %2331 }
 0x8ce   : > { %2349 = vst.msk [vmem:[#allocation2 + $0x1c] sm:$0xf] %vm2341_vm4, %v2332_v16  ;;  %v4744_v16 = vld [vmem:[%s5866_s24 + $0xa4] ss:$16 sps:$4 sm:$0xff]  }
 0x8cf   : > { %2874 = vmatprep.subr.bf16.mxu1 %v4744_v16 }
 0x8d0   : > { %2875 = vmatpush1.bf16.msra.mxu1 %v4742_v18 }
 0x8d5   : > { %v4729_v15 = vld [vmem:[#allocation2 + $0x18] sm:$0xff]  }
 0x8d6   : > { %4507 = vmatmul.mubr.bf16.gmra.mxu0 %v4729_v15  ;;  %v4747_v15 = vld [vmem:[%s5866_s24 + $0xac] ss:$16 sps:$4 sm:$0xff]  }
 0x8d7   : > { %2975 = vmatprep.mubr.bf16.mxu0 %v5449_v6  ;;  %2947 = vmatprep.subr.bf16.mxu0 %v4747_v15 }
 0x8d8   : > { %2948 = vmatpush1.bf16.msra.mxu0 %v4745_v19 }
 0x95a   : > { %v4504_v27 = vpop.f32.mrf.mxu0 }
 0x95b   : > { %v6275_v40 = vadd.f32 %v4504_v27, %v2359_v32  ;;  %v4753_v27 = vld [vmem:[%s5866_s24 + $0x8c] ss:$16 sps:$4 sm:$0xff]   ;;  %v4754_v32 = vld [vmem:[%s5866_s24 + $0x60] ss:$16 sps:$4 sm:$0xff]  }
 0x95c   : > { %v2495_v31 = vpop.f32.mrf.mxu0  ;;  %2949 = vmatprep.subr.bf16.mxu0 %v4753_v27 }
 0x95d   : > { %v6271_v33 = vadd.f32 %v2495_v31, %v2357_v21  ;;  %v4750_v21 = vld [vmem:[%s5866_s24 + $0x84] ss:$16 sps:$4 sm:$0xff]   ;;  %v4748_v31 = vld [vmem:[%s5866_s24 + $0x80] ss:$16 sps:$4 sm:$0xff]   ;;  %2950 = vmatpush1.bf16.msra.mxu0 %v4751_v17  ;;  %v4105_v17 = vld [vmem:[%s6871_s9] ss:$0 sm:$0xff] }
 0x95e   : > { %v4505_v36 = vpop.f32.mrf.mxu0  ;;  %2876 = vmatprep.subr.bf16.mxu1 %v4750_v21 }
 0x95f   : > { %2536 = vadd.xlane.f32.xlu0 %v6271_v33  ;;  %v6282_v43 = vadd.f32 %v4505_v36, %v2360_v42  ;;  %2877 = vmatpush1.bf16.msra.mxu1 %v4748_v31  ;;  %v4759_v36 = vld [vmem:[%s5866_s24 + $0x6c] ss:$16 sps:$4 sm:$0xff]   ;;  %v4760_v42 = vld [vmem:[%s5866_s24 + $0x40] ss:$16 sps:$4 sm:$0xff]  }
 0x960   : > { %v2498_v39 = vpop.f32.mrf.mxu0  ;;  %2878 = vmatprep.subr.bf16.mxu1 %v4756_v34  ;;  %2951 = vmatprep.subr.bf16.mxu0 %v4759_v36 }
 0x961   : > { %v6278_v45 = vadd.f32 %v2498_v39, %v2358_v35  ;;  %v4757_v35 = vld [vmem:[%s5866_s24 + $0x68] ss:$16 sps:$4 sm:$0xff]   ;;  %v4762_v39 = vld [vmem:[%s5866_s24 + $0x44] ss:$16 sps:$4 sm:$0xff]  }
 0x962   : > { %2952 = vmatpush1.bf16.msra.mxu0 %v4757_v35 }
 0x963   : > { %2538 = vadd.xlane.f32.xlu1 %v6278_v45  ;;  %2540 = vadd.xlane.f32.xlu0 %v6275_v40 }
 0x964   : > { %2879 = vmatpush1.bf16.msra.mxu1 %v4754_v32  ;;  %2953 = vmatprep.subr.bf16.mxu0 %v4765_v41 }
 0x965   : > { %2880 = vmatprep.subr.bf16.mxu1 %v4762_v39  ;;  %v4106_v39 = vld [vmem:[%s6872_s26] ss:$0 sm:$0xff] }
 0x966   : > { %2954 = vmatpush1.bf16.msra.mxu0 %v4763_v44 }
 0x967   : > { %2542 = vadd.xlane.f32.xlu0 %v6282_v43 }
 0x968   : > { %2881 = vmatpush1.bf16.msra.mxu1 %v4760_v42 }
 0x996   : > { %v4508_v48 = vpop.f32.mrf.mxu0 }
 0x997   : > { %v6291_v52 = vadd.f32 %v4508_v48, %v2363_v28  ;;  %v4771_v48 = vld [vmem:[%s5866_s24 + $0x2c] ss:$16 sps:$4 sm:$0xff]   ;;  %v4774_v28 = vld [vmem:[%s5866_s24 + $0x4] ss:$16 sps:$4 sm:$0xff]  }
 0x998   : > { %v2511_v49 = vpop.f32.mrf.mxu0  ;;  %2955 = vmatprep.subr.bf16.mxu0 %v4771_v48 }
 0x999   : > { %v6287_v53 = vadd.f32 %v2511_v49, %v2361_v47  ;;  %v4768_v47 = vld [vmem:[%s5866_s24 + $0x24] ss:$16 sps:$4 sm:$0xff]   ;;  %v4766_v49 = vld [vmem:[%s5866_s24 + $0x20] ss:$16 sps:$4 sm:$0xff]   ;;  %2956 = vmatpush1.bf16.msra.mxu0 %v4769_v50 }
 0x99a   : > { %v4509_v51 = vpop.f32.mrf.mxu0  ;;  %2882 = vmatprep.subr.bf16.mxu1 %v4768_v47  ;;  %2957 = vmatprep.subr.bf16.mxu0 %v4777_v30 }
 0x99b   : > { %2544 = vadd.xlane.f32.xlu0 %v6287_v53  ;;  %v6298_v25 = vadd.f32 %v4509_v51, %v2364_v1  ;;  %2883 = vmatpush1.bf16.msra.mxu1 %v4766_v49  ;;  %v4775_v51 = vld [vmem:[%s5866_s24 + $0x8] ss:$16 sps:$4 sm:$0xff]  }
 0x99c   : > { %v2514_v54 = vpop.f32.mrf.mxu0  ;;  %2884 = vmatprep.subr.bf16.mxu1 %v4774_v28 }
 0x99d   : > { %v6294_v22 = vadd.f32 %v2514_v54, %v2362_v12  ;;  %v4772_v12 = vld [vmem:[%s5866_s24] ss:$16 sps:$4 sm:$0xff]   ;;  %2958 = vmatpush1.bf16.msra.mxu0 %v4775_v51  ;;  %s3719_s24 = sshll.u32 %s5900_s19, 4  ;;  %s6696_s24 = int_to_ptr.vmem [resolvable:$true] %s3719_s24 }
 0x99e   : > { %s5294_s15 = scalar_lea.vmem %s6696_s24, 1024  ;;  %p5301_p10 = scmp.lt.s32.totalorder %s6696_s24, %s5299_s3 }
 0x99f   : > { %2546 = vadd.xlane.f32.xlu1 %v6294_v22  ;;  %2548 = vadd.xlane.f32.xlu0 %v6291_v52  ;;  %p5295_p8 = scmp.ne.s32.totalorder %s6696_s24, %s5294_s15  ;;  %p5302_p0 = scmp.lt.s32.totalorder %s5300_s0, %s5294_s15 }
 0x9a0   : > { %2885 = vmatpush1.bf16.msra.mxu1 %v4772_v12 }
 0x9a1   : > { %p5296_p9 = pnand %p5295_p8, %p5729_p1  ;;  %p5303_p2 = por %p5302_p0, %p5301_p10 }
 0x9a3   : > { %2550 = vadd.xlane.f32.xlu1 %v6298_v25  ;;  %p5297_p12 = pneg %p5296_p9 }
 0x9a5   : > { %p5304_p5 = pnand %p5303_p2, %p5297_p12 }
 0x9e8   : > { %v2537_v60 = vpop.xlane.xlu0 %2536 }
 0x9e9   : > { %v2552_v61 = vmul.f32 0.0078125, %v2537_v60 }
 0x9eb   : > { %v6306_v23 = vsub.f32 %v6271_v33, %v2552_v61 }
 0x9ec   : > { %v2539_v62 = vpop.xlane.xlu1 %2538  ;;  %v2541_v63 = vpop.xlane.xlu0 %2540 }
 0x9ed   : > { %v2553_v0 = vmul.f32 0.0078125, %v2539_v62  ;;  %v2554_v37 = vmul.f32 0.0078125, %v2541_v63  ;;  %v2568_v26 = vmul.f32 %v6306_v23, %v6306_v23 }
 0x9ef   : > { %v6311_v29 = vsub.f32 %v6278_v45, %v2553_v0  ;;  %v6314_v14 = vsub.f32 %v6275_v40, %v2554_v37  ;;  %2576 = vadd.xlane.f32.xlu0 %v2568_v26 }
 0x9f0   : > { %v2543_v2 = vpop.xlane.xlu0 %2542 }
 0x9f1   : > { %v2555_v3 = vmul.f32 0.0078125, %v2543_v2  ;;  %v2569_v4 = vmul.f32 %v6311_v29, %v6311_v29  ;;  %v2570_v5 = vmul.f32 %v6314_v14, %v6314_v14 }
 0x9f3   : > { %v6321_v7 = vsub.f32 %v6282_v43, %v2555_v3  ;;  %2578 = vadd.xlane.f32.xlu1 %v2569_v4  ;;  %2580 = vadd.xlane.f32.xlu0 %v2570_v5 }
 0x9f5   : > { %v2571_v8 = vmul.f32 %v6321_v7, %v6321_v7 }
 0x9f7   : > { %2582 = vadd.xlane.f32.xlu1 %v2571_v8 }
 0xa24   : > { %v2545_v54 = vpop.xlane.xlu0 %2544 }
 0xa25   : > { %v2556_v55 = vmul.f32 0.0078125, %v2545_v54 }
 0xa27   : > { %v6354_v1 = vsub.f32 %v6287_v53, %v2556_v55 }
 0xa28   : > { %v2547_v57 = vpop.xlane.xlu1 %2546  ;;  %v2549_v13 = vpop.xlane.xlu0 %2548 }
 0xa29   : > { %v2557_v58 = vmul.f32 0.0078125, %v2547_v57  ;;  %v2558_v59 = vmul.f32 0.0078125, %v2549_v13  ;;  %v2572_v60 = vmul.f32 %v6354_v1, %v6354_v1 }
 0xa2b   : > { %v6359_v61 = vsub.f32 %v6294_v22, %v2557_v58  ;;  %v6362_v62 = vsub.f32 %v6291_v52, %v2558_v59  ;;  %2584 = vadd.xlane.f32.xlu0 %v2572_v60 }
 0xa2c   : > { %v2551_v63 = vpop.xlane.xlu1 %2550 }
 0xa2d   : > { %v2559_v0 = vmul.f32 0.0078125, %v2551_v63  ;;  %v2573_v37 = vmul.f32 %v6359_v61, %v6359_v61  ;;  %v2574_v26 = vmul.f32 %v6362_v62, %v6362_v62 }
 0xa2f   : > { %v6369_v2 = vsub.f32 %v6298_v25, %v2559_v0  ;;  %2586 = vadd.xlane.f32.xlu1 %v2573_v37  ;;  %2588 = vadd.xlane.f32.xlu0 %v2574_v26 }
 0xa31   : > { %v2575_v3 = vmul.f32 %v6369_v2, %v6369_v2 }
 0xa33   : > { %2590 = vadd.xlane.f32.xlu1 %v2575_v3 }
 0xa78   : > { %v2577_v4 = vpop.xlane.xlu0 %2576 }
 0xa79   : > { %v2592_v5 = vmul.f32 0.0078125, %v2577_v4 }
 0xa7b   : > { %v2600_v8 = vadd.f32 1e-05, %v2592_v5 }
 0xa7c   : > { %v2579_v56 = vpop.xlane.xlu1 %2578  ;;  %v2581_v38 = vpop.xlane.xlu0 %2580 }
 0xa7d   : > { %4890 = vrsqrt.f32 %v2600_v8  ;;  %v2593_v9 = vmul.f32 0.0078125, %v2579_v56  ;;  %v2594_v46 = vmul.f32 0.0078125, %v2581_v38 }
 0xa7f   : > { %v2601_v16 = vadd.f32 1e-05, %v2593_v9  ;;  %v2602_v15 = vadd.f32 1e-05, %v2594_v46 }
 0xa80   : > { %v2583_v18 = vpop.xlane.xlu1 %2582 }
 0xa81   : > { %4892 = vrsqrt.f32 %v2601_v16  ;;  %v2595_v19 = vmul.f32 0.0078125, %v2583_v18 }
 0xa82   : > { %4894 = vrsqrt.f32 %v2602_v15 }
 0xa83   : > { %v2603_v21 = vadd.f32 1e-05, %v2595_v19 }
 0xa85   : > { %4896 = vrsqrt.f32 %v2603_v21 }
 0xa8a   : > { %v4891_v27 = vpop.eup %4890 }
 0xa8b   : > { %v2616_v31 = vmul.f32 %v4891_v27, %v6306_v23  ;;  %v4779_v27 = vld [vmem:[%s5896_s29 + $0xf8] sm:$0xff]  }
 0xa8c   : > { %4326 = vmatprep.subr.bf16.mxu0 %v4779_v27 }
 0xa8d   : > { %v2630_v35 = vmul.f32 %v4105_v17, %v2616_v31  ;;  %v4780_v31 = vld [vmem:[%s5896_s29 + $0x38] sm:$0xff]  }
 0xa8e   : > { %v4893_v32 = vpop.eup %4892 }
 0xa8f   : > { %v2617_v34 = vmul.f32 %v4893_v32, %v6311_v29  ;;  %v4895_v36 = vpop.eup %4894  ;;  %v2644_v44 = vadd.f32 %v4106_v39, %v2630_v35  ;;  %v6400_v32 = vld [vmem:[%s5896_s29 + $0xf0] sm:$0xff]  }
 0xa90   : > { %v2618_v48 = vmul.f32 %v4895_v36, %v6314_v14  ;;  %v6404_v35 = vld [vmem:[%s5896_s29 + $0xb0] sm:$0xff]   ;;  %v4786_v36 = vld [vmem:[%s5896_s29 + $0x68] sm:$0xff]  }
 0xa91   : > { %v2631_v41 = vmul.f32 %v4105_v17, %v2617_v34  ;;  %v4784_v34 = vld [vmem:[%s5896_s29 + $0x30] sm:$0xff]  }
 0xa92   : > { %v4897_v42 = vpop.eup %4896  ;;  %v2632_v23 = vmul.f32 %v4105_v17, %v2618_v48  ;;  %v4792_v48 = vld [vmem:[%s5896_s29 + $0x20] sm:$0xff]  }
 0xa93   : > { %v2645_v47 = vadd.f32 %v4106_v39, %v2631_v41  ;;  %v2619_v49 = vmul.f32 %v4897_v42, %v6321_v7  ;;  %v4788_v41 = vld [vmem:[%s5896_s29 + $0x28] sm:$0xff]  }
 0xa94   : > { %v2646_v30 = vadd.f32 %v4106_v39, %v2632_v23  ;;  %v6414_v42 = vld [vmem:[%s5896_s29 + $0xa8] sm:$0xff]   ;;  %v4796_v23 = vld [vmem:[%s5896_s29 + $0x18] sm:$0xff]  }
 0xa95   : > { %v2652_v50 = vpack.c.bf16 %v2645_v47, %v2644_v44  ;;  %v2633_v28 = vmul.f32 %v4105_v17, %v2619_v49  ;;  %v4790_v44 = vld [vmem:[%s5896_s29 + $0x60] sm:$0xff]  }
 0xa96   : > { %v6420_v47 = vld [vmem:[%s5896_s29 + $0xe0] sm:$0xff]  }
 0xa97   : > { %2903 = vmatmul.mubr.bf16.vlgmr.msra.gmra.mxu1 %v2652_v50  ;;  %2976 = vmatmul.mubr.bf16.vlgmr.msra.gmra.mxu0 %v2652_v50  ;;  %v2647_v29 = vadd.f32 %v4106_v39, %v2633_v28  ;;  %v6424_v49 = vld [vmem:[%s5896_s29 + $0xa0] sm:$0xff]   ;;  %v4794_v50 = vld [vmem:[%s5896_s29 + $0x58] sm:$0xff]  }
 0xa98   : > { %2912 = vmatprep.mubr.bf16.mxu1 %v5449_v6  ;;  %2985 = vmatprep.mubr.bf16.mxu0 %v5449_v6  ;;  %v6430_v28 = vld [vmem:[%s5896_s29 + $0xd8] sm:$0xff]  }
 0xa99   : > { %v2653_v12 = vpack.c.bf16 %v2647_v29, %v2646_v30  ;;  %v6434_v29 = vld [vmem:[%s5896_s29 + $0x98] sm:$0xff]   ;;  %v4798_v30 = vld [vmem:[%s5896_s29 + $0x50] sm:$0xff]  }
 0xa9f   : > { %2913 = vmatmul.mubr.bf16.gmra.mxu1 %v2653_v12  ;;  %2986 = vmatmul.mubr.bf16.gmra.mxu0 %v2653_v12  ;;  %v6440_v12 = vld [vmem:[%s5896_s29 + $0xd0] sm:$0xff]  }
 0xaa0   : > { %2922 = vmatprep.mubr.bf16.mxu1 %v5449_v6  ;;  %2995 = vmatprep.mubr.bf16.mxu0 %v5449_v6 }
 0xab4   : > { %v2585_v14 = vpop.xlane.xlu0 %2584 }
 0xab5   : > { %v2596_v7 = vmul.f32 0.0078125, %v2585_v14  ;;  %v4800_v14 = vld [vmem:[%s5896_s29 + $0x10] sm:$0xff]  }
 0xab7   : > { %v2604_v51 = vadd.f32 1e-05, %v2596_v7  ;;  %v6444_v7 = vld [vmem:[%s5896_s29 + $0x90] sm:$0xff]  }
 0xab8   : > { %v2587_v54 = vpop.xlane.xlu1 %2586  ;;  %v2589_v55 = vpop.xlane.xlu0 %2588 }
 0xab9   : > { %4898 = vrsqrt.f32 %v2604_v51  ;;  %v2597_v57 = vmul.f32 0.0078125, %v2587_v54  ;;  %v2598_v13 = vmul.f32 0.0078125, %v2589_v55  ;;  %v4802_v51 = vld [vmem:[%s5896_s29 + $0x48] sm:$0xff]  }
 0xaba   : > { %v6450_v54 = vld [vmem:[%s5896_s29 + $0xc8] sm:$0xff]  }
 0xabb   : > { %v2605_v58 = vadd.f32 1e-05, %v2597_v57  ;;  %v2606_v59 = vadd.f32 1e-05, %v2598_v13  ;;  %v4804_v55 = vld [vmem:[%s5896_s29 + $0x8] sm:$0xff]   ;;  %v4806_v13 = vld [vmem:[%s5896_s29 + $0x40] sm:$0xff]  }
 0xabc   : > { %v2591_v60 = vpop.xlane.xlu1 %2590  ;;  %v6454_v57 = vld [vmem:[%s5896_s29 + $0x88] sm:$0xff]  }
 0xabd   : > { %4900 = vrsqrt.f32 %v2605_v58  ;;  %v2599_v63 = vmul.f32 0.0078125, %v2591_v60  ;;  %v6460_v58 = vld [vmem:[%s5896_s29 + $0xc0] sm:$0xff]  }
 0xabe   : > { %4902 = vrsqrt.f32 %v2606_v59  ;;  %v4808_v59 = vld [vmem:[%s5896_s29] sm:$0xff]  }
 0xabf   : > { %v2607_v0 = vadd.f32 1e-05, %v2599_v63  ;;  %v6464_v60 = vld [vmem:[%s5896_s29 + $0x80] sm:$0xff]   ;;  %v2688_v63 = vld [vmem:[%s5894_s16] sm:$0xf] }
 0xac1   : > { %4904 = vrsqrt.f32 %v2607_v0  ;;  %v2704_v0 = vsub.s32 3, %v6005_v10 }
 0xac6   : > { %v4899_v37 = vpop.eup %4898 }
 0xac7   : > { %v2620_v26 = vmul.f32 %v4899_v37, %v6354_v1  ;;  %v6472_v37 = vrot.slane %v2688_v63, %v1007_v20 }
 0xac9   : > { %v2634_v5 = vmul.f32 %v4105_v17, %v2620_v26  ;;  %v6476_v26 = vrot.slane %v2688_v63, %v1015_v24 }
 0xaca   : > { %v4901_v3 = vpop.eup %4900 }
 0xacb   : > { %v2621_v4 = vmul.f32 %v4901_v3, %v6359_v61  ;;  %v4903_v8 = vpop.eup %4902  ;;  %v2648_v9 = vadd.f32 %v4106_v39, %v2634_v5  ;;  %v6480_v3 = vrot.slane %v2688_v63, %v1011_v11 }
 0xacc   : > { %v2622_v16 = vmul.f32 %v4903_v8, %v6362_v62 }
 0xacd   : > { %v2635_v56 = vmul.f32 %v4105_v17, %v2621_v4  ;;  %v6482_v4 = vrot.slane %v2688_v63, %v2704_v0 }
 0xace   : > { %v4905_v38 = vpop.eup %4904  ;;  %v2636_v1 = vmul.f32 %v4105_v17, %v2622_v16 }
 0xacf   : > { %v2649_v46 = vadd.f32 %v4106_v39, %v2635_v56  ;;  %v2623_v15 = vmul.f32 %v4905_v38, %v6369_v2  ;;  %v4778_v2 = vld [vmem:[%s5896_s29 + $0x78] sm:$0xff]  }
 0xad0   : > { %v2650_v21 = vadd.f32 %v4106_v39, %v2636_v1  ;;  %4286 = vmatprep.subr.bf16.mxu1 %v4778_v2 }
 0xad1   : > { %v2654_v18 = vpack.c.bf16 %v2649_v46, %v2648_v9  ;;  %v2637_v19 = vmul.f32 %v4105_v17, %v2623_v15  ;;  %v6395_v17 = vld [vmem:[%s5896_s29 + $0xb8] sm:$0xff]   ;;  %4287 = vmatpush3.bf16.msra.mxu1 %v4780_v31 }
 0xad2   : > { %4327 = vmatpush3.bf16.msra.mxu0 %v6395_v17 }
 0xad3   : > { %2923 = vmatmul.mubr.bf16.gmra.mxu1 %v2654_v18  ;;  %2996 = vmatmul.mubr.bf16.gmra.mxu0 %v2654_v18  ;;  %v2651_v61 = vadd.f32 %v4106_v39, %v2637_v19  ;;  %v6410_v39 = vld [vmem:[%s5896_s29 + $0xe8] sm:$0xff]  }
 0xad4   : > { %2932 = vmatprep.mubr.bf16.mxu1 %v5449_v6  ;;  %3005 = vmatprep.mubr.bf16.mxu0 %v5449_v6  ;;  %v4782_v6 = vld [vmem:[%s5896_s29 + $0x70] sm:$0xff]  }
 0xad5   : > { %v2655_v62 = vpack.c.bf16 %v2651_v61, %v2650_v21  ;;  %4288 = vmatprep.subr.bf16.mxu1 %v4782_v6  ;;  %4328 = vmatprep.subr.bf16.mxu0 %v6400_v32 }
 0xad6   : > { %4289 = vmatpush3.bf16.msra.mxu1 %v4784_v34  ;;  %4329 = vmatpush3.bf16.msra.mxu0 %v6404_v35 }
 0xad7   : > { %4290 = vmatprep.subr.bf16.mxu1 %v4786_v36  ;;  %4330 = vmatprep.subr.bf16.mxu0 %v6410_v39 }
 0xada   : > { %4291 = vmatpush3.bf16.msra.mxu1 %v4788_v41  ;;  %4331 = vmatpush3.bf16.msra.mxu0 %v6414_v42 }
 0xadb   : > { %2933 = vmatmul.mubr.bf16.gmra.mxu1 %v2655_v62  ;;  %3006 = vmatmul.mubr.bf16.gmra.mxu0 %v2655_v62 }
 0xadc   : > { %4292 = vmatprep.subr.bf16.mxu1 %v4790_v44  ;;  %4332 = vmatprep.subr.bf16.mxu0 %v6420_v47 }
 0xade   : > { %4293 = vmatpush3.bf16.msra.mxu1 %v4792_v48  ;;  %4333 = vmatpush3.bf16.msra.mxu0 %v6424_v49 }
 0xadf   : > { %4294 = vmatprep.subr.bf16.mxu1 %v4794_v50  ;;  %4334 = vmatprep.subr.bf16.mxu0 %v6430_v28 }
 0xae2   : > { %4295 = vmatpush3.bf16.msra.mxu1 %v4796_v23  ;;  %4335 = vmatpush3.bf16.msra.mxu0 %v6434_v29 }
 0xae3   : > { %4296 = vmatprep.subr.bf16.mxu1 %v4798_v30  ;;  %4336 = vmatprep.subr.bf16.mxu0 %v6440_v12 }
 0xae6   : > { %4297 = vmatpush3.bf16.msra.mxu1 %v4800_v14  ;;  %4337 = vmatpush3.bf16.msra.mxu0 %v6444_v7 }
 0xae7   : > { %4298 = vmatprep.subr.bf16.mxu1 %v4802_v51  ;;  %4338 = vmatprep.subr.bf16.mxu0 %v6450_v54 }
 0xaea   : > { %4299 = vmatpush3.bf16.msra.mxu1 %v4804_v55  ;;  %4339 = vmatpush3.bf16.msra.mxu0 %v6454_v57 }
 0xaeb   : > { %4300 = vmatprep.subr.bf16.mxu1 %v4806_v13  ;;  %4340 = vmatprep.subr.bf16.mxu0 %v6460_v58 }
 0xaee   : > { %4301 = vmatpush3.bf16.msra.mxu1 %v4808_v59  ;;  %4341 = vmatpush3.bf16.msra.mxu0 %v6464_v60 }
 0xaef   : > { %4510 = vmatprep.subr.bf16.mxu1 %v4779_v27 }
 0xb57   : > { %v2904_v5 = vpop.f32.mrf.mxu1  ;;  %v2977_v8 = vpop.f32.mrf.mxu0 }
 0xb58   : > { %v6485_v56 = vadd.f32 %v2904_v5, %v6472_v37  ;;  %v6488_v38 = vadd.f32 %v2977_v8, %v6476_v26 }
 0xb59   : > { %v2906_v20 = vpop.f32.mrf.mxu1  ;;  %v2979_v9 = vpop.f32.mrf.mxu0 }
 0xb5a   : > { %v4139_v46 = vmul.f32 -1.702, %v6485_v56  ;;  %v4141_v24 = vmul.f32 -1.702, %v6488_v38  ;;  %v6493_v10 = vadd.f32 %v2906_v20, %v6480_v3  ;;  %v6496_v11 = vadd.f32 %v2979_v9, %v6482_v4 }
 0xb5b   : > { %v2908_v16 = vpop.f32.mrf.mxu1  ;;  %v2981_v15 = vpop.f32.mrf.mxu0 }
 0xb5c   : > { %v3080_v18 = vmul.f32 1.442695, %v4139_v46  ;;  %v3084_v19 = vmul.f32 1.442695, %v4141_v24  ;;  %v4140_v1 = vmul.f32 -1.702, %v6493_v10  ;;  %v6500_v61 = vadd.f32 %v2908_v16, %v6472_v37 }
 0xb5d   : > { %v4142_v21 = vmul.f32 -1.702, %v6496_v11  ;;  %v6504_v62 = vadd.f32 %v2981_v15, %v6476_v26  ;;  %v2910_v2 = vpop.f32.mrf.mxu1  ;;  %v2983_v27 = vpop.f32.mrf.mxu0 }
 0xb5e   : > { %4906 = vpow2.f32 %v3080_v18  ;;  %v3082_v31 = vmul.f32 1.442695, %v4140_v1  ;;  %v4143_v6 = vmul.f32 -1.702, %v6500_v61  ;;  %v6508_v34 = vadd.f32 %v2910_v2, %v6480_v3 }
 0xb5f   : > { %4908 = vpow2.f32 %v3084_v19  ;;  %v3086_v36 = vmul.f32 1.442695, %v4142_v21  ;;  %v4145_v41 = vmul.f32 -1.702, %v6504_v62  ;;  %v6512_v44 = vadd.f32 %v2983_v27, %v6482_v4  ;;  %v2914_v48 = vpop.f32.mrf.mxu1  ;;  %v2987_v50 = vpop.f32.mrf.mxu0 }
 0xb60   : > { %4910 = vpow2.f32 %v3082_v31  ;;  %v3088_v23 = vmul.f32 1.442695, %v4143_v6  ;;  %v4144_v30 = vmul.f32 -1.702, %v6508_v34  ;;  %v6516_v14 = vadd.f32 %v2914_v48, %v6472_v37 }
 0xb61   : > { %4912 = vpow2.f32 %v3086_v36  ;;  %v3092_v51 = vmul.f32 1.442695, %v4145_v41  ;;  %v4146_v55 = vmul.f32 -1.702, %v6512_v44  ;;  %v6520_v13 = vadd.f32 %v2987_v50, %v6476_v26  ;;  %v2916_v59 = vpop.f32.mrf.mxu1  ;;  %v2989_v63 = vpop.f32.mrf.mxu0 }
 0xb62   : > { %4914 = vpow2.f32 %v3088_v23  ;;  %v3090_v0 = vmul.f32 1.442695, %v4144_v30  ;;  %v4147_v5 = vmul.f32 -1.702, %v6516_v14  ;;  %v6524_v8 = vadd.f32 %v2916_v59, %v6480_v3 }
 0xb63   : > { %4916 = vpow2.f32 %v3092_v51  ;;  %v3094_v20 = vmul.f32 1.442695, %v4146_v55  ;;  %v4149_v9 = vmul.f32 -1.702, %v6520_v13  ;;  %v6528_v46 = vadd.f32 %v2989_v63, %v6482_v4  ;;  %v2918_v24 = vpop.f32.mrf.mxu1  ;;  %v2991_v16 = vpop.f32.mrf.mxu0 }
 0xb64   : > { %4918 = vpow2.f32 %v3090_v0  ;;  %v3096_v15 = vmul.f32 1.442695, %v4147_v5  ;;  %v4148_v18 = vmul.f32 -1.702, %v6524_v8  ;;  %v6532_v19 = vadd.f32 %v2918_v24, %v6472_v37 }
 0xb65   : > { %4920 = vpow2.f32 %v3094_v20  ;;  %v3100_v1 = vmul.f32 1.442695, %v4149_v9  ;;  %v4150_v21 = vmul.f32 -1.702, %v6528_v46  ;;  %v6536_v2 = vadd.f32 %v2991_v16, %v6476_v26  ;;  %v2920_v27 = vpop.f32.mrf.mxu1  ;;  %v2993_v31 = vpop.f32.mrf.mxu0 }
 0xb66   : > { %4922 = vpow2.f32 %v3096_v15  ;;  %v3098_v6 = vmul.f32 1.442695, %v4148_v18  ;;  %v4151_v36 = vmul.f32 -1.702, %v6532_v19  ;;  %v6540_v41 = vadd.f32 %v2920_v27, %v6480_v3 }
 0xb67   : > { %4924 = vpow2.f32 %v3100_v1  ;;  %v3102_v48 = vmul.f32 1.442695, %v4150_v21  ;;  %v4153_v50 = vmul.f32 -1.702, %v6536_v2  ;;  %v6544_v23 = vadd.f32 %v2993_v31, %v6482_v4 }
 0xb68   : > { %4926 = vpow2.f32 %v3098_v6  ;;  %v3104_v30 = vmul.f32 1.442695, %v4151_v36  ;;  %v4152_v51 = vmul.f32 -1.702, %v6540_v41 }
 0xb69   : > { %4928 = vpow2.f32 %v3102_v48  ;;  %v3108_v55 = vmul.f32 1.442695, %v4153_v50  ;;  %v4154_v59 = vmul.f32 -1.702, %v6544_v23 }
 0xb6a   : > { %4930 = vpow2.f32 %v3104_v30  ;;  %v3106_v63 = vmul.f32 1.442695, %v4152_v51 }
 0xb6b   : > { %v4907_v0 = vpop.eup %4906  ;;  %4932 = vpow2.f32 %v3108_v55  ;;  %v3110_v5 = vmul.f32 1.442695, %v4154_v59 }
 0xb6c   : > { %v4909_v20 = vpop.eup %4908  ;;  %v3144_v9 = vadd.f32 1.0, %v4907_v0  ;;  %4934 = vpow2.f32 %v3106_v63 }
 0xb6d   : > { %v4911_v24 = vpop.eup %4910  ;;  %v3146_v16 = vadd.f32 1.0, %v4909_v20  ;;  %4936 = vpow2.f32 %v3110_v5 }
 0xb6e   : > { %v4913_v15 = vpop.eup %4912  ;;  %4938 = vrcp.f32 %v3144_v9  ;;  %v3145_v18 = vadd.f32 1.0, %v4911_v24 }
 0xb6f   : > { %v4915_v1 = vpop.eup %4914  ;;  %4940 = vrcp.f32 %v3146_v16  ;;  %v3147_v21 = vadd.f32 1.0, %v4913_v15 }
 0xb70   : > { %v4917_v27 = vpop.eup %4916  ;;  %4942 = vrcp.f32 %v3145_v18  ;;  %v3148_v31 = vadd.f32 1.0, %v4915_v1 }
 0xb71   : > { %v4919_v6 = vpop.eup %4918  ;;  %4944 = vrcp.f32 %v3147_v21  ;;  %v3150_v36 = vadd.f32 1.0, %v4917_v27 }
 0xb72   : > { %v4921_v48 = vpop.eup %4920  ;;  %4946 = vrcp.f32 %v3148_v31  ;;  %v3149_v50 = vadd.f32 1.0, %v4919_v6 }
 0xb73   : > { %v4923_v30 = vpop.eup %4922  ;;  %4948 = vrcp.f32 %v3150_v36  ;;  %v3151_v51 = vadd.f32 1.0, %v4921_v48 }
 0xb74   : > { %v4925_v55 = vpop.eup %4924  ;;  %4950 = vrcp.f32 %v3149_v50  ;;  %v3152_v59 = vadd.f32 1.0, %v4923_v30 }
 0xb75   : > { %v4927_v63 = vpop.eup %4926  ;;  %4952 = vrcp.f32 %v3151_v51  ;;  %v3154_v0 = vadd.f32 1.0, %v4925_v55 }
 0xb76   : > { %v4929_v5 = vpop.eup %4928  ;;  %4954 = vrcp.f32 %v3152_v59  ;;  %v3153_v20 = vadd.f32 1.0, %v4927_v63 }
 0xb77   : > { %v4931_v9 = vpop.eup %4930  ;;  %4956 = vrcp.f32 %v3154_v0  ;;  %v3155_v24 = vadd.f32 1.0, %v4929_v5 }
 0xb78   : > { %v4933_v16 = vpop.eup %4932  ;;  %4958 = vrcp.f32 %v3153_v20  ;;  %v3156_v15 = vadd.f32 1.0, %v4931_v9 }
 0xb79   : > { %v4935_v18 = vpop.eup %4934  ;;  %4960 = vrcp.f32 %v3155_v24  ;;  %v3158_v1 = vadd.f32 1.0, %v4933_v16 }
 0xb7a   : > { %v4937_v21 = vpop.eup %4936  ;;  %4962 = vrcp.f32 %v3156_v15  ;;  %v3157_v27 = vadd.f32 1.0, %v4935_v18 }
 0xb7b   : > { %v4939_v31 = vpop.eup %4938  ;;  %4964 = vrcp.f32 %v3158_v1  ;;  %v3159_v6 = vadd.f32 1.0, %v4937_v21 }
 0xb7c   : > { %v4941_v36 = vpop.eup %4940  ;;  %4966 = vrcp.f32 %v3157_v27  ;;  %v3240_v24 = vmul.f32 %v4939_v31, %v6485_v56 }
 0xb7d   : > { %v4943_v48 = vpop.eup %4942  ;;  %4968 = vrcp.f32 %v3159_v6  ;;  %v3242_v1 = vmul.f32 %v4941_v36, %v6488_v38 }
 0xb7e   : > { %v4945_v50 = vpop.eup %4944  ;;  %v3241_v0 = vmul.f32 %v4943_v48, %v6493_v10 }
 0xb7f   : > { %v4947_v30 = vpop.eup %4946  ;;  %v3243_v16 = vmul.f32 %v4945_v50, %v6496_v11 }
 0xb80   : > { %v4949_v51 = vpop.eup %4948  ;;  %v3244_v59 = vmul.f32 %v4947_v30, %v6500_v61 }
 0xb81   : > { %v4951_v55 = vpop.eup %4950  ;;  %v3246_v5 = vmul.f32 %v4949_v51, %v6504_v62 }
 0xb82   : > { %v4953_v63 = vpop.eup %4952  ;;  %v3245_v20 = vmul.f32 %v4951_v55, %v6508_v34  ;;  %v3287_v61 = vpack.c.bf16 %v3244_v59, %v3240_v24 }
 0xb83   : > { %v4955_v9 = vpop.eup %4954  ;;  %v3247_v15 = vmul.f32 %v4953_v63, %v6512_v44  ;;  %v3289_v10 = vpack.c.bf16 %v3246_v5, %v3242_v1 }
 0xb84   : > { %v4957_v18 = vpop.eup %4956  ;;  %v3288_v21 = vpack.c.bf16 %v3245_v20, %v3241_v0  ;;  %v3248_v48 = vmul.f32 %v4955_v9, %v6516_v14 }
 0xb85   : > { %v4959_v27 = vpop.eup %4958  ;;  %v3290_v6 = vpack.c.bf16 %v3247_v15, %v3243_v16 }
 0xb86   : > { %v4961_v30 = vpop.eup %4960  ;;  %3591 = vmatprep.mubr.bf16.mxu1 %v3288_v21  ;;  %v3249_v44 = vmul.f32 %v4959_v27, %v6524_v8 }
 0xb87   : > { %v4963_v62 = vpop.eup %4962  ;;  %3656 = vmatprep.mubr.bf16.mxu0 %v3290_v6  ;;  %3592 = vmatmul.mubr.bf16.vlgmr.msra.gmra.mxu1 %v3287_v61  ;;  %v3251_v50 = vmul.f32 %v4961_v30, %v6528_v46 }
 0xb88   : > { %v4965_v34 = vpop.eup %4964  ;;  %3657 = vmatmul.mubr.bf16.vlgmr.msra.gmra.mxu0 %v3289_v10  ;;  %4518 = vmatpush3.bf16.msra.mxu1 %v6395_v17  ;;  %v3252_v11 = vmul.f32 %v4963_v62, %v6532_v19  ;;  %v3250_v17 = vmul.f32 %v4957_v18, %v6520_v13 }
 0xb89   : > { %v4967_v56 = vpop.eup %4966  ;;  %4511 = vmatprep.subr.bf16.mxu1 %v6400_v32  ;;  %v3254_v31 = vmul.f32 %v4965_v34, %v6536_v2 }
 0xb8a   : > { %v4969_v38 = vpop.eup %4968  ;;  %v3253_v36 = vmul.f32 %v4967_v56, %v6540_v41  ;;  %v3291_v32 = vpack.c.bf16 %v3252_v11, %v3248_v48 }
 0xb8b   : > { %v3255_v51 = vmul.f32 %v4969_v38, %v6544_v23  ;;  %v3293_v8 = vpack.c.bf16 %v3254_v31, %v3250_v17 }
 0xb8c   : > { %v3292_v55 = vpack.c.bf16 %v3253_v36, %v3249_v44  ;;  %4519 = vmatpush3.bf16.msra.mxu1 %v6404_v35 }
 0xb8d   : > { %v3294_v19 = vpack.c.bf16 %v3255_v51, %v3251_v50  ;;  %4512 = vmatprep.subr.bf16.mxu1 %v6410_v39 }
 0xb8e   : > { %3599 = vmatprep.mubr.bf16.mxu1 %v3292_v55 }
 0xb8f   : > { %3664 = vmatprep.mubr.bf16.mxu0 %v3294_v19  ;;  %3600 = vmatmul.mubr.bf16.gmra.mxu1 %v3291_v32 }
 0xb90   : > { %3665 = vmatmul.mubr.bf16.gmra.mxu0 %v3293_v8  ;;  %4520 = vmatpush3.bf16.msra.mxu1 %v6414_v42 }
 0xb91   : > { %4513 = vmatprep.subr.bf16.mxu1 %v6420_v47 }
 0xb93   : > { %v2924_v14 = vpop.f32.mrf.mxu1  ;;  %v2997_v46 = vpop.f32.mrf.mxu0 }
 0xb94   : > { %v6571_v13 = vadd.f32 %v2924_v14, %v6472_v37  ;;  %4521 = vmatpush3.bf16.msra.mxu1 %v6424_v49  ;;  %v6611_v56 = vadd.f32 %v2997_v46, %v6476_v26 }
 0xb95   : > { %v2926_v35 = vpop.f32.mrf.mxu1  ;;  %v2999_v2 = vpop.f32.mrf.mxu0  ;;  %4514 = vmatprep.subr.bf16.mxu1 %v6430_v28 }
 0xb96   : > { %v4155_v39 = vmul.f32 -1.702, %v6571_v13  ;;  %v6577_v41 = vadd.f32 %v2926_v35, %v6480_v3  ;;  %v6580_v42 = vadd.f32 %v2999_v2, %v6482_v4  ;;  %v4157_v32 = vmul.f32 -1.702, %v6611_v56 }
 0xb97   : > { %v2928_v47 = vpop.f32.mrf.mxu1  ;;  %v3001_v23 = vpop.f32.mrf.mxu0 }
 0xb98   : > { %v3112_v59 = vmul.f32 1.442695, %v4155_v39  ;;  %v4156_v63 = vmul.f32 -1.702, %v6577_v41  ;;  %v6584_v0 = vadd.f32 %v2928_v47, %v6472_v37  ;;  %4522 = vmatpush3.bf16.msra.mxu1 %v6434_v29  ;;  %v4158_v49 = vmul.f32 -1.702, %v6580_v42 }
 0xb99   : > { %v2930_v28 = vpop.f32.mrf.mxu1  ;;  %v3003_v5 = vpop.f32.mrf.mxu0  ;;  %4515 = vmatprep.subr.bf16.mxu1 %v6440_v12  ;;  %v6602_v12 = vadd.f32 %v3001_v23, %v6476_v26  ;;  %v3116_v2 = vmul.f32 1.442695, %v4157_v32 }
 0xb9a   : > { %v3114_v20 = vmul.f32 1.442695, %v4156_v63  ;;  %v4159_v9 = vmul.f32 -1.702, %v6584_v0  ;;  %v6591_v24 = vadd.f32 %v2930_v28, %v6480_v3  ;;  %4970 = vpow2.f32 %v3112_v59 }
 0xb9b   : > { %v3118_v16 = vmul.f32 1.442695, %v4158_v49  ;;  %v6594_v15 = vadd.f32 %v3003_v5, %v6482_v4  ;;  %v2934_v18 = vpop.f32.mrf.mxu1  ;;  %v3007_v1 = vpop.f32.mrf.mxu0  ;;  %v4161_v48 = vmul.f32 -1.702, %v6602_v12 }
 0xb9c   : > { %4972 = vpow2.f32 %v3114_v20  ;;  %v3120_v29 = vmul.f32 1.442695, %v4159_v9  ;;  %v4160_v21 = vmul.f32 -1.702, %v6591_v24  ;;  %v6598_v27 = vadd.f32 %v2934_v18, %v6472_v37  ;;  %4523 = vmatpush3.bf16.msra.mxu1 %v6444_v7 }
 0xb9d   : > { %v4162_v61 = vmul.f32 -1.702, %v6594_v15  ;;  %v2936_v6 = vpop.f32.mrf.mxu1  ;;  %v3009_v30 = vpop.f32.mrf.mxu0  ;;  %4516 = vmatprep.subr.bf16.mxu1 %v6450_v54  ;;  %v6639_v35 = vadd.f32 %v3007_v1, %v6476_v26 }
 0xb9e   : > { %4974 = vpow2.f32 %v3120_v29  ;;  %v3122_v10 = vmul.f32 1.442695, %v4160_v21  ;;  %v4163_v62 = vmul.f32 -1.702, %v6598_v27  ;;  %v6608_v34 = vadd.f32 %v2936_v6, %v6480_v3 }
 0xb9f   : > { %4976 = vpow2.f32 %v3118_v16  ;;  %v3126_v7 = vmul.f32 1.442695, %v4162_v61  ;;  %v6614_v11 = vadd.f32 %v3009_v30, %v6482_v4  ;;  %v2938_v38 = vpop.f32.mrf.mxu1  ;;  %v3011_v44 = vpop.f32.mrf.mxu0  ;;  %v4165_v49 = vmul.f32 -1.702, %v6639_v35 }
 0xba0   : > { %4978 = vpow2.f32 %v3122_v10  ;;  %v3128_v31 = vmul.f32 1.442695, %v4163_v62  ;;  %v4164_v54 = vmul.f32 -1.702, %v6608_v34  ;;  %v6618_v36 = vadd.f32 %v2938_v38, %v6472_v37  ;;  %4524 = vmatpush3.bf16.msra.mxu1 %v6454_v57 }
 0xba1   : > { %4980 = vpow2.f32 %v3126_v7  ;;  %v2940_v50 = vpop.f32.mrf.mxu1  ;;  %v3013_v51 = vpop.f32.mrf.mxu0  ;;  %4517 = vmatprep.subr.bf16.mxu1 %v6460_v58  ;;  %v4166_v57 = vmul.f32 -1.702, %v6614_v11  ;;  %v3124_v58 = vmul.f32 1.442695, %v4161_v48  ;;  %v6635_v46 = vadd.f32 %v3011_v44, %v6476_v26 }
 0xba2   : > { %v3130_v17 = vmul.f32 1.442695, %v4164_v54  ;;  %v4167_v55 = vmul.f32 -1.702, %v6618_v36  ;;  %v6625_v19 = vadd.f32 %v2940_v50, %v6480_v3  ;;  %4982 = vpow2.f32 %v3128_v31 }
 0xba3   : > { %v6629_v37 = vadd.f32 %v3013_v51, %v6482_v4  ;;  %v3134_v23 = vmul.f32 1.442695, %v4166_v57  ;;  %v3132_v29 = vmul.f32 1.442695, %v4165_v49 }
 0xba4   : > { %4984 = vpow2.f32 %v3130_v17  ;;  %v3136_v8 = vmul.f32 1.442695, %v4167_v55  ;;  %v4168_v14 = vmul.f32 -1.702, %v6625_v19  ;;  %4525 = vmatpush3.bf16.msra.mxu1 %v6464_v60  ;;  %v4169_v60 = vmul.f32 -1.702, %v6635_v46 }
 0xba5   : > { %v4170_v3 = vmul.f32 -1.702, %v6629_v37 }
 0xba6   : > { %4986 = vpow2.f32 %v3136_v8  ;;  %v3138_v4 = vmul.f32 1.442695, %v4168_v14  ;;  %v3140_v16 = vmul.f32 1.442695, %v4169_v60 }
 0xba7   : > { %v3142_v39 = vmul.f32 1.442695, %v4170_v3  ;;  %v4971_v47 = vpop.eup %4970 }
 0xba8   : > { %4988 = vpow2.f32 %v3138_v4  ;;  %v3160_v5 = vadd.f32 1.0, %v4971_v47 }
 0xba9   : > { %v4973_v59 = vpop.eup %4972  ;;  %4990 = vpow2.f32 %v3124_v58 }
 0xbaa   : > { %v3161_v63 = vadd.f32 1.0, %v4973_v59  ;;  %4992 = vpow2.f32 %v3142_v39 }
 0xbab   : > { %v4975_v28 = vpop.eup %4974  ;;  %4994 = vpow2.f32 %v3116_v2 }
 0xbac   : > { %v4977_v26 = vpop.eup %4976  ;;  %v3164_v20 = vadd.f32 1.0, %v4975_v28  ;;  %4996 = vpow2.f32 %v3134_v23 }
 0xbad   : > { %v4979_v9 = vpop.eup %4978  ;;  %4998 = vrcp.f32 %v3161_v63  ;;  %v3163_v21 = vadd.f32 1.0, %v4977_v26 }
 0xbae   : > { %v4981_v18 = vpop.eup %4980  ;;  %5000 = vrcp.f32 %v3164_v20  ;;  %v3165_v1 = vadd.f32 1.0, %v4979_v9 }
 0xbaf   : > { %5002 = vrcp.f32 %v3160_v5  ;;  %v4983_v61 = vpop.eup %4982  ;;  %v3167_v6 = vadd.f32 1.0, %v4981_v18 }
 0xbb0   : > { %5004 = vrcp.f32 %v3165_v1  ;;  %v3168_v7 = vadd.f32 1.0, %v4983_v61 }
 0xbb1   : > { %v4985_v30 = vpop.eup %4984  ;;  %5006 = vpow2.f32 %v3140_v16 }
 0xbb2   : > { %5008 = vpow2.f32 %v3132_v29  ;;  %v3169_v10 = vadd.f32 1.0, %v4985_v30 }
 0xbb3   : > { %v4987_v62 = vpop.eup %4986  ;;  %5010 = vrcp.f32 %v3163_v21 }
 0xbb4   : > { %5012 = vrcp.f32 %v3167_v6  ;;  %v3172_v38 = vadd.f32 1.0, %v4987_v62 }
 0xbb5   : > { %v4989_v44 = vpop.eup %4988  ;;  %5014 = vrcp.f32 %v3169_v10 }
 0xbb6   : > { %v4991_v31 = vpop.eup %4990  ;;  %5016 = vrcp.f32 %v3172_v38  ;;  %v3173_v54 = vadd.f32 1.0, %v4989_v44 }
 0xbb7   : > { %v4993_v48 = vpop.eup %4992  ;;  %5018 = vrcp.f32 %v3168_v7  ;;  %v3166_v17 = vadd.f32 1.0, %v4991_v31 }
 0xbb8   : > { %v4995_v50 = vpop.eup %4994  ;;  %5020 = vrcp.f32 %v3173_v54  ;;  %v3175_v32 = vadd.f32 1.0, %v4993_v48 }
 0xbb9   : > { %v4997_v51 = vpop.eup %4996  ;;  %v3162_v8 = vadd.f32 1.0, %v4995_v50  ;;  %5022 = vrcp.f32 %v3166_v17 }
 0xbba   : > { %v4999_v55 = vpop.eup %4998  ;;  %v3171_v58 = vadd.f32 1.0, %v4997_v51  ;;  %5024 = vrcp.f32 %v3175_v32 }
 0xbbb   : > { %v5001_v57 = vpop.eup %5000  ;;  %v3257_v39 = vmul.f32 %v4999_v55, %v6577_v41  ;;  %5026 = vrcp.f32 %v3162_v8  ;;  %v6664_v55 = vld [vmem:[%s817_s5] ss:$0 sm:$0xff] }
 0xbbc   : > { %v5003_v14 = vpop.eup %5002  ;;  %v3260_v4 = vmul.f32 %v5001_v57, %v6584_v0  ;;  %5028 = vrcp.f32 %v3171_v58 }
 0xbbd   : > { %v5005_v3 = vpop.eup %5004  ;;  %v3256_v59 = vmul.f32 %v5003_v14, %v6571_v13 }
 0xbbe   : > { %v5007_v2 = vpop.eup %5006  ;;  %v3261_v47 = vmul.f32 %v5005_v3, %v6591_v24 }
 0xbbf   : > { %v5009_v23 = vpop.eup %5008  ;;  %v3174_v28 = vadd.f32 1.0, %v5007_v2  ;;  %v3295_v5 = vpack.c.bf16 %v3260_v4, %v3256_v59 }
 0xbc0   : > { %v5011_v60 = vpop.eup %5010  ;;  %v3296_v63 = vpack.c.bf16 %v3261_v47, %v3257_v39  ;;  %v3170_v20 = vadd.f32 1.0, %v5009_v23  ;;  %v3280_v39 = vadd.f32 %v6664_v55, %v6278_v45 }
 0xbc1   : > { %v5013_v49 = vpop.eup %5012  ;;  %5030 = vrcp.f32 %v3174_v28  ;;  %v3259_v29 = vmul.f32 %v5011_v60, %v6580_v42 }
 0xbc2   : > { %v5015_v26 = vpop.eup %5014  ;;  %3607 = vmatprep.mubr.bf16.mxu1 %v3296_v63  ;;  %v3263_v16 = vmul.f32 %v5013_v49, %v6594_v15  ;;  %5032 = vrcp.f32 %v3170_v20 }
 0xbc3   : > { %v5017_v0 = vpop.eup %5016  ;;  %3608 = vmatmul.mubr.bf16.gmra.mxu1 %v3295_v5  ;;  %v3265_v13 = vmul.f32 %v5015_v26, %v6608_v34  ;;  %v3281_v5 = vadd.f32 %v6664_v55, %v6275_v40 }
 0xbc4   : > { %v5019_v9 = vpop.eup %5018  ;;  %v3268_v24 = vmul.f32 %v5017_v0, %v6618_v36  ;;  %v3298_v30 = vpack.c.bf16 %v3263_v16, %v3259_v29 }
 0xbc5   : > { %v5021_v41 = vpop.eup %5020  ;;  %v3264_v1 = vmul.f32 %v5019_v9, %v6598_v27 }
 0xbc6   : > { %v3269_v18 = vmul.f32 %v5021_v41, %v6625_v19  ;;  %v5023_v6 = vpop.eup %5022 }
 0xbc7   : > { %v3299_v61 = vpack.c.bf16 %v3268_v24, %v3264_v1  ;;  %v5025_v10 = vpop.eup %5024  ;;  %v3262_v15 = vmul.f32 %v5023_v6, %v6602_v12  ;;  %v3282_v24 = vadd.f32 %v6664_v55, %v6282_v43  ;;  %v3283_v43 = vadd.f32 %v6664_v55, %v6287_v53 }
 0xbc8   : > { %v3300_v21 = vpack.c.bf16 %v3269_v18, %v3265_v13  ;;  %v5027_v36 = vpop.eup %5026  ;;  %v3271_v34 = vmul.f32 %v5025_v10, %v6629_v37 }
 0xbc9   : > { %v5029_v62 = vpop.eup %5028  ;;  %v3258_v19 = vmul.f32 %v5027_v36, %v6611_v56 }
 0xbca   : > { %3615 = vmatprep.mubr.bf16.mxu1 %v3300_v21  ;;  %v3267_v27 = vmul.f32 %v5029_v62, %v6614_v11 }
 0xbcb   : > { %3616 = vmatmul.mubr.bf16.gmra.mxu1 %v3299_v61  ;;  %v3297_v7 = vpack.c.bf16 %v3262_v15, %v3258_v19 }
 0xbcc   : > { %3672 = vmatprep.mubr.bf16.mxu1 %v3298_v30  ;;  %v3302_v38 = vpack.c.bf16 %v3271_v34, %v3267_v27 }
 0xbce   : > { %v5031_v42 = vpop.eup %5030 }
 0xbcf   : > { %v5033_v44 = vpop.eup %5032  ;;  %v3270_v31 = vmul.f32 %v5031_v42, %v6635_v46  ;;  %v3279_v46 = vadd.f32 %v6664_v55, %v6271_v33 }
 0xbd0   : > { %v3266_v54 = vmul.f32 %v5033_v44, %v6639_v35 }
 0xbd2   : > { %v3301_v48 = vpack.c.bf16 %v3270_v31, %v3266_v54  ;;  %v3284_v31 = vadd.f32 %v6664_v55, %v6294_v22 }
 0xbd3   : > { %3673 = vmatmul.mubr.bf16.vlgmr.msra.gmra.mxu1 %v3297_v7 }
 0xbd4   : > { %3680 = vmatprep.mubr.bf16.mxu1 %v3302_v38 }
 0xbdb   : > { %3681 = vmatmul.mubr.bf16.gmra.mxu1 %v3301_v48 }
 0xc47   : > { %v4302_v12 = vpop.f32.mrf.mxu1 }
 0xc48   : > { %v4342_v50 = vpop.f32.mrf.mxu0 }
 0xc49   : > { %v4303_v37 = vpop.f32.mrf.mxu1 }
 0xc4a   : > { %v4304_v51 = vadd.f32 %v4303_v37, %v4302_v12  ;;  %v4343_v56 = vpop.f32.mrf.mxu0 }
 0xc4b   : > { %v4344_v11 = vadd.f32 %v4343_v56, %v4342_v50  ;;  %v4305_v17 = vpop.f32.mrf.mxu1 }
 0xc4c   : > { %v4345_v32 = vpop.f32.mrf.mxu0 }
 0xc4d   : > { %v3659_v35 = vadd.f32 %v4344_v11, %v4304_v51  ;;  %v4306_v57 = vpop.f32.mrf.mxu1  ;;  %v3285_v51 = vadd.f32 %v6664_v55, %v6291_v52 }
 0xc4e   : > { %v4307_v8 = vadd.f32 %v4306_v57, %v4305_v17  ;;  %v4346_v14 = vpop.f32.mrf.mxu0 }
 0xc4f   : > { %v3689_v58 = vadd.f32 %v3659_v35, %v3279_v46  ;;  %v4347_v3 = vadd.f32 %v4346_v14, %v4345_v32  ;;  %v4308_v4 = vpop.f32.mrf.mxu1  ;;  %v3286_v46 = vadd.f32 %v6664_v55, %v6298_v25 }
 0xc50   : > { %v4348_v2 = vpop.f32.mrf.mxu0 }
 0xc51   : > { %3697 = vst [vmem:[%s5900_s19] sm:$0xff] %v3689_v58  ;;  %v3662_v47 = vadd.f32 %v4347_v3, %v4307_v8  ;;  %v4309_v23 = vpop.f32.mrf.mxu1 }
 0xc52   : > { %v4310_v59 = vadd.f32 %v4309_v23, %v4308_v4  ;;  %v4349_v60 = vpop.f32.mrf.mxu0 }
 0xc53   : > { %v3690_v63 = vadd.f32 %v3662_v47, %v3280_v39  ;;  %v4350_v33 = vadd.f32 %v4349_v60, %v4348_v2  ;;  %v4311_v49 = vpop.f32.mrf.mxu1 }
 0xc54   : > { %v4351_v28 = vpop.f32.mrf.mxu0 }
 0xc55   : > { %3698 = vst [vmem:[%s5900_s19 + $0x8] sm:$0xff] %v3690_v63  ;;  %v3667_v26 = vadd.f32 %v4350_v33, %v4310_v59  ;;  %v4312_v0 = vpop.f32.mrf.mxu1 }
 0xc56   : > { %v4313_v20 = vadd.f32 %v4312_v0, %v4311_v49  ;;  %v4352_v9 = vpop.f32.mrf.mxu0 }
 0xc57   : > { %v3691_v45 = vadd.f32 %v3667_v26, %v3281_v5  ;;  %v4353_v41 = vadd.f32 %v4352_v9, %v4351_v28 }
 0xc59   : > { %3699 = vst [vmem:[%s5900_s19 + $0x10] sm:$0xff] %v3691_v45  ;;  %v3670_v16 = vadd.f32 %v4353_v41, %v4313_v20 }
 0xc5b   : > { %v3692_v13 = vadd.f32 %v3670_v16, %v3282_v24 }
 0xc5d   : > { %3700 = vst [vmem:[%s5900_s19 + $0x18] sm:$0xff] %v3692_v13 }
 0xc83   : > { %v4314_v18 = vpop.f32.mrf.mxu1 }
 0xc85   : > { %v4315_v1 = vpop.f32.mrf.mxu1 }
 0xc86   : > { %v4316_v62 = vadd.f32 %v4315_v1, %v4314_v18 }
 0xc87   : > { %v4317_v29 = vpop.f32.mrf.mxu1 }
 0xc89   : > { %v4318_v21 = vpop.f32.mrf.mxu1 }
 0xc8a   : > { %v4319_v7 = vadd.f32 %v4318_v21, %v4317_v29 }
 0xc8b   : > { %v4320_v61 = vpop.f32.mrf.mxu1 }
 0xc8d   : > { %v4321_v40 = vpop.f32.mrf.mxu1 }
 0xc8e   : > { %v4322_v12 = vadd.f32 %v4321_v40, %v4320_v61 }
 0xc8f   : > { %v4323_v6 = vpop.f32.mrf.mxu1 }
 0xc91   : > { %v4324_v30 = vpop.f32.mrf.mxu1 }
 0xc92   : > { %v4325_v17 = vadd.f32 %v4324_v30, %v4323_v6 }
 0xc93   : > { %v4354_v10 = vpop.f32.mrf.mxu1 }
 0xc95   : > { %v4355_v36 = vpop.f32.mrf.mxu1 }
 0xc96   : > { %v4356_v15 = vadd.f32 %v4355_v36, %v4354_v10 }
 0xc97   : > { %v4357_v34 = vpop.f32.mrf.mxu1 }
 0xc98   : > { %v3675_v19 = vadd.f32 %v4356_v15, %v4316_v62 }
 0xc99   : > { %v4358_v27 = vpop.f32.mrf.mxu1 }
 0xc9a   : > { %v3693_v42 = vadd.f32 %v3675_v19, %v3283_v43  ;;  %v4359_v38 = vadd.f32 %v4358_v27, %v4357_v34 }
 0xc9b   : > { %v4360_v44 = vpop.f32.mrf.mxu1 }
 0xc9c   : > { %3701 = vst [vmem:[%s5900_s19 + $0x20] sm:$0xff] %v3693_v42  ;;  %v3678_v54 = vadd.f32 %v4359_v38, %v4319_v7 }
 0xc9d   : > { %v4361_v48 = vpop.f32.mrf.mxu1 }
 0xc9e   : > { %v3694_v50 = vadd.f32 %v3678_v54, %v3284_v31  ;;  %v4362_v37 = vadd.f32 %v4361_v48, %v4360_v44 }
 0xc9f   : > { %v4363_v53 = vpop.f32.mrf.mxu1 }
 0xca0   : > { %3702 = vst [vmem:[%s5900_s19 + $0x28] sm:$0xff] %v3694_v50  ;;  %v3683_v56 = vadd.f32 %v4362_v37, %v4322_v12 }
 0xca1   : > { %v4364_v11 = vpop.f32.mrf.mxu1 }
 0xca2   : > { %v3695_v22 = vadd.f32 %v3683_v56, %v3285_v51  ;;  %v4365_v32 = vadd.f32 %v4364_v11, %v4363_v53 }
 0xca4   : > { %3703 = vst [vmem:[%s5900_s19 + $0x30] sm:$0xff] %v3695_v22  ;;  %v3686_v35 = vadd.f32 %v4365_v32, %v4325_v17 }
 0xca6   : > { %v3696_v52 = vadd.f32 %v3686_v35, %v3286_v46 }
 0xca8   : > { %3704 = vst [vmem:[%s5900_s19 + $0x38] sm:$0xff] %v3696_v52 }
 0xca9   : > { %5307 = shalt.err (!%p5304_p5)
}
 0xcaa   : > { %s5308_s8 = scalar_lea.hbm %s6694_s20, 1024  ;;  %s5312_s19 = scalar_lea.hbm %s6876_s12, 2048 }
 0xcab   : > { %p5309_p11 = scmp.ne.s32.totalorder %s6694_s20, %s5308_s8  ;;  %p5313_p4 = scmp.lt.s32.totalorder %s6694_s20, %s6876_s12 }
 0xcac   : > { %p5314_p6 = scmp.lt.s32.totalorder %s5312_s19, %s5308_s8 }
 0xcad   : > { %p5310_p7 = pnand %p5309_p11, %p5729_p1 }
 0xcae   : > { %p5315_p8 = por %p5314_p6, %p5313_p4 }
 0xcaf   : > { %p5311_p13 = pneg %p5310_p7 }
 0xcb1   : > { %p5316_p9 = pnand %p5315_p8, %p5311_p13 }
 0xcb3   : > { %5319 = shalt.err (!%p5316_p9)
}
 0xcb4   : > { %s5454_s11 = smov 128   ;;  %s5455_s23 = smov 8  }
 0xcb5   : > { %4548 = dma.vmem_to_hbm [thread:$0]  (%p5729_p1), %s6696_s24, 1024, %s6694_s20, %s3706_s30, %s5454_s11, %s5454_s11, %s5455_s23  }
 0xcb6 PF: > { %p4583_p12 = scmp.ge.s32.totalorder %s5430_s18, 2  ;;  %s3734_s14 = sand.u32 1, %s5402_s28  }
 0xcb7   : > { %s3735_s9 = scalar_lea.sflag [#allocation5], %s3734_s14 }
 0xcb8   : > { %p4579_p10 = pnand %p4583_p12, %p5745_p3 }
 0xcba   : > { %p4580_p0 = pneg %p4579_p10 }
 0xcbc   : > { %5385 = dma.done.wait (%p4580_p0), %s3735_s9, 1024  }
 0xcbd   : > { %5387 = vsyncadd (%p4580_p0), %s3735_s9, 4294966272  ;;  %s41_s18 = sadd.s32 1, %s5430_s18   ;;  %s6878_s25 = sld [smem:[#allocation25_spill]] }
 0xcbe   : > { %p38_p2 = scmp.ge.s32.totalorder %s41_s18, 6   ;;  %s6879_s26 = sld [smem:[#allocation26_spill]] }
 0xcbf   : > { %s6880_s27 = sld [smem:[#allocation38_spill]] }
 0xcc0   : > { %s6881_s28 = sld [smem:[#allocation27_spill]] }
 0xcc1   : > { %s6882_s29 = sld [smem:[#allocation28_spill]] }
 0xcc2   : > { %s6883_s30 = sld [smem:[#allocation39_spill]]  ;;  %40 = sbr.rel (!%p38_p2) target bundleno = 32 (0x20), region = 229 }
 0xcc3   : > { %s6884_s14 = sld [smem:[#allocation31_spill]] }
 0xcc4   : > { %s6885_s15 = sld [smem:[#allocation32_spill]] }
 0xcc5   : > { %s6886_s16 = sld [smem:[#allocation34_spill]] }
 0xcc6   : > { %s6887_s17 = sld [smem:[#allocation35_spill]] }
 0xcc7   :  { %3740 = vsyncpa [#allocation4], 1 }
 0xcc8   :  { %3742 = vsyncpa [#allocation4 + $0x1], 1 }
 0xcc9   :  { %3743 = vsyncpa [#allocation7], 1 }
 0xcca   :  { %3745 = vsyncpa [#allocation7 + $0x1], 1 }
 0xccb   :  { %3746 = vsyncpa [#allocation10], 1 }
 0xccc   :  { %3748 = vsyncpa [#allocation10 + $0x1], 1 }
 0xccd   :  { %3749 = vsyncpa [#allocation13], 1 }
 0xcce   :  { %3751 = vsyncpa [#allocation13 + $0x1], 1 }
 0xccf   :  { %3752 = vsyncpa [#allocation16], 1 }
 0xcd0   :  { %3754 = vsyncpa [#allocation16 + $0x1], 1 }
 0xcd1   :  { %3755 = vsyncpa [#allocation5], 1 }
 0xcd2   :  { %3757 = vsyncpa [#allocation5 + $0x1], 1 }

</bundles_post_ra>
